<compile_context>
chip_gen: v6e
topology: v6e:2x2x1
jax: 0.10.0
libtpu: 0.0.40
codegen_flags: <defaults>
</compile_context>

<pallas_src>
import numpy as np
import jax
import jax.numpy as jnp
from jax import lax
from jax.experimental import pallas as pl
from jax.experimental.pallas import tpu as pltpu

# Left halo width in the padded-activation scratch. 16 keeps the big interior store
# sublane-aligned for bf16 (native tile (16, 128)); the 1-wide conv halo lives at columns
# _LPAD-1 and _LPAD+W.
_LPAD = 16


# ---------------------------------------------------------------------------
# In-kernel helpers
# ---------------------------------------------------------------------------

def _bn_relu_bf16(x_f32, scale_ref, shift_ref):
    # Folded BatchNorm affine + ReLU on the VPU; single downcast to the MXU operand dtype.
    return jnp.maximum(x_f32 * scale_ref[...] + shift_ref[...], 0.0).astype(jnp.bfloat16)


def _fill_pad(pad_ref, a_bf16, H, W):
    """Write the activation into the padded scratch.

    pad_ref: (H+2, _LPAD+W+1, C) bf16.  Interior = rows [1:H+1], cols [_LPAD:_LPAD+W].
    Only the 1-wide halo ring that the 3x3 taps actually read is zeroed each step
    (cheap strips); the bulk of the scratch is never re-zeroed.
    """
    C = pad_ref.shape[-1]
    zrow = jnp.zeros((1, W + 2, C), jnp.bfloat16)
    zcol = jnp.zeros((H, 1, C), jnp.bfloat16)
    pad_ref[0:1, _LPAD - 1:_LPAD + W + 1, :] = zrow            # top halo row
    pad_ref[H + 1:H + 2, _LPAD - 1:_LPAD + W + 1, :] = zrow    # bottom halo row
    pad_ref[1:H + 1, _LPAD - 1:_LPAD, :] = zcol                # left halo col
    pad_ref[1:H + 1, _LPAD + W:_LPAD + W + 1, :] = zcol        # right halo col
    pad_ref[1:H + 1, _LPAD:_LPAD + W, :] = a_bf16              # sublane-aligned interior


def _conv3x3(pad_ref, patch_ref, w_ref, H, W, C, Cout):
    """3x3 conv (stride 1, padding 1) as ONE MXU matmul with K = 9*C.

    The 9 shifted (H, W, C) views of the padded activation are packed into the bf16
    (H, W, 9*C) patch buffer (im2col with K on lanes) and contracted in a single
    jnp.dot with f32 accumulation.
    """
    for k in range(9):
        dh, dw = divmod(k, 3)
        patch_ref[:, :, k * C:(k + 1) * C] = (
            pad_ref[dh:dh + H, _LPAD - 1 + dw:_LPAD - 1 + dw + W, :])
    patch = patch_ref[...].reshape(H * W, 9 * C)
    return jnp.dot(patch, w_ref[...], preferred_element_type=jnp.float32)   # (H*W, Cout) f32


# ---------------------------------------------------------------------------
# Stage 1:  a = relu(bn1(x)) ;  y1 = conv1(a)  [; sc = shortcut_conv1x1(a)]
#           + per-image sum / sum-of-squares of y1 for bn2's batch statistics.
# ---------------------------------------------------------------------------

def _stage1_kernel(x_ref, scale_ref, shift_ref, w_ref,
                   y_ref, sum_ref, sq_ref, pad_ref, patch_ref):
    _, H, W, Cin = x_ref.shape
    Cout = y_ref.shape[3]
    a = _bn_relu_bf16(x_ref[0].astype(jnp.float32), scale_ref, shift_ref)
    _fill_pad(pad_ref, a, H, W)
    y = _conv3x3(pad_ref, patch_ref, w_ref, H, W, Cin, Cout)        # (H*W, Cout) f32
    y_ref[0] = y.reshape(H, W, Cout).astype(y_ref.dtype)
    sum_ref[0] = jnp.sum(y, axis=0, keepdims=True)
    sq_ref[0] = jnp.sum(y * y, axis=0, keepdims=True)


def _stage1_proj_kernel(x_ref, scale_ref, shift_ref, w_ref, ws_ref,
                        y_ref, sc_ref, sum_ref, sq_ref, pad_ref, patch_ref):
    _, H, W, Cin = x_ref.shape
    Cout = y_ref.shape[3]
    a = _bn_relu_bf16(x_ref[0].astype(jnp.float32), scale_ref, shift_ref)
    # Projection shortcut: 1x1 conv on the pre-activation (single MXU matmul).
    sc = jnp.dot(a.reshape(H * W, Cin), ws_ref[...], preferred_element_type=jnp.float32)
    sc_ref[0] = sc.reshape(H, W, Cout).astype(sc_ref.dtype)
    _fill_pad(pad_ref, a, H, W)
    y = _conv3x3(pad_ref, patch_ref, w_ref, H, W, Cin, Cout)
    y_ref[0] = y.reshape(H, W, Cout).astype(y_ref.dtype)
    sum_ref[0] = jnp.sum(y, axis=0, keepdims=True)
    sq_ref[0] = jnp.sum(y * y, axis=0, keepdims=True)


# ---------------------------------------------------------------------------
# Stage 2:  y2 = conv2(relu(bn2(y1))) ;  SE gate ;  out = y2*gate + shortcut
# ---------------------------------------------------------------------------

def _stage2_kernel(y1_ref, sc_ref, scale_ref, shift_ref, w_ref,
                   wfc1_ref, bfc1_ref, wfc2_ref, bfc2_ref, o_ref, pad_ref, patch_ref):
    _, H, W, P = y1_ref.shape
    a = _bn_relu_bf16(y1_ref[0].astype(jnp.float32), scale_ref, shift_ref)
    _fill_pad(pad_ref, a, H, W)
    y2 = _conv3x3(pad_ref, patch_ref, w_ref, H, W, P, P)            # (H*W, P) f32

    # Squeeze-excite gate: global avg pool (XLU reduction) + two tiny FCs on the VPU.
    pool = jnp.mean(y2, axis=0, keepdims=True)                      # (1, P)
    h = jnp.maximum(jnp.sum(pool * wfc1_ref[...], axis=1, keepdims=True)
                    + bfc1_ref[...], 0.0)                           # (P16, 1)
    z = jnp.sum(h * wfc2_ref[...], axis=0, keepdims=True) + bfc2_ref[...]   # (1, P)
    gate = 1.0 / (1.0 + jnp.exp(-z))                                # sigmoid on EUP

    out = y2 * gate + sc_ref[0].astype(jnp.float32).reshape(H * W, P)
    o_ref[0] = out.reshape(H, W, P).astype(o_ref.dtype)


# ---------------------------------------------------------------------------
# Wrapper
# ---------------------------------------------------------------------------

def preact_block_forward(x, params, *, stride=1, eps=1e-5):
    """x: (N, Cin, H, W) NCHW f32. params: dict of arrays in PyTorch layouts."""
    if stride != 1:
        raise NotImplementedError("stride != 1 not supported (module default is 1)")
    N, Cin, H, W = x.shape
    P = params["conv1_w"].shape[0]
    P16 = params["fc1_w"].shape[0]
    assert H == W, "F.avg_pool2d(out, (H,)) is a global pool only for square inputs"

    f32, bf16 = jnp.float32, jnp.bfloat16

    def _bn_affine(mean, var, gamma, beta):
        scale = gamma / jnp.sqrt(var + eps)
        shift = beta - mean * scale
        C = scale.shape[0]
        return scale.reshape(1, 1, C).astype(f32), shift.reshape(1, 1, C).astype(f32)

    def _w9(w):
        # (O, I, 3, 3) -> (3, 3, I, O) -> (9*I, O) bf16, matching the patch lane order
        # (tap-major, channel-minor) so the whole conv is one K=9*I matmul.
        O, I = w.shape[0], w.shape[1]
        return jnp.transpose(w, (2, 3, 1, 0)).reshape(9 * I, O).astype(bf16)

    def _cparams(block_bytes, scratch_bytes):
        # Scoped-VMEM budget sized to the real per-step footprint (double-buffered blocks
        # + scratch) with headroom, clamped to v7x's 64 MiB physical VMEM.
        need = 2 * block_bytes + scratch_bytes + (2 << 20)
        vmem = int(min(max(2 * need, 32 << 20), 64 << 20))
        return pltpu.CompilerParams(dimension_semantics=("parallel",),
                                    vmem_limit_bytes=vmem)

    # Layout glue: NCHW -> NHWC (channels on lanes).
    x_nhwc = jnp.transpose(x, (0, 2, 3, 1))
    mean1 = jnp.mean(x, axis=(0, 2, 3))
    var1 = jnp.var(x, axis=(0, 2, 3))
    scale1, shift1 = _bn_affine(mean1, var1, params["bn1_gamma"], params["bn1_beta"])
    w1 = _w9(params["conv1_w"])

    grid = (N,)
    img = lambda C: pl.BlockSpec((1, H, W, C), lambda n: (n, 0, 0, 0))
    cvec = lambda C: pl.BlockSpec((1, 1, C), lambda n: (0, 0, 0))
    mat = lambda A, B: pl.BlockSpec((A, B), lambda n: (0, 0))
    stat = pl.BlockSpec((1, 1, P), lambda n: (n, 0, 0))

    scr1 = [pltpu.VMEM((H + 2, _LPAD + W + 1, Cin), bf16),
            pltpu.VMEM((H, W, 9 * Cin), bf16)]
    scr1_bytes = ((H + 2) * (_LPAD + W + 1) * Cin + H * W * 9 * Cin) * 2

    has_proj = ("shortcut_w" in params) and (params["shortcut_w"] is not None)
    if has_proj:
        ws = params["shortcut_w"].reshape(P, Cin).T.astype(bf16)      # (Cin, P)
        blk1 = (H * W * Cin * 4 + 2 * H * W * P * 2 + 2 * P * 4
                + w1.size * 2 + ws.size * 2 + 2 * Cin * 4)
        y1, shortcut, y1_sum, y1_sq = pl.pallas_call(
            _stage1_proj_kernel,
            out_shape=(jax.ShapeDtypeStruct((N, H, W, P), bf16),
                       jax.ShapeDtypeStruct((N, H, W, P), bf16),
                       jax.ShapeDtypeStruct((N, 1, P), f32),
                       jax.ShapeDtypeStruct((N, 1, P), f32)),
            grid=grid,
            in_specs=[img(Cin), cvec(Cin), cvec(Cin), mat(9 * Cin, P), mat(Cin, P)],
            out_specs=(img(P), img(P), stat, stat),
            scratch_shapes=scr1,
            compiler_params=_cparams(blk1, scr1_bytes),
        )(x_nhwc, scale1, shift1, w1, ws)
    else:
        assert Cin == P, "identity shortcut requires in_planes == planes"
        blk1 = (H * W * Cin * 4 + H * W * P * 2 + 2 * P * 4
                + w1.size * 2 + 2 * Cin * 4)
        y1, y1_sum, y1_sq = pl.pallas_call(
            _stage1_kernel,
            out_shape=(jax.ShapeDtypeStruct((N, H, W, P), bf16),
                       jax.ShapeDtypeStruct((N, 1, P), f32),
                       jax.ShapeDtypeStruct((N, 1, P), f32)),
            grid=grid,
            in_specs=[img(Cin), cvec(Cin), cvec(Cin), mat(9 * Cin, P)],
            out_specs=(img(P), stat, stat),
            scratch_shapes=scr1,
            compiler_params=_cparams(blk1, scr1_bytes),
        )(x_nhwc, scale1, shift1, w1)
        shortcut = x_nhwc                                            # identity (f32)

    # bn2 batch statistics from the in-kernel partial sums (no extra HBM pass over y1).
    cnt = float(N * H * W)
    mean2 = jnp.sum(y1_sum, axis=(0, 1)) / cnt                       # (P,)
    ex2 = jnp.sum(y1_sq, axis=(0, 1)) / cnt
    var2 = jnp.maximum(ex2 - mean2 * mean2, 0.0)
    scale2, shift2 = _bn_affine(mean2, var2, params["bn2_gamma"], params["bn2_beta"])

    w2 = _w9(params["conv2_w"])
    wfc1 = params["fc1_w"].reshape(P16, P).astype(f32)               # (P16, P)
    bfc1 = params["fc1_b"].reshape(P16, 1).astype(f32)
    wfc2 = params["fc2_w"].reshape(P, P16).T.astype(f32)             # (P16, P)
    bfc2 = params["fc2_b"].reshape(1, P).astype(f32)

    scr2 = [pltpu.VMEM((H + 2, _LPAD + W + 1, P), bf16),
            pltpu.VMEM((H, W, 9 * P), bf16)]
    scr2_bytes = ((H + 2) * (_LPAD + W + 1) * P + H * W * 9 * P) * 2
    sc_bytes = H * W * P * (2 if has_proj else 4)
    blk2 = (H * W * P * 2 + sc_bytes + H * W * P * 4 + w2.size * 2 + 2 * P * 4
            + (2 * P16 * P + P16 + P) * 4)

    out_nhwc = pl.pallas_call(
        _stage2_kernel,
        out_shape=jax.ShapeDtypeStruct((N, H, W, P), f32),
        grid=grid,
        in_specs=[img(P), img(P), cvec(P), cvec(P), mat(9 * P, P),
                  mat(P16, P), mat(P16, 1), mat(P16, P), mat(1, P)],
        out_specs=img(P),
        scratch_shapes=scr2,
        compiler_params=_cparams(blk2, scr2_bytes),
    )(y1, shortcut, scale2, shift2, w2, wfc1, bfc1, wfc2, bfc2)

    return jnp.transpose(out_nhwc, (0, 3, 1, 2))    # back to NCHW


# ---------------------------------------------------------------------------
# Pure-JAX reference (matches PyTorch PreActBlock.forward, training-mode BN)
# ---------------------------------------------------------------------------

def preact_block_reference(x, params, *, eps=1e-5):
    def bn(v, gamma, beta):
        m = jnp.mean(v, axis=(0, 2, 3), keepdims=True)
        var = jnp.var(v, axis=(0, 2, 3), keepdims=True)
        return ((v - m) / jnp.sqrt(var + eps) * gamma[None, :, None, None]
                + beta[None, :, None, None])

    def conv(v, w, pad):
        return lax.conv_general_dilated(
            v, w, window_strides=(1, 1), padding=((pad, pad), (pad, pad)),
            dimension_numbers=("NCHW", "OIHW", "NCHW"))

    a = jnp.maximum(bn(x, params["bn1_gamma"], params["bn1_beta"]), 0.0)
    if ("shortcut_w" in params) and (params["shortcut_w"] is not None):
        shortcut = conv(a, params["shortcut_w"], 0)
    else:
        shortcut = x
    out = conv(a, params["conv1_w"], 1)
    out = conv(jnp.maximum(bn(out, params["bn2_gamma"], params["bn2_beta"]), 0.0),
               params["conv2_w"], 1)
    w = jnp.mean(out, axis=(2, 3), keepdims=True)
    w = jnp.maximum(conv(w, params["fc1_w"], 0) + params["fc1_b"][None, :, None, None], 0.0)
    w = jax.nn.sigmoid(conv(w, params["fc2_w"], 0) + params["fc2_b"][None, :, None, None])
    return out * w + shortcut


# ---------------------------------------------------------------------------
# Demo / self-check
# ---------------------------------------------------------------------------

def _make_params(key, in_planes, planes, with_shortcut):
    ks = jax.random.split(key, 10)
    p = {
        "bn1_gamma": 1.0 + 0.1 * jax.random.normal(ks[0], (in_planes,), jnp.float32),
        "bn1_beta": 0.1 * jax.random.normal(ks[1], (in_planes,), jnp.float32),
        "conv1_w": jax.random.normal(ks[2], (planes, in_planes, 3, 3), jnp.float32)
                   / np.sqrt(9 * in_planes),
        "bn2_gamma": 1.0 + 0.1 * jax.random.normal(ks[3], (planes,), jnp.float32),
        "bn2_beta": 0.1 * jax.random.normal(ks[4], (planes,), jnp.float32),
        "conv2_w": jax.random.normal(ks[5], (planes, planes, 3, 3), jnp.float32)
                   / np.sqrt(9 * planes),
        "fc1_w": jax.random.normal(ks[6], (planes // 16, planes, 1, 1), jnp.float32)
                 / np.sqrt(planes),
        "fc1_b": 0.1 * jax.random.normal(ks[7], (planes // 16,), jnp.float32),
        "fc2_w": jax.random.normal(ks[8], (planes, planes // 16, 1, 1), jnp.float32)
                 / np.sqrt(max(planes // 16, 1)),
        "fc2_b": 0.1 * jax.random.normal(ks[9], (planes,), jnp.float32),
    }
    if with_shortcut:
        kw = jax.random.fold_in(key, 123)
        p["shortcut_w"] = (jax.random.normal(kw, (planes, in_planes, 1, 1), jnp.float32)
                           / np.sqrt(in_planes))
    return p


if __name__ == "__main__":
    key = jax.random.PRNGKey(0)
    kxa, kpa, kxb, kpb = jax.random.split(key, 4)
    N, H, W = 2, 16, 16
    # Tolerance sized for bf16 MXU operands / bf16 inter-stage tensors (f32 accumulation).
    TOL = dict(rtol=5e-2, atol=5e-2)

    # Config A: in_planes == planes, stride=1 -> identity shortcut (module default path).
    xa = jax.random.normal(kxa, (N, 16, H, W), jnp.float32)
    pa = _make_params(kpa, 16, 16, with_shortcut=False)
    outa = jax.block_until_ready(preact_block_forward(xa, pa))
    assert outa.shape == (N, 16, H, W), outa.shape
    np.testing.assert_allclose(np.asarray(outa),
                               np.asarray(preact_block_reference(xa, pa)), **TOL)

    # Config B: in_planes != planes -> projection (1x1 conv) shortcut.
    xb = jax.random.normal(kxb, (N, 8, H, W), jnp.float32)
    pb = _make_params(kpb, 8, 16, with_shortcut=True)
    outb = jax.block_until_ready(preact_block_forward(xb, pb))
    assert outb.shape == (N, 16, H, W), outb.shape
    np.testing.assert_allclose(np.asarray(outb),
                               np.asarray(preact_block_reference(xb, pb)), **TOL)

    print("KERNEL_OK")
</pallas_src>

<mosaic_0001>
module attributes {stable_mosaic.version = 11 : i64} {
  func.func @_stage1_kernel(%arg0: i32, %arg1: memref<1x16x16x16xf32, #tpu.memory_space<vmem>>, %arg2: memref<1x1x16xf32, #tpu.memory_space<vmem>>, %arg3: memref<1x1x16xf32, #tpu.memory_space<vmem>>, %arg4: memref<144x16xbf16, #tpu.memory_space<vmem>>, %arg5: memref<1x16x16x16xbf16, #tpu.memory_space<vmem>>, %arg6: memref<1x1x16xf32, #tpu.memory_space<vmem>>, %arg7: memref<1x1x16xf32, #tpu.memory_space<vmem>>, %arg8: memref<18x33x16xbf16, #tpu.memory_space<vmem>>, %arg9: memref<16x16x144xbf16, #tpu.memory_space<vmem>>) attributes {dimension_semantics = [#tpu.dimension_semantics<parallel>], iteration_bounds = array<i64: 2>, scalar_prefetch = 0 : i64, scratch_operands = 2 : i64, tpu.core_type = #tpu.core_type<tc>, window_params = [{transform_indices = @transform_0, window_bounds = array<i64: 1, 16, 16, 16>}, {pipeline_mode = #tpu.pipeline_mode<synchronous>, transform_indices = @transform_1, window_bounds = array<i64: 1, 1, 16>}, {pipeline_mode = #tpu.pipeline_mode<synchronous>, transform_indices = @transform_2, window_bounds = array<i64: 1, 1, 16>}, {pipeline_mode = #tpu.pipeline_mode<synchronous>, transform_indices = @transform_3, window_bounds = array<i64: 144, 16>}, {transform_indices = @transform_4, window_bounds = array<i64: 1, 16, 16, 16>}, {transform_indices = @transform_5, window_bounds = array<i64: 1, 1, 16>}, {transform_indices = @transform_6, window_bounds = array<i64: 1, 1, 16>}]} {
    %c0 = arith.constant 0 : index
    %c0_0 = arith.constant 0 : index
    %c0_1 = arith.constant 0 : index
    %c0_2 = arith.constant 0 : index
    %0 = vector.load %arg1[%c0, %c0_0, %c0_1, %c0_2] : memref<1x16x16x16xf32, #tpu.memory_space<vmem>>, vector<1x16x16x16xf32>
    %1 = vector.shape_cast %0 : vector<1x16x16x16xf32> to vector<16x16x16xf32>
    %c0_3 = arith.constant 0 : index
    %c0_4 = arith.constant 0 : index
    %c0_5 = arith.constant 0 : index
    %2 = vector.load %arg2[%c0_3, %c0_4, %c0_5] : memref<1x1x16xf32, #tpu.memory_space<vmem>>, vector<1x1x16xf32>
    %3 = vector.broadcast %2 : vector<1x1x16xf32> to vector<16x16x16xf32>
    %4 = arith.mulf %1, %3 : vector<16x16x16xf32>
    %c0_6 = arith.constant 0 : index
    %c0_7 = arith.constant 0 : index
    %c0_8 = arith.constant 0 : index
    %5 = vector.load %arg3[%c0_6, %c0_7, %c0_8] : memref<1x1x16xf32, #tpu.memory_space<vmem>>, vector<1x1x16xf32>
    %6 = vector.broadcast %5 : vector<1x1x16xf32> to vector<16x16x16xf32>
    %7 = arith.addf %4, %6 : vector<16x16x16xf32>
    %cst = arith.constant 0.000000e+00 : f32
    %8 = vector.broadcast %cst : f32 to vector<16x16x16xf32>
    %9 = arith.maximumf %7, %8 : vector<16x16x16xf32>
    %10 = arith.truncf %9 : vector<16x16x16xf32> to vector<16x16x16xbf16>
    %cst_9 = arith.constant 0.000000e+00 : bf16
    %11 = vector.broadcast %cst_9 : bf16 to vector<1x18x16xbf16>
    %cst_10 = arith.constant 0.000000e+00 : bf16
    %12 = vector.broadcast %cst_10 : bf16 to vector<16x1x16xbf16>
    %c0_11 = arith.constant 0 : index
    %c15 = arith.constant 15 : index
    %c0_12 = arith.constant 0 : index
    %13 = vector.load %arg8[%c0_11, %c15, %c0_12] : memref<18x33x16xbf16, #tpu.memory_space<vmem>>, vector<1x18x16xbf16>
    tpu.vector_store %arg8[%c0_11, %c15, %c0_12], %11 {strides = array<i32>} : memref<18x33x16xbf16, #tpu.memory_space<vmem>>, vector<1x18x16xbf16>,
    %c17 = arith.constant 17 : index
    %c15_13 = arith.constant 15 : index
    %c0_14 = arith.constant 0 : index
    %14 = vector.load %arg8[%c17, %c15_13, %c0_14] : memref<18x33x16xbf16, #tpu.memory_space<vmem>>, vector<1x18x16xbf16>
    tpu.vector_store %arg8[%c17, %c15_13, %c0_14], %11 {strides = array<i32>} : memref<18x33x16xbf16, #tpu.memory_space<vmem>>, vector<1x18x16xbf16>,
    %c1 = arith.constant 1 : index
    %c15_15 = arith.constant 15 : index
    %c0_16 = arith.constant 0 : index
    %15 = vector.load %arg8[%c1, %c15_15, %c0_16] : memref<18x33x16xbf16, #tpu.memory_space<vmem>>, vector<16x1x16xbf16>
    tpu.vector_store %arg8[%c1, %c15_15, %c0_16], %12 {strides = array<i32>} : memref<18x33x16xbf16, #tpu.memory_space<vmem>>, vector<16x1x16xbf16>,
    %c1_17 = arith.constant 1 : index
    %c32 = arith.constant 32 : index
    %c0_18 = arith.constant 0 : index
    %16 = vector.load %arg8[%c1_17, %c32, %c0_18] : memref<18x33x16xbf16, #tpu.memory_space<vmem>>, vector<16x1x16xbf16>
    tpu.vector_store %arg8[%c1_17, %c32, %c0_18], %12 {strides = array<i32>} : memref<18x33x16xbf16, #tpu.memory_space<vmem>>, vector<16x1x16xbf16>,
    %c1_19 = arith.constant 1 : index
    %c16 = arith.constant 16 : index
    %c0_20 = arith.constant 0 : index
    %17 = vector.load %arg8[%c1_19, %c16, %c0_20] : memref<18x33x16xbf16, #tpu.memory_space<vmem>>, vector<16x16x16xbf16>
    tpu.vector_store %arg8[%c1_19, %c16, %c0_20], %10 {strides = array<i32>} : memref<18x33x16xbf16, #tpu.memory_space<vmem>>, vector<16x16x16xbf16>,
    %c0_21 = arith.constant 0 : index
    %c15_22 = arith.constant 15 : index
    %c0_23 = arith.constant 0 : index
    %18 = vector.load %arg8[%c0_21, %c15_22, %c0_23] : memref<18x33x16xbf16, #tpu.memory_space<vmem>>, vector<16x16x16xbf16>
    %c0_24 = arith.constant 0 : index
    %c0_25 = arith.constant 0 : index
    %c0_26 = arith.constant 0 : index
    %19 = vector.load %arg9[%c0_24, %c0_25, %c0_26] : memref<16x16x144xbf16, #tpu.memory_space<vmem>>, vector<16x16x16xbf16>
    tpu.vector_store %arg9[%c0_24, %c0_25, %c0_26], %18 {strides = array<i32>} : memref<16x16x144xbf16, #tpu.memory_space<vmem>>, vector<16x16x16xbf16>,
    %c0_27 = arith.constant 0 : index
    %c16_28 = arith.constant 16 : index
    %c0_29 = arith.constant 0 : index
    %20 = vector.load %arg8[%c0_27, %c16_28, %c0_29] : memref<18x33x16xbf16, #tpu.memory_space<vmem>>, vector<16x16x16xbf16>
    %c0_30 = arith.constant 0 : index
    %c0_31 = arith.constant 0 : index
    %c16_32 = arith.constant 16 : index
    %21 = vector.load %arg9[%c0_30, %c0_31, %c16_32] : memref<16x16x144xbf16, #tpu.memory_space<vmem>>, vector<16x16x16xbf16>
    tpu.vector_store %arg9[%c0_30, %c0_31, %c16_32], %20 {strides = array<i32>} : memref<16x16x144xbf16, #tpu.memory_space<vmem>>, vector<16x16x16xbf16>,
    %c0_33 = arith.constant 0 : index
    %c17_34 = arith.constant 17 : index
    %c0_35 = arith.constant 0 : index
    %22 = vector.load %arg8[%c0_33, %c17_34, %c0_35] : memref<18x33x16xbf16, #tpu.memory_space<vmem>>, vector<16x16x16xbf16>
    %c0_36 = arith.constant 0 : index
    %c0_37 = arith.constant 0 : index
    %c32_38 = arith.constant 32 : index
    %23 = vector.load %arg9[%c0_36, %c0_37, %c32_38] : memref<16x16x144xbf16, #tpu.memory_space<vmem>>, vector<16x16x16xbf16>
    tpu.vector_store %arg9[%c0_36, %c0_37, %c32_38], %22 {strides = array<i32>} : memref<16x16x144xbf16, #tpu.memory_space<vmem>>, vector<16x16x16xbf16>,
    %c1_39 = arith.constant 1 : index
    %c15_40 = arith.constant 15 : index
    %c0_41 = arith.constant 0 : index
    %24 = vector.load %arg8[%c1_39, %c15_40, %c0_41] : memref<18x33x16xbf16, #tpu.memory_space<vmem>>, vector<16x16x16xbf16>
    %c0_42 = arith.constant 0 : index
    %c0_43 = arith.constant 0 : index
    %c48 = arith.constant 48 : index
    %25 = vector.load %arg9[%c0_42, %c0_43, %c48] : memref<16x16x144xbf16, #tpu.memory_space<vmem>>, vector<16x16x16xbf16>
    tpu.vector_store %arg9[%c0_42, %c0_43, %c48], %24 {strides = array<i32>} : memref<16x16x144xbf16, #tpu.memory_space<vmem>>, vector<16x16x16xbf16>,
    %c1_44 = arith.constant 1 : index
    %c16_45 = arith.constant 16 : index
    %c0_46 = arith.constant 0 : index
    %26 = vector.load %arg8[%c1_44, %c16_45, %c0_46] : memref<18x33x16xbf16, #tpu.memory_space<vmem>>, vector<16x16x16xbf16>
    %c0_47 = arith.constant 0 : index
    %c0_48 = arith.constant 0 : index
    %c64 = arith.constant 64 : index
    %27 = vector.load %arg9[%c0_47, %c0_48, %c64] : memref<16x16x144xbf16, #tpu.memory_space<vmem>>, vector<16x16x16xbf16>
    tpu.vector_store %arg9[%c0_47, %c0_48, %c64], %26 {strides = array<i32>} : memref<16x16x144xbf16, #tpu.memory_space<vmem>>, vector<16x16x16xbf16>,
    %c1_49 = arith.constant 1 : index
    %c17_50 = arith.constant 17 : index
    %c0_51 = arith.constant 0 : index
    %28 = vector.load %arg8[%c1_49, %c17_50, %c0_51] : memref<18x33x16xbf16, #tpu.memory_space<vmem>>, vector<16x16x16xbf16>
    %c0_52 = arith.constant 0 : index
    %c0_53 = arith.constant 0 : index
    %c80 = arith.constant 80 : index
    %29 = vector.load %arg9[%c0_52, %c0_53, %c80] : memref<16x16x144xbf16, #tpu.memory_space<vmem>>, vector<16x16x16xbf16>
    tpu.vector_store %arg9[%c0_52, %c0_53, %c80], %28 {strides = array<i32>} : memref<16x16x144xbf16, #tpu.memory_space<vmem>>, vector<16x16x16xbf16>,
    %c2 = arith.constant 2 : index
    %c15_54 = arith.constant 15 : index
    %c0_55 = arith.constant 0 : index
    %30 = vector.load %arg8[%c2, %c15_54, %c0_55] : memref<18x33x16xbf16, #tpu.memory_space<vmem>>, vector<16x16x16xbf16>
    %c0_56 = arith.constant 0 : index
    %c0_57 = arith.constant 0 : index
    %c96 = arith.constant 96 : index
    %31 = vector.load %arg9[%c0_56, %c0_57, %c96] : memref<16x16x144xbf16, #tpu.memory_space<vmem>>, vector<16x16x16xbf16>
    tpu.vector_store %arg9[%c0_56, %c0_57, %c96], %30 {strides = array<i32>} : memref<16x16x144xbf16, #tpu.memory_space<vmem>>, vector<16x16x16xbf16>,
    %c2_58 = arith.constant 2 : index
    %c16_59 = arith.constant 16 : index
    %c0_60 = arith.constant 0 : index
    %32 = vector.load %arg8[%c2_58, %c16_59, %c0_60] : memref<18x33x16xbf16, #tpu.memory_space<vmem>>, vector<16x16x16xbf16>
    %c0_61 = arith.constant 0 : index
    %c0_62 = arith.constant 0 : index
    %c112 = arith.constant 112 : index
    %33 = vector.load %arg9[%c0_61, %c0_62, %c112] : memref<16x16x144xbf16, #tpu.memory_space<vmem>>, vector<16x16x16xbf16>
    tpu.vector_store %arg9[%c0_61, %c0_62, %c112], %32 {strides = array<i32>} : memref<16x16x144xbf16, #tpu.memory_space<vmem>>, vector<16x16x16xbf16>,
    %c2_63 = arith.constant 2 : index
    %c17_64 = arith.constant 17 : index
    %c0_65 = arith.constant 0 : index
    %34 = vector.load %arg8[%c2_63, %c17_64, %c0_65] : memref<18x33x16xbf16, #tpu.memory_space<vmem>>, vector<16x16x16xbf16>
    %c0_66 = arith.constant 0 : index
    %c0_67 = arith.constant 0 : index
    %c128 = arith.constant 128 : index
    %35 = vector.load %arg9[%c0_66, %c0_67, %c128] : memref<16x16x144xbf16, #tpu.memory_space<vmem>>, vector<16x16x16xbf16>
    tpu.vector_store %arg9[%c0_66, %c0_67, %c128], %34 {strides = array<i32>} : memref<16x16x144xbf16, #tpu.memory_space<vmem>>, vector<16x16x16xbf16>,
    %c0_68 = arith.constant 0 : index
    %c0_69 = arith.constant 0 : index
    %c0_70 = arith.constant 0 : index
    %36 = vector.load %arg9[%c0_68, %c0_69, %c0_70] : memref<16x16x144xbf16, #tpu.memory_space<vmem>>, vector<16x16x144xbf16>
    %37 = vector.shape_cast %36 : vector<16x16x144xbf16> to vector<256x144xbf16>
    %c0_71 = arith.constant 0 : index
    %c0_72 = arith.constant 0 : index
    %38 = vector.load %arg4[%c0_71, %c0_72] : memref<144x16xbf16, #tpu.memory_space<vmem>>, vector<144x16xbf16>
    %cst_73 = arith.constant dense<0.000000e+00> : vector<256x16xf32>
    %39 = tpu.matmul %37, %38, %cst_73 {dimension_numbers = #tpu.dot_dimension_numbers<[1], [0], [0], [1], [0, 0, 1, 1], [], []>} : vector<256x144xbf16>, vector<144x16xbf16>, vector<256x16xf32> -> vector<256x16xf32>
    %40 = vector.shape_cast %39 : vector<256x16xf32> to vector<16x16x16xf32>
    %41 = arith.truncf %40 : vector<16x16x16xf32> to vector<16x16x16xbf16>
    %c0_74 = arith.constant 0 : index
    %c0_75 = arith.constant 0 : index
    %c0_76 = arith.constant 0 : index
    %c0_77 = arith.constant 0 : index
    %42 = vector.load %arg5[%c0_74, %c0_75, %c0_76, %c0_77] : memref<1x16x16x16xbf16, #tpu.memory_space<vmem>>, vector<1x16x16x16xbf16>
    %43 = vector.shape_cast %42 : vector<1x16x16x16xbf16> to vector<16x16x16xbf16>
    %44 = vector.shape_cast %41 : vector<16x16x16xbf16> to vector<1x16x16x16xbf16>
    tpu.vector_store %arg5[%c0_74, %c0_75, %c0_76, %c0_77], %44 {strides = array<i32>} : memref<1x16x16x16xbf16, #tpu.memory_space<vmem>>, vector<1x16x16x16xbf16>,
    %cst_78 = arith.constant dense<0.000000e+00> : vector<16xf32>
    %45 = vector.multi_reduction <add>, %39, %cst_78 [0] : vector<256x16xf32> to vector<16xf32>
    %46 = vector.shape_cast %45 : vector<16xf32> to vector<1x16xf32>
    %c0_79 = arith.constant 0 : index
    %c0_80 = arith.constant 0 : index
    %c0_81 = arith.constant 0 : index
    %47 = vector.load %arg6[%c0_79, %c0_80, %c0_81] : memref<1x1x16xf32, #tpu.memory_space<vmem>>, vector<1x1x16xf32>
    %48 = vector.shape_cast %47 : vector<1x1x16xf32> to vector<1x16xf32>
    %49 = vector.shape_cast %46 : vector<1x16xf32> to vector<1x1x16xf32>
    tpu.vector_store %arg6[%c0_79, %c0_80, %c0_81], %49 {strides = array<i32>} : memref<1x1x16xf32, #tpu.memory_space<vmem>>, vector<1x1x16xf32>,
    %50 = arith.mulf %39, %39 : vector<256x16xf32>
    %cst_82 = arith.constant dense<0.000000e+00> : vector<16xf32>
    %51 = vector.multi_reduction <add>, %50, %cst_82 [0] : vector<256x16xf32> to vector<16xf32>
    %52 = vector.shape_cast %51 : vector<16xf32> to vector<1x16xf32>
    %c0_83 = arith.constant 0 : index
    %c0_84 = arith.constant 0 : index
    %c0_85 = arith.constant 0 : index
    %53 = vector.load %arg7[%c0_83, %c0_84, %c0_85] : memref<1x1x16xf32, #tpu.memory_space<vmem>>, vector<1x1x16xf32>
    %54 = vector.shape_cast %53 : vector<1x1x16xf32> to vector<1x16xf32>
    %55 = vector.shape_cast %52 : vector<1x16xf32> to vector<1x1x16xf32>
    tpu.vector_store %arg7[%c0_83, %c0_84, %c0_85], %55 {strides = array<i32>} : memref<1x1x16xf32, #tpu.memory_space<vmem>>, vector<1x1x16xf32>,
    return
  }
  func.func @transform_0(%arg0: i32) -> (i32, i32, i32, i32) {
    %c0_i32 = arith.constant 0 : i32
    %c0_i32_0 = arith.constant 0 : i32
    %c0_i32_1 = arith.constant 0 : i32
    %c0_i32_2 = arith.constant 0 : i32
    return %arg0, %c0_i32, %c0_i32_0, %c0_i32_1 : i32, i32, i32, i32
  }
  func.func @transform_1(%arg0: i32) -> (i32, i32, i32) {
    %c0_i32 = arith.constant 0 : i32
    %c0_i32_0 = arith.constant 0 : i32
    %c0_i32_1 = arith.constant 0 : i32
    %c0_i32_2 = arith.constant 0 : i32
    return %c0_i32, %c0_i32_0, %c0_i32_1 : i32, i32, i32
  }
  func.func @transform_2(%arg0: i32) -> (i32, i32, i32) {
    %c0_i32 = arith.constant 0 : i32
    %c0_i32_0 = arith.constant 0 : i32
    %c0_i32_1 = arith.constant 0 : i32
    %c0_i32_2 = arith.constant 0 : i32
    return %c0_i32, %c0_i32_0, %c0_i32_1 : i32, i32, i32
  }
  func.func @transform_3(%arg0: i32) -> (i32, i32) {
    %c0_i32 = arith.constant 0 : i32
    %c0_i32_0 = arith.constant 0 : i32
    %c0_i32_1 = arith.constant 0 : i32
    return %c0_i32, %c0_i32_0 : i32, i32
  }
  func.func @transform_4(%arg0: i32) -> (i32, i32, i32, i32) {
    %c0_i32 = arith.constant 0 : i32
    %c0_i32_0 = arith.constant 0 : i32
    %c0_i32_1 = arith.constant 0 : i32
    %c0_i32_2 = arith.constant 0 : i32
    return %arg0, %c0_i32, %c0_i32_0, %c0_i32_1 : i32, i32, i32, i32
  }
  func.func @transform_5(%arg0: i32) -> (i32, i32, i32) {
    %c0_i32 = arith.constant 0 : i32
    %c0_i32_0 = arith.constant 0 : i32
    %c0_i32_1 = arith.constant 0 : i32
    return %arg0, %c0_i32, %c0_i32_0 : i32, i32, i32
  }
  func.func @transform_6(%arg0: i32) -> (i32, i32, i32) {
    %c0_i32 = arith.constant 0 : i32
    %c0_i32_0 = arith.constant 0 : i32
    %c0_i32_1 = arith.constant 0 : i32
    return %arg0, %c0_i32, %c0_i32_0 : i32, i32, i32
  }
}

</mosaic_0001>

<bundles_post_ra>
// kernel: tpu_custom_call.1
= control target key start
LH: loop header
LB: loop body
LE: loop exit
PB: predicated region body
PF: predicated region fallthrough
CT: control target
= control target key end

     0   :  { %12 = vsyncpa [#allocation5], 0  ;;  %s8626_s0 = inlined_call_operand.hbm [shape: f32[2,16,16,16], index: 0, kind: input, shape index: {}]   ;;  %s8627_s1 = inlined_call_operand.vmem [shape: f32[1,1,16], index: 1, kind: input, shape index: {}]   ;;  %s8628_s2 = inlined_call_operand.vmem [shape: f32[1,1,16], index: 2, kind: input, shape index: {}]   ;;  %s8629_s3 = inlined_call_operand.vmem [shape: bf16[144,16], index: 3, kind: input, shape index: {}]   ;;  %s8630_s4 = inlined_call_operand.hbm [shape: bf16[2,16,16,16], index: 4, kind: output, shape index: {0}]   ;;  %s8631_s5 = inlined_call_operand.hbm [shape: f32[2,1,16], index: 5, kind: output, shape index: {1}]   ;;  %s8632_s6 = inlined_call_operand.hbm [shape: f32[2,1,16], index: 6, kind: output, shape index: {2}]  }
   0x1   :  { %14 = vsyncpa [#allocation5 + $0x1], 0 }
   0x2   :  { %15 = vsyncpa [#allocation6], 0 }
   0x3   :  { %17 = vsyncpa [#allocation6 + $0x1], 0 }
   0x4   :  { %18 = vsyncpa [#allocation9], 0 }
   0x5   :  { %20 = vsyncpa [#allocation9 + $0x1], 0  ;;  %s5983_s21 = smov 0   ;;  %s5985_s22 = smov 0  }
   0x6   :  { %s5987_s23 = smov 0   ;;  %s5989_s24 = smov 0  }
   0x7 LB: > { %s6004_s25 = sadd.s32 4294967295, %s5931_s24   ;;  %s8635_s26 = sadd.s32 4294967294, %s5931_s24   ;;  %s5931_s24 = sphi %s5989_s24, %s8657_s24   ;;  %s5927_s23 = sphi %s5987_s23, %s8656_s23   ;;  %s5923_s22 = sphi %s5985_s22, %s8655_s22   ;;  %s5919_s21 = sphi %s5983_s21, %s8654_s21  }
   0x8   : > { %s6008_s27 = sadd.s32 1, %s5931_s24   ;;  %s33_s28 = sadd.s32 1, %s5927_s23 }
   0x9   : > { %s30_s29 = ssub.s32 %s5931_s24, %s6008_s27  ;;  %p40_p0 = scmp.ne.s32.totalorder %s5927_s23, %s5923_s22 }
   0xa   : > { %p31_p1 = scmp.eq.s32.totalorder %s30_s29, 0  ;;  %p41_p2 = scmp.eq.s32.totalorder %s5931_s24, 0 }
   0xb   : > { %p46_p3 = scmp.ne.s32.totalorder %s5923_s22, %s5919_s21  ;;  %p47_p4 = scmp.eq.s32.totalorder %s6004_s25, 0 }
   0xc   : > { %s6020_s30 = scalar_select %p31_p1, %s5927_s23, %s33_s28  }
   0xd   : > { %p6022_p5 = por %p41_p2, %p40_p0  ;;  %p6026_p6 = por %p47_p4, %p46_p3 }
   0xe   : > { %p133_p7 = scmp.eq.s32.totalorder %s6004_s25, 1  ;;  %p139_p8 = scmp.eq.s32.totalorder %s8635_s26, 1 }
   0xf   : > { %s8637_s8 = scalar_select %p6026_p6, 1, 0 }
  0x10   : > { %p5693_p10 = scmp.lt.s32.totalorder %s5931_s24, 2  ;;  %p6035_p11 = por %p133_p7, %p40_p0 }
  0x11   : > { %p6039_p12 = por %p139_p8, %p46_p3  ;;  %s220_s11 = sand.u32 1, %s5927_s23  }
  0x12   : > { %s8638_s9 = scalar_select %p6035_p11, 1, 0 }
  0x13   : > { %s8639_s10 = scalar_select %p6039_p12, 1, 0 }
  0x14   : > { %s5587_s12 = sshll.u32 %s5931_s24, 12  ;;  %s5403_s13 = sshll.u32 %s220_s11, 8 }
  0x15   : > { %s6048_s16 = scalar_lea.hbm %s8626_s0, %s5587_s12  ;;  %s224_s17 = scalar_lea.vmem [#allocation4], %s5403_s13 }
  0x16   : > { %s231_s18 = sshll.u32 %s224_s17, 4  ;;  %p6052_p13 = pnand %p5693_p10, %p6022_p5  ;;  %s6056_s18 = int_to_ptr.vmem [resolvable:$true] %s231_s18 }
  0x17   : > { %s6058_s20 = scalar_lea.sflag [#allocation5], %s220_s11  ;;  %s5783_s28 = scalar_lea.hbm %s6048_s16, 4096 }
  0x18   : > { %p5784_p0 = scmp.ne.s32.totalorder %s6048_s16, %s5783_s28  ;;  %p5785_p1 = pneg %p6052_p13 }
  0x19   : > { %s5788_s13 = scalar_lea.hbm %s8626_s0, 8192  ;;  %p5789_p4 = scmp.lt.s32.totalorder %s6048_s16, %s8626_s0 }
  0x1a   : > { %p5786_p2 = pnand %p5785_p1, %p5784_p0  ;;  %p5790_p5 = scmp.lt.s32.totalorder %s5788_s13, %s5783_s28 }
  0x1c   : > { %p5787_p3 = pneg %p5786_p2  ;;  %p5791_p7 = por %p5790_p5, %p5789_p4 }
  0x1e   : > { %p5792_p8 = pnand %p5791_p7, %p5787_p3 }
  0x20   : > { %5795 = shalt.err (!%p5792_p8)
}
  0x21   : > { %s5796_s11 = scalar_lea.vmem %s6056_s18, 4096  ;;  %s5933_s15 = smov [#allocation4]  }
  0x22   : > { %p5797_p10 = scmp.ne.s32.totalorder %s6056_s18, %s5796_s11  ;;  %s5801_s17 = sshll.u32 %s5933_s15, 4  ;;  %s5802_s17 = int_to_ptr.vmem [resolvable:$false] %s5801_s17 }
  0x23   : > { %s5803_s29 = scalar_lea.vmem %s5802_s17, 8192  ;;  %p5804_p2 = scmp.lt.s32.totalorder %s6056_s18, %s5802_s17 }
  0x24   : > { %p5799_p9 = pnand %p5797_p10, %p5785_p1  ;;  %p5805_p12 = scmp.lt.s32.totalorder %s5803_s29, %s5796_s11 }
  0x26   : > { %p5800_p0 = pneg %p5799_p9  ;;  %p5806_p11 = por %p5805_p12, %p5804_p2 }
  0x28   : > { %p5807_p6 = pnand %p5806_p11, %p5800_p0 }
  0x2a   : > { %5810 = shalt.err (!%p5807_p6)
}
  0x2b   : > { %s5934_s28 = smov 128   ;;  %s5935_s12 = smov 8  }
  0x2c   : > { %5682 = dma.hbm_to_vmem [thread:$0]  (!%p6052_p13), %s6048_s16, 4096, %s6056_s18, %s6058_s20, %s5934_s28, %s5934_s28, %s5935_s12  }
  0x2d   : > { %p5406_p9 = scmp.ge.s32.totalorder %s5931_s24, 1  ;;  %p239_p1 = scmp.lt.s32.totalorder %s5931_s24, 3 }
  0x2f   : > { %p240_p3 = pnand %p5406_p9, %p239_p1 }
  0x30   : > { %s6082_s13 = sand.u32 (!%p240_p3), 1, %s5923_s22   ;;  %p8641_p6 = scmp.ne.s32.totalorder (!%p240_p3), %s8637_s8, 0 }
  0x31   : > { %243 = sbr.rel (%p240_p3) target bundleno = 907 (0x38b), region = 36  ;;  %s5407_s7 = sshll.u32 (!%p240_p3), %s6082_s13, 8 }
  0x32   : > { %s246_s14 = scalar_lea.sflag (!%p240_p3), [#allocation5], %s6082_s13  ;;  %s6086_s11 = scalar_lea.vmem (!%p240_p3), [#allocation4], %s5407_s7 }
  0x36   : > { %5906 = dma.done.wait (%p8641_p6), %s246_s14, 4096  }
  0x37   : > { %5908 = vsyncadd (%p8641_p6), %s246_s14, 4294963200  ;;  %vm451_vm0 = vcmask 125952   ;;  %v5936_v0 = vmov 0   ;;  %v287_v1 = vld [vmem:[%s6086_s11] sm:$0xff]  ;;  %v6106_v2 = vld [vmem:[%s8627_s1] ss:$0 sm:$0xff] }
  0x38   : > { %452 = vst.msk [vmem:[#allocation2 + $0x8] sm:$0xf] %vm451_vm0, %v5936_v0  ;;  %453 = vst.msk [vmem:[#allocation2 + $0xc] sm:$0xf] %vm451_vm0, %v5936_v0  ;;  %4732 = vmatprep.subr.bf16.mxu0 %v5936_v0  ;;  %5653 = vmatprep.subr.bf16.mxu1 %v5936_v0  ;;  %v6111_v3 = vld [vmem:[%s8628_s2] ss:$0 sm:$0xff]  ;;  %v326_v5 = vmul.f32 %v6106_v2, %v287_v1 }
  0x39   : > { %464 = vst.msk [vmem:[#allocation2 + $0x15c] sm:$0xf] %vm451_vm0, %v5936_v0  ;;  %465 = vst.msk [vmem:[#allocation2 + $0x160] sm:$0xf] %vm451_vm0, %v5936_v0  ;;  %v288_v7 = vld [vmem:[%s6086_s11 + $0x8] sm:$0xff]  ;;  %s5937_s20 = smov 16  }
  0x3a   : > { %v327_v8 = vmul.f32 %v6106_v2, %v288_v7  ;;  %v289_v9 = vld [vmem:[%s6086_s11 + $0x10] sm:$0xff]  ;;  %v290_v10 = vld [vmem:[%s6086_s11 + $0x18] sm:$0xff]  ;;  %v291_v11 = vld [vmem:[%s6086_s11 + $0x20] sm:$0xff]  ;;  %v365_v12 = vadd.f32 %v6111_v3, %v326_v5  ;;  %vm454_vm1 = vcmask 122880   ;;  %vm455_vm2 = vsmask.f32 256 }
  0x3b   : > { %v328_v13 = vmul.f32 %v6106_v2, %v289_v9  ;;  %v329_v14 = vmul.f32 %v6106_v2, %v290_v10  ;;  %v330_v15 = vmul.f32 %v6106_v2, %v291_v11  ;;  %v292_v16 = vld [vmem:[%s6086_s11 + $0x28] sm:$0xff]  ;;  %v293_v17 = vld [vmem:[%s6086_s11 + $0x30] sm:$0xff]  ;;  %v294_v18 = vld [vmem:[%s6086_s11 + $0x38] sm:$0xff]  ;;  %vm445_vm3 = vcmask 125955   ;;  %s5938_s14 = smov 32   ;;  %s5940_s29 = smov 64  }
  0x3c   : > { %v366_v19 = vadd.f32 %v6111_v3, %v327_v8  ;;  %v331_v20 = vmul.f32 %v6106_v2, %v292_v16  ;;  %v332_v21 = vmul.f32 %v6106_v2, %v293_v17  ;;  %v333_v22 = vmul.f32 %v6106_v2, %v294_v18  ;;  %v295_v31 = vld [vmem:[%s6086_s11 + $0x40] sm:$0xff]  ;;  %v296_v36 = vld [vmem:[%s6086_s11 + $0x48] sm:$0xff]  ;;  %v297_v41 = vld [vmem:[%s6086_s11 + $0x50] sm:$0xff]  ;;  %s5941_s7 = smov 80   ;;  %s5942_s18 = smov 96  }
  0x3d   : > { %v397_v23 = vmax.f32 %v365_v12, 0.0  ;;  %v367_v24 = vadd.f32 %v6111_v3, %v328_v13  ;;  %v368_v25 = vadd.f32 %v6111_v3, %v329_v14  ;;  %v369_v26 = vadd.f32 %v6111_v3, %v330_v15  ;;  %v298_v42 = vld [vmem:[%s6086_s11 + $0x58] sm:$0xff]  ;;  %v299_v43 = vld [vmem:[%s6086_s11 + $0x60] sm:$0xff]  ;;  %v300_v48 = vld [vmem:[%s6086_s11 + $0x68] sm:$0xff]  ;;  %s5943_s17 = smov 112   ;;  %s5408_s16 = sshll.u32 %s6082_s13, 7 }
  0x3e   : > { %v398_v27 = vmax.f32 %v366_v19, 0.0  ;;  %v370_v28 = vadd.f32 %v6111_v3, %v331_v20  ;;  %v371_v29 = vadd.f32 %v6111_v3, %v332_v21  ;;  %v372_v30 = vadd.f32 %v6111_v3, %v333_v22  ;;  %v301_v49 = vld [vmem:[%s6086_s11 + $0x70] sm:$0xff]  ;;  %v302_v50 = vld [vmem:[%s6086_s11 + $0x78] sm:$0xff]  ;;  %v303_v10 = vld [vmem:[%s6086_s11 + $0x80] sm:$0xff]  ;;  %s8174_s19 = scalar_lea.vmem [#allocation7], %s5408_s16  ;;  %p8650_p12 = scmp.ne.s32.totalorder %s8638_s9, 0 }
  0x3f   : > { %v1176_v4 = vld [vmem:[#allocation2 + $0x8] sm:$0xf]  ;;  %v1177_v6 = vld [vmem:[#allocation2 + $0xc] sm:$0xf]  ;;  %v5588_v32 = vpack.c.bf16 %v397_v23, %v397_v23  ;;  %v399_v33 = vmax.f32 %v367_v24, 0.0  ;;  %v400_v34 = vmax.f32 %v368_v25, 0.0  ;;  %v334_v47 = vmul.f32 %v6106_v2, %v295_v31  ;;  %vm6240_vm5 = vmand %vm454_vm1, %vm455_vm2 }
  0x40   : > { %1240 = vrot.lane.b32.xlu0 %v1176_v4, %s5937_s20  ;;  %v401_v35 = vmax.f32 %v369_v26, 0.0  ;;  %v5589_v37 = vpack.c.bf16 %v398_v27, %v398_v27  ;;  %v402_v38 = vmax.f32 %v370_v28, 0.0  ;;  %v403_v39 = vmax.f32 %v371_v29, 0.0  ;;  %v304_v15 = vld [vmem:[%s6086_s11 + $0x88] sm:$0xff]  ;;  %v305_v16 = vld [vmem:[%s6086_s11 + $0x90] sm:$0xff]  ;;  %v306_v17 = vld [vmem:[%s6086_s11 + $0x98] sm:$0xff] }
  0x41   : > { %v404_v40 = vmax.f32 %v372_v30, 0.0  ;;  %678 = vst.msk [vmem:[#allocation2 + $0x1c] sm:$0xf] %vm451_vm0, %v5588_v32  ;;  %v5590_v44 = vpack.c.bf16 %v399_v33, %v399_v33  ;;  %v5591_v45 = vpack.c.bf16 %v400_v34, %v400_v34  ;;  %v335_v54 = vmul.f32 %v6106_v2, %v296_v36  ;;  %v307_v23 = vld [vmem:[%s6086_s11 + $0xa0] sm:$0xff]  ;;  %v308_v28 = vld [vmem:[%s6086_s11 + $0xa8] sm:$0xff]  ;;  %v309_v29 = vld [vmem:[%s6086_s11 + $0xb0] sm:$0xff] }
  0x42   : > { %v5592_v46 = vpack.c.bf16 %v401_v35, %v401_v35  ;;  %679 = vst.msk [vmem:[#allocation2 + $0x20] sm:$0xf] %vm451_vm0, %v5589_v37  ;;  %v5593_v51 = vpack.c.bf16 %v402_v38, %v402_v38  ;;  %v5594_v52 = vpack.c.bf16 %v403_v39, %v403_v39  ;;  %v373_v55 = vadd.f32 %v6111_v3, %v334_v47  ;;  %v310_v30 = vld [vmem:[%s6086_s11 + $0xb8] sm:$0xff]  ;;  %s5944_s28 = smov [#allocation7]  }
  0x43   : > { %v5595_v53 = vpack.c.bf16 %v404_v40, %v404_v40  ;;  %680 = vst.msk [vmem:[#allocation2 + $0x30] sm:$0xf] %vm451_vm0, %v5590_v44  ;;  %681 = vst.msk [vmem:[#allocation2 + $0x34] sm:$0xf] %vm451_vm0, %v5591_v45  ;;  %v336_v56 = vmul.f32 %v6106_v2, %v297_v41  ;;  %v337_v57 = vmul.f32 %v6106_v2, %v298_v42  ;;  %vm446_vm4 = vsmask.f32 7950 }
  0x44   : > { %1242 = vrot.lane.b32.xlu0 %v1177_v6, %s5937_s20  ;;  %682 = vst.msk [vmem:[#allocation2 + $0x44] sm:$0xf] %vm451_vm0, %v5592_v46  ;;  %v338_v58 = vmul.f32 %v6106_v2, %v299_v43  ;;  %683 = vst.msk [vmem:[#allocation2 + $0x48] sm:$0xf] %vm451_vm0, %v5593_v51  ;;  %v374_v59 = vadd.f32 %v6111_v3, %v335_v54  ;;  %v339_v60 = vmul.f32 %v6106_v2, %v300_v48  ;;  %vm1417_vm7 = vsmask.f32 3328 }
  0x45   : > { %684 = vst.msk [vmem:[#allocation2 + $0x58] sm:$0xf] %vm451_vm0, %v5594_v52  ;;  %685 = vst.msk [vmem:[#allocation2 + $0x5c] sm:$0xf] %vm451_vm0, %v5595_v53  ;;  %v340_v61 = vmul.f32 %v6106_v2, %v301_v49  ;;  %v341_v62 = vmul.f32 %v6106_v2, %v302_v50  ;;  %v405_v63 = vmax.f32 %v373_v55, 0.0  ;;  %v375_v1 = vadd.f32 %v6111_v3, %v336_v56  ;;  %v311_v55 = vld [vmem:[%s6086_s11 + $0xc0] sm:$0xff] }
  0x46   : > { %v376_v4 = vadd.f32 %v6111_v3, %v337_v57  ;;  %v377_v5 = vadd.f32 %v6111_v3, %v338_v58  ;;  %v406_v6 = vmax.f32 %v374_v59, 0.0  ;;  %v378_v7 = vadd.f32 %v6111_v3, %v339_v60  ;;  %v312_v60 = vld [vmem:[%s6086_s11 + $0xc8] sm:$0xff]  ;;  %vm6251_vm6 = vmand %vm445_vm3, %vm446_vm4  ;;  %s5815_s12 = sshll.u32 %s5944_s28, 4  ;;  %s5816_s12 = int_to_ptr.vmem [resolvable:$false] %s5815_s12 }
  0x47   : > { %v379_v8 = vadd.f32 %v6111_v3, %v340_v61  ;;  %v380_v9 = vadd.f32 %v6111_v3, %v341_v62  ;;  %v5596_v11 = vpack.c.bf16 %v405_v63, %v405_v63  ;;  %v407_v12 = vmax.f32 %v375_v1, 0.0  ;;  %v313_v61 = vld [vmem:[%s6086_s11 + $0xd0] sm:$0xff]  ;;  %v314_v62 = vld [vmem:[%s6086_s11 + $0xd8] sm:$0xff]  ;;  %s5817_s8 = scalar_lea.vmem %s5816_s12, 4096 }
  0x48   : > { %v408_v13 = vmax.f32 %v376_v4, 0.0  ;;  %v409_v14 = vmax.f32 %v377_v5, 0.0  ;;  %v1178_v18 = vld [vmem:[#allocation2 + $0x1c] sm:$0xf]  ;;  %v5597_v19 = vpack.c.bf16 %v406_v6, %v406_v6  ;;  %v410_v20 = vmax.f32 %v378_v7, 0.0  ;;  %v315_v7 = vld [vmem:[%s6086_s11 + $0xe0] sm:$0xff] }
  0x49   : > { %v411_v21 = vmax.f32 %v379_v8, 0.0  ;;  %v412_v22 = vmax.f32 %v380_v9, 0.0  ;;  %1244 = vrot.lane.b32.xlu1 %v1178_v18, %s5937_s20  ;;  %686 = vst.msk [vmem:[#allocation2 + $0x6c] sm:$0xf] %vm451_vm0, %v5596_v11  ;;  %v5598_v24 = vpack.c.bf16 %v407_v12, %v407_v12  ;;  %v342_v27 = vmul.f32 %v6106_v2, %v303_v10  ;;  %v1179_v31 = vld [vmem:[#allocation2 + $0x20] sm:$0xf] }
  0x4a   : > { %v5599_v25 = vpack.c.bf16 %v408_v13, %v408_v13  ;;  %v5600_v26 = vpack.c.bf16 %v409_v14, %v409_v14  ;;  %v1180_v32 = vld [vmem:[#allocation2 + $0x30] sm:$0xf]  ;;  %687 = vst.msk [vmem:[#allocation2 + $0x70] sm:$0xf] %vm451_vm0, %v5597_v19  ;;  %v5601_v33 = vpack.c.bf16 %v410_v20, %v410_v20  ;;  %v343_v36 = vmul.f32 %v6106_v2, %v304_v15  ;;  %v1181_v50 = vld [vmem:[#allocation2 + $0x34] sm:$0xf] }
  0x4b   : > { %v5602_v34 = vpack.c.bf16 %v411_v21, %v411_v21  ;;  %v5603_v35 = vpack.c.bf16 %v412_v22, %v412_v22  ;;  %1248 = vrot.lane.b32.xlu0 %v1180_v32, %s5937_s20  ;;  %688 = vst.msk [vmem:[#allocation2 + $0x80] sm:$0xf] %vm451_vm0, %v5598_v24  ;;  %v381_v37 = vadd.f32 %v6111_v3, %v342_v27  ;;  %v1182_v41 = vld [vmem:[#allocation2 + $0x44] sm:$0xf]  ;;  %v316_v12 = vld [vmem:[%s6086_s11 + $0xe8] sm:$0xff]  ;;  %vm1336_vm12 = vcmask 257152  }
  0x4c   : > { %689 = vst.msk [vmem:[#allocation2 + $0x84] sm:$0xf] %vm451_vm0, %v5599_v25  ;;  %690 = vst.msk [vmem:[#allocation2 + $0x94] sm:$0xf] %vm451_vm0, %v5600_v26  ;;  %v344_v38 = vmul.f32 %v6106_v2, %v305_v16  ;;  %v345_v39 = vmul.f32 %v6106_v2, %v306_v17  ;;  %v346_v40 = vmul.f32 %v6106_v2, %v307_v23  ;;  %v1184_v63 = vld [vmem:[#allocation2 + $0x58] sm:$0xf] }
  0x4d   : > { %691 = vst.msk [vmem:[#allocation2 + $0x98] sm:$0xf] %vm451_vm0, %v5601_v33  ;;  %692 = vst.msk [vmem:[#allocation2 + $0xa8] sm:$0xf] %vm451_vm0, %v5602_v34  ;;  %v382_v42 = vadd.f32 %v6111_v3, %v343_v36  ;;  %v347_v43 = vmul.f32 %v6106_v2, %v308_v28  ;;  %v348_v44 = vmul.f32 %v6106_v2, %v309_v29  ;;  %1246 = vrot.lane.b32.xlu1 %v1179_v31, %s5937_s20  ;;  %v1183_v13 = vld [vmem:[#allocation2 + $0x48] sm:$0xf] }
  0x4e   : > { %693 = vst.msk [vmem:[#allocation2 + $0xac] sm:$0xf] %vm451_vm0, %v5603_v35  ;;  %v349_v45 = vmul.f32 %v6106_v2, %v310_v30  ;;  %v413_v46 = vmax.f32 %v381_v37, 0.0  ;;  %v383_v47 = vadd.f32 %v6111_v3, %v344_v38  ;;  %v384_v48 = vadd.f32 %v6111_v3, %v345_v39  ;;  %v1185_v29 = vld [vmem:[#allocation2 + $0x5c] sm:$0xf] }
  0x4f   : > { %v385_v49 = vadd.f32 %v6111_v3, %v346_v40  ;;  %v414_v51 = vmax.f32 %v382_v42, 0.0  ;;  %v386_v52 = vadd.f32 %v6111_v3, %v347_v43  ;;  %v387_v53 = vadd.f32 %v6111_v3, %v348_v44  ;;  %1252 = vrot.lane.b32.xlu0 %v1182_v41, %s5937_s20  ;;  %v457_v41 = vld [vmem:[#allocation2 + $0x10] sm:$0x1]  ;;  %v518_v44 = vld [vmem:[#allocation2 + $0x24] sm:$0x1] }
  0x50   : > { %v388_v54 = vadd.f32 %v6111_v3, %v349_v45  ;;  %v5604_v56 = vpack.c.bf16 %v413_v46, %v413_v46  ;;  %v415_v57 = vmax.f32 %v383_v47, 0.0  ;;  %v416_v58 = vmax.f32 %v384_v48, 0.0  ;;  %v1186_v22 = vld [vmem:[#allocation2 + $0x6c] sm:$0xf]  ;;  %v470_v46 = vld [vmem:[#allocation2 + $0x18] sm:$0x8] }
  0x51   : > { %v417_v59 = vmax.f32 %v385_v49, 0.0  ;;  %v5605_v1 = vpack.c.bf16 %v414_v51, %v414_v51  ;;  %v418_v4 = vmax.f32 %v386_v52, 0.0  ;;  %v419_v5 = vmax.f32 %v387_v53, 0.0  ;;  %1250 = vrot.lane.b32.xlu1 %v1181_v50, %s5937_s20  ;;  %v1187_v42 = vld [vmem:[#allocation2 + $0x70] sm:$0xf] }
  0x52   : > { %v420_v6 = vmax.f32 %v388_v54, 0.0  ;;  %694 = vst.msk [vmem:[#allocation2 + $0xbc] sm:$0xf] %vm451_vm0, %v5604_v56  ;;  %v5606_v8 = vpack.c.bf16 %v415_v57, %v415_v57  ;;  %v5607_v9 = vpack.c.bf16 %v416_v58, %v416_v58  ;;  %v350_v11 = vmul.f32 %v6106_v2, %v311_v55  ;;  %v1188_v35 = vld [vmem:[#allocation2 + $0x80] sm:$0xf] }
  0x53   : > { %v5608_v10 = vpack.c.bf16 %v417_v59, %v417_v59  ;;  %695 = vst.msk [vmem:[#allocation2 + $0xc0] sm:$0xf] %vm451_vm0, %v5605_v1  ;;  %v5609_v14 = vpack.c.bf16 %v418_v4, %v418_v4  ;;  %v5610_v15 = vpack.c.bf16 %v419_v5, %v419_v5  ;;  %v351_v17 = vmul.f32 %v6106_v2, %v312_v60  ;;  %v1190_v47 = vld [vmem:[#allocation2 + $0x94] sm:$0xf]  ;;  %v1369_v48 = vld [vmem:[#allocation2 + $0x8] sm:$0xf] }
  0x54   : > { %v5611_v16 = vpack.c.bf16 %v420_v6, %v420_v6  ;;  %1256 = vrot.lane.b32.xlu0 %v1184_v63, %s5937_s20  ;;  %696 = vst.msk [vmem:[#allocation2 + $0xd0] sm:$0xf] %vm451_vm0, %v5606_v8  ;;  %697 = vst.msk [vmem:[#allocation2 + $0xd4] sm:$0xf] %vm451_vm0, %v5607_v9  ;;  %v389_v18 = vadd.f32 %v6111_v3, %v350_v11  ;;  %v352_v19 = vmul.f32 %v6106_v2, %v313_v61  ;;  %v1189_v50 = vld [vmem:[#allocation2 + $0x84] sm:$0xf] }
  0x55   : > { %698 = vst.msk [vmem:[#allocation2 + $0xe4] sm:$0xf] %vm451_vm0, %v5608_v10  ;;  %v353_v20 = vmul.f32 %v6106_v2, %v314_v62  ;;  %v354_v21 = vmul.f32 %v6106_v2, %v315_v7  ;;  %699 = vst.msk [vmem:[#allocation2 + $0xe8] sm:$0xf] %vm451_vm0, %v5609_v14  ;;  %v390_v23 = vadd.f32 %v6111_v3, %v351_v17  ;;  %1254 = vrot.lane.b32.xlu1 %v1183_v13, %s5937_s20  ;;  %v1192_v55 = vld [vmem:[#allocation2 + $0xa8] sm:$0xf] }
  0x56   : > { %700 = vst.msk [vmem:[#allocation2 + $0xf8] sm:$0xf] %vm451_vm0, %v5610_v15  ;;  %701 = vst.msk [vmem:[#allocation2 + $0xfc] sm:$0xf] %vm451_vm0, %v5611_v16  ;;  %v355_v24 = vmul.f32 %v6106_v2, %v316_v12  ;;  %v421_v25 = vmax.f32 %v389_v18, 0.0  ;;  %v391_v26 = vadd.f32 %v6111_v3, %v352_v19  ;;  %v458_v49 = vsel %vm6240_vm5, 0, %v457_v41 }
  0x57   : > { %v392_v27 = vadd.f32 %v6111_v3, %v353_v20  ;;  %v393_v28 = vadd.f32 %v6111_v3, %v354_v21  ;;  %v422_v30 = vmax.f32 %v390_v23, 0.0  ;;  %459 = vst [vmem:[#allocation2 + $0x10] sm:$0x1] %v458_v49  ;;  %v519_v51 = vsel %vm6240_vm5, 0, %v518_v44  ;;  %v1370_v56 = vld [vmem:[#allocation2 + $0xc] sm:$0xf] }
  0x58   : > { %v394_v31 = vadd.f32 %v6111_v3, %v355_v24  ;;  %1260 = vrot.lane.b32.xlu0 %v1186_v22, %s5937_s20  ;;  %v5612_v32 = vpack.c.bf16 %v421_v25, %v421_v25  ;;  %v423_v33 = vmax.f32 %v391_v26, 0.0  ;;  %v471_v52 = vsel %vm6251_vm6, 0, %v470_v46  ;;  %520 = vst [vmem:[#allocation2 + $0x24] sm:$0x1] %v519_v51  ;;  %v1372_v57 = vld [vmem:[#allocation2 + $0x1c] sm:$0xf] }
  0x59   : > { %v424_v2 = vmax.f32 %v392_v27, 0.0  ;;  %v425_v34 = vmax.f32 %v393_v28, 0.0  ;;  %v5613_v36 = vpack.c.bf16 %v422_v30, %v422_v30  ;;  %1258 = vrot.lane.b32.xlu1 %v1185_v29, %s5937_s20  ;;  %v1421_v53 = vshrl.u32 %v1369_v48, 16  ;;  %472 = vst [vmem:[#allocation2 + $0x18] sm:$0x8] %v471_v52 }
  0x5a   : > { %v426_v37 = vmax.f32 %v394_v31, 0.0  ;;  %702 = vst.msk [vmem:[#allocation2 + $0x10c] sm:$0xf] %vm451_vm0, %v5612_v32  ;;  %v5614_v38 = vpack.c.bf16 %v423_v33, %v423_v33  ;;  %v1424_v54 = vshll.u32 %v1369_v48, 16  ;;  %v1191_v58 = vld [vmem:[#allocation2 + $0x98] sm:$0xf] }
  0x5b   : > { %v5615_v39 = vpack.c.bf16 %v424_v2, %v424_v2  ;;  %v5616_v3 = vpack.c.bf16 %v425_v34, %v425_v34  ;;  %703 = vst.msk [vmem:[#allocation2 + $0x110] sm:$0xf] %vm451_vm0, %v5613_v36  ;;  %v1373_v59 = vld [vmem:[#allocation2 + $0x20] sm:$0xf]  ;;  %v1423_v60 = vrot.slane %v1421_v53, 4  ;;  %v1430_v62 = vshll.u32 %v1370_v56, 16 }
  0x5c   : > { %v5617_v43 = vpack.c.bf16 %v426_v37, %v426_v37  ;;  %1264 = vrot.lane.b32.xlu0 %v1188_v35, %s5937_s20  ;;  %704 = vst.msk [vmem:[#allocation2 + $0x120] sm:$0xf] %vm451_vm0, %v5614_v38  ;;  %v1426_v61 = vrot.slane %v1424_v54, 5  ;;  %v1194_v63 = vld [vmem:[#allocation2 + $0xbc] sm:$0xf]  ;;  %v1434_v1 = vshrl.u32 %v1370_v56, 16 }
  0x5d   : > { %705 = vst.msk [vmem:[#allocation2 + $0x124] sm:$0xf] %vm451_vm0, %v5615_v39  ;;  %706 = vst.msk [vmem:[#allocation2 + $0x134] sm:$0xf] %vm451_vm0, %v5616_v3  ;;  %1262 = vrot.lane.b32.xlu1 %v1187_v42, %s5937_s20  ;;  %v1445_v4 = vshrl.u32 %v1372_v57, 16  ;;  %v1448_v5 = vshll.u32 %v1372_v57, 16 }
  0x5e   : > { %707 = vst.msk [vmem:[#allocation2 + $0x138] sm:$0xf] %vm451_vm0, %v5617_v43  ;;  %v1454_v6 = vshll.u32 %v1373_v59, 16  ;;  %v1458_v7 = vshrl.u32 %v1373_v59, 16  ;;  %v473_v8 = vld [vmem:[#allocation2 + $0x2c] sm:$0x8]  ;;  %v1427_v11 = vor.u32 %v1426_v61, %v1423_v60 }
  0x5f   : > { %v1193_v9 = vld [vmem:[#allocation2 + $0xac] sm:$0xf]  ;;  %v6267_v10 = vld [vmem:[#allocation2 + $0x1c] sm:$0xf]  ;;  %v6270_v12 = vrot.slane %v1430_v62, 5  ;;  %v1436_v16 = vrot.slane %v1434_v1, 4 }
  0x60   : > { %1268 = vrot.lane.b32.xlu0 %v1190_v47, %s5937_s20  ;;  %v1935_v13 = vld [vmem:[#allocation2 + $0x20] sm:$0xf]  ;;  %v2655_v14 = vld [vmem:[#allocation2 + $0x1c] sm:$0xf]  ;;  %v1196_v15 = vld [vmem:[#allocation2 + $0xd0] sm:$0xf] }
  0x61   : > { %1266 = vrot.lane.b32.xlu1 %v1189_v50, %s5937_s20  ;;  %v1447_v17 = vrot.slane %v1445_v4, 4  ;;  %v1450_v18 = vrot.slane %v1448_v5, 5  ;;  %v474_v19 = vsel %vm6251_vm6, 0, %v473_v8  ;;  %vm1418_vm8 = vsmask.f32 7440 }
  0x62   : > { %v6275_v20 = vrot.slane %v1454_v6, 5  ;;  %v1460_v21 = vrot.slane %v1458_v7, 4  ;;  %v2656_v22 = vld [vmem:[#allocation2 + $0x20] sm:$0xf]  ;;  %475 = vst [vmem:[#allocation2 + $0x2c] sm:$0x8] %v474_v19  ;;  %v1437_v31 = vor.u32 %v1436_v16, %v6270_v12  ;;  %vm6285_vm10 = vmor %vm1417_vm7, %vm1418_vm8 }
  0x63   : > { %v1195_v23 = vld [vmem:[#allocation2 + $0xc0] sm:$0xf]  ;;  %v1987_v24 = vshrl.u32 %v6267_v10, 16  ;;  %v1996_v25 = vshrl.u32 %v1935_v13, 16  ;;  %v2704_v26 = vshrl.u32 %v2655_v14, 16  ;;  %v2707_v27 = vshll.u32 %v2655_v14, 16 }
  0x64   : > { %1272 = vrot.lane.b32.xlu0 %v1192_v55, %s5937_s20  ;;  %v1198_v28 = vld [vmem:[#allocation2 + $0xe4] sm:$0xf]  ;;  %vm758_vm9 = vsmask.f32 4368  ;;  %v6279_v29 = vrot.slane %v1427_v11, 4  ;;  %v1451_v32 = vor.u32 %v1450_v18, %v1447_v17  ;;  %v1461_v35 = vor.u32 %v1460_v21, %v6275_v20 }
  0x65   : > { %1270 = vrot.lane.b32.xlu1 %v1191_v58, %s5937_s20  ;;  %v1371_v30 = vld [vmem:[#allocation2 + $0x10] sm:$0x1]  ;;  %v1374_v33 = vld [vmem:[#allocation2 + $0x24] sm:$0x1]  ;;  %v1197_v2 = vld [vmem:[#allocation2 + $0xd4] sm:$0xf] }
  0x66   : > { %v1999_v36 = vshll.u32 %v1935_v13, 16  ;;  %v2713_v37 = vshll.u32 %v2656_v22, 16  ;;  %v2717_v38 = vshrl.u32 %v2656_v22, 16  ;;  %v1933_v39 = vld [vmem:[#allocation2 + $0x18] sm:$0x8]  ;;  %v1989_v3 = vrot.slane %v1987_v24, 7  ;;  %vm6316_vm11 = vmor %vm455_vm2, %vm758_vm9 }
  0x67   : > { %v1998_v41 = vrot.slane %v1996_v25, 7  ;;  %v2706_v42 = vrot.slane %v2704_v26, 4  ;;  %v2709_v43 = vrot.slane %v2707_v27, 5  ;;  %v6290_v44 = vld [vmem:[#allocation2 + $0x30] sm:$0xf]  ;;  %v1440_v47 = vshll.u32 %v1371_v30, 16 }
  0x68   : > { %1276 = vrot.lane.b32.xlu0 %v1194_v63, %s5937_s20  ;;  %v521_v46 = vld [vmem:[#allocation2 + $0x38] sm:$0x1]  ;;  %v1464_v48 = vshll.u32 %v1374_v33, 16  ;;  %v2657_v49 = vld [vmem:[#allocation2 + $0x24] sm:$0x1]  ;;  %v1433_v54 = vsel %vm6285_vm10, %v6279_v29, %v6270_v12  ;;  %v6301_v55 = vrot.slane %v1437_v31, 4 }
  0x69   : > { %1274 = vrot.lane.b32.xlu1 %v1193_v9, %s5937_s20  ;;  %v6293_v50 = vld [vmem:[#allocation2 + $0x34] sm:$0xf]  ;;  %v6295_v51 = vld [vmem:[#allocation2 + $0x30] sm:$0xf]  ;;  %v476_v52 = vld [vmem:[#allocation2 + $0x40] sm:$0x8]  ;;  %v2001_v4 = vor.u32 %v1999_v36, %v1998_v41  ;;  %v2710_v5 = vor.u32 %v2709_v43, %v2706_v42 }
  0x6a   : > { %v1200_v53 = vld [vmem:[#allocation2 + $0xf8] sm:$0xf]  ;;  %v6303_v56 = vrot.slane %v1451_v32, 4  ;;  %v1990_v57 = vshll.u32 %v6267_v10, 16  ;;  %v6307_v58 = vrot.slane %v1461_v35, 4  ;;  %v1982_v59 = vshrl.u32 %v1933_v39, 16 }
  0x6b   : > { %v6309_v60 = vrot.slane %v2713_v37, 5  ;;  %v2719_v61 = vrot.slane %v2717_v38, 4  ;;  %v6311_v62 = vld [vmem:[#allocation2 + $0x34] sm:$0xf]  ;;  %v1199_v63 = vld [vmem:[#allocation2 + $0xe8] sm:$0xf] }
  0x6c   : > { %1280 = vrot.lane.b32.xlu0 %v1196_v15, %s5937_s20  ;;  %v1994_v1 = vrot.slane %v1989_v3, 4  ;;  %v2723_v6 = vshll.u32 %v2657_v49, 16  ;;  %v6320_v8 = vrot.slane %v1440_v47, 5  ;;  %v6322_v9 = vrot.slane %v1464_v48, 5  ;;  %v1202_v13 = vld [vmem:[#allocation2 + $0x10c] sm:$0xf] }
  0x6d   : > { %1278 = vrot.lane.b32.xlu1 %v1195_v23, %s5937_s20  ;;  %v3271_v10 = vshrl.u32 %v6290_v44, 16  ;;  %v522_v11 = vsel %vm6240_vm5, 0, %v521_v46  ;;  %v3280_v14 = vshrl.u32 %v6293_v50, 16  ;;  %v2009_v15 = vshrl.u32 %v6295_v51, 16  ;;  %v1201_v18 = vld [vmem:[#allocation2 + $0xfc] sm:$0xf] }
  0x6e   : > { %v2018_v16 = vshrl.u32 %v6311_v62, 16  ;;  %523 = vst [vmem:[#allocation2 + $0x38] sm:$0x1] %v522_v11  ;;  %v477_v17 = vsel %vm6251_vm6, 0, %v476_v52  ;;  %v1457_v19 = vsel %vm6285_vm10, %v6303_v56, %v6275_v20  ;;  %v6337_v21 = vrot.slane %v1982_v59, 11 }
  0x6f   : > { %v6339_v22 = vor.u32 %v1990_v57, %v1989_v3  ;;  %v2720_v23 = vor.u32 %v2719_v61, %v6309_v60  ;;  %v2658_v24 = vld [vmem:[#allocation2 + $0x30] sm:$0xf]  ;;  %478 = vst [vmem:[#allocation2 + $0x40] sm:$0x8] %v477_v17  ;;  %v448_v25 = vld [vmem:[#allocation2 + $0x4] sm:$0x8]  ;;  %v6344_v27 = vsel %vm6316_vm11, %v1994_v1, %v2001_v4  ;;  %v1467_v35 = vsel %vm6285_vm10, %v6307_v58, %v6322_v9 }
  0x70   : > { %1284 = vrot.lane.b32.xlu0 %v1198_v28, %s5937_s20  ;;  %v1204_v26 = vld [vmem:[#allocation2 + $0x120] sm:$0xf]  ;;  %v6346_v28 = vrot.slane %v2710_v5, 4  ;;  %v6348_v30 = vrot.slane %v2723_v6, 5  ;;  %v3274_v31 = vshll.u32 %v6290_v44, 16  ;;  %v3273_v37 = vrot.slane %v3271_v10, 7 }
  0x71   : > { %1282 = vrot.lane.b32.xlu1 %v1197_v2, %s5937_s20  ;;  %v6351_v32 = vld [vmem:[#allocation2 + $0x8] sm:$0xf]  ;;  %v6353_v33 = vld [vmem:[#allocation2 + $0x1c] sm:$0xf]  ;;  %v1443_v2 = vsel %vm6285_vm10, %v6301_v55, %v6320_v8  ;;  %v3217_v36 = vld [vmem:[#allocation2 + $0x2c] sm:$0x8]  ;;  %v1993_v46 = vsel %vm6316_vm11, %v6337_v21, %v6339_v22 }
  0x72   : > { %v3283_v38 = vshll.u32 %v6293_v50, 16  ;;  %v1936_v39 = vld [vmem:[#allocation2 + $0x2c] sm:$0x8]  ;;  %v3282_v3 = vrot.slane %v3280_v14, 7  ;;  %v2011_v41 = vrot.slane %v2009_v15, 7  ;;  %v2020_v42 = vrot.slane %v2018_v16, 7 }
  0x73   : > { %v2021_v43 = vshll.u32 %v6311_v62, 16  ;;  %v713_v44 = vld [vmem:[#allocation2 + $0x18] sm:$0x8]  ;;  %v6371_v47 = vrot.slane %v2720_v23, 4  ;;  %v2659_v48 = vld [vmem:[#allocation2 + $0x34] sm:$0xf] }
  0x74   : > { %1288 = vrot.lane.b32.xlu0 %v1200_v53, %s5937_s20  ;;  %v2728_v49 = vshrl.u32 %v2658_v24, 16  ;;  %v2731_v52 = vshll.u32 %v2658_v24, 16  ;;  %v5738_v50 = vld [vmem:[%s8629_s3 + $0x38] sm:$0xff]   ;;  %v1203_v53 = vld [vmem:[#allocation2 + $0x110] sm:$0xf]  ;;  %v3266_v57 = vshrl.u32 %v3217_v36, 16  ;;  %v3285_v10 = vor.u32 %v3283_v38, %v3282_v3 }
  0x75   : > { %1286 = vrot.lane.b32.xlu1 %v1199_v63, %s5937_s20  ;;  %v2004_v59 = vshrl.u32 %v1936_v39, 16  ;;  %v2012_v61 = vshll.u32 %v6295_v51, 16  ;;  %v449_v62 = vsel %vm6251_vm6, 0, %v448_v25  ;;  %v3278_v63 = vrot.slane %v3273_v37, 4  ;;  %4733 = vmatpush1.bf16.msra.mxu0 %v5738_v50  ;;  %v1206_v6 = vld [vmem:[#allocation2 + $0x134] sm:$0xf] }
  0x76   : > { %450 = vst [vmem:[#allocation2 + $0x4] sm:$0x8] %v449_v62  ;;  %v766_v1 = vshrl.u32 %v6351_v32, 16  ;;  %v783_v4 = vshrl.u32 %v713_v44, 16  ;;  %v788_v5 = vshrl.u32 %v6353_v33, 16  ;;  %v2016_v11 = vrot.slane %v2011_v41, 4  ;;  %4734 = vmatprep.subr.bf16.mxu0 %v5936_v0  ;;  %5662 = vmatpush1.bf16.msra.mxu1 %v5738_v50 }
  0x77   : > { %v2737_v14 = vshll.u32 %v2659_v48, 16  ;;  %v2730_v51 = vrot.slane %v2728_v49, 4  ;;  %v2733_v15 = vrot.slane %v2731_v52, 5  ;;  %v2741_v16 = vshrl.u32 %v2659_v48, 16  ;;  %v6384_v17 = vld [vmem:[#allocation2 + $0x44] sm:$0xf]  ;;  %5654 = vmatprep.subr.bf16.mxu1 %v5936_v0 }
  0x78   : > { %1292 = vrot.lane.b32.xlu0 %v1202_v13, %s5937_s20  ;;  %v2023_v13 = vor.u32 %v2021_v43, %v2020_v42  ;;  %v1205_v23 = vld [vmem:[#allocation2 + $0x124] sm:$0xf]  ;;  %v6389_v24 = vrot.slane %v3266_v57, 11  ;;  %v6391_v25 = vor.u32 %v3274_v31, %v3273_v37  ;;  %v6395_v36 = vor.u32 %v2012_v61, %v2011_v41  ;;  %v712_v38 = vld [vmem:[#allocation2 + $0xc] sm:$0xf]  ;;  %v5739_v44 = vld [vmem:[%s8629_s3 + $0x30] sm:$0xff]  }
  0x79   : > { %1290 = vrot.lane.b32.xlu1 %v1201_v18, %s5937_s20  ;;  %v6386_v18 = vrot.slane %v788_v5, 7  ;;  %v6398_v39 = vrot.slane %v766_v1, 7  ;;  %v769_v3 = vshll.u32 %v6351_v32, 16  ;;  %v5444_v42 = vrot.slane %v783_v4, 11  ;;  %v1207_v48 = vld [vmem:[#allocation2 + $0x138] sm:$0xf]  ;;  %4735 = vmatpush1.bf16.msra.mxu0 %v5739_v44 }
  0x7a   : > { %v791_v43 = vshll.u32 %v6353_v33, 16  ;;  %v2716_v31 = vsel %vm6285_vm10, %v6346_v28, %v6309_v60  ;;  %v2726_v37 = vsel %vm6285_vm10, %v6371_v47, %v6348_v30  ;;  %v6415_v32 = vsel %vm6316_vm11, %v3278_v63, %v3285_v10  ;;  %v6419_v33 = vld [vmem:[#allocation2 + $0x48] sm:$0xf]  ;;  %4736 = vmatprep.subr.bf16.mxu0 %v5936_v0  ;;  %5663 = vmatpush1.bf16.msra.mxu1 %v5739_v44  ;;  %v718_v29 = vld [vmem:[#allocation2 + $0x34] sm:$0xf]  ;;  %v5746_v30 = vld [vmem:[%s8629_s3 + $0x40] sm:$0xff]  }
  0x7b   : > { %v6417_v41 = vrot.slane %v2737_v14, 5  ;;  %v6424_v49 = vsel %vm6316_vm11, %v2016_v11, %v2023_v13  ;;  %v2734_v52 = vor.u32 %v2733_v15, %v2730_v51  ;;  %v6426_v50 = vrot.slane %v2741_v16, 4  ;;  %v5740_v5 = vld [vmem:[%s8629_s3 + $0x28] sm:$0xff]   ;;  %v717_v51 = vld [vmem:[#allocation2 + $0x30] sm:$0xf]  ;;  %5655 = vmatprep.subr.bf16.mxu1 %v5936_v0 }
  0x7c   : > { %1296 = vrot.lane.b32.xlu0 %v1204_v26, %s5937_s20  ;;  %v6393_v26 = vrot.slane %v2004_v59, 11  ;;  %v793_v57 = vor.u32 %v791_v43, %v6386_v18  ;;  %v715_v59 = vld [vmem:[#allocation2 + $0x20] sm:$0xf]  ;;  %v3277_v61 = vsel %vm6316_vm11, %v6389_v24, %v6391_v25  ;;  %v3293_v63 = vshrl.u32 %v6384_v17, 16  ;;  %v716_v14 = vld [vmem:[#allocation2 + $0x2c] sm:$0x8] }
  0x7d   : > { %1294 = vrot.lane.b32.xlu1 %v1203_v53, %s5937_s20  ;;  %v6428_v53 = vld [vmem:[#allocation2 + $0x30] sm:$0xf]  ;;  %v710_v1 = vld [vmem:[#allocation2 + $0x4] sm:$0x8]  ;;  %v775_v4 = vshrl.u32 %v712_v38, 16  ;;  %v771_v10 = vor.u32 %v769_v3, %v6398_v39  ;;  %v778_v13 = vshll.u32 %v712_v38, 16  ;;  %4737 = vmatpush1.bf16.msra.mxu0 %v5740_v5 }
  0x7e   : > { %v2015_v62 = vsel %vm6316_vm11, %v6393_v26, %v6395_v36  ;;  %v794_v11 = vsel %vm6316_vm11, %v5444_v42, %v793_v57  ;;  %v3296_v15 = vshll.u32 %v6384_v17, 16  ;;  %v3302_v16 = vshrl.u32 %v6419_v33, 16  ;;  %v5741_v43 = vld [vmem:[%s8629_s3 + $0x20] sm:$0xff]   ;;  %4738 = vmatprep.subr.bf16.mxu0 %v5936_v0  ;;  %5664 = vmatpush1.bf16.msra.mxu1 %v5740_v5  ;;  %v479_v22 = vld [vmem:[#allocation2 + $0x54] sm:$0x8] }
  0x7f   : > { %1146 = vst.msk [vmem:[#allocation3 + $0x10] sm:$0xf] %vm451_vm0, %v794_v11  ;;  %v773_v12 = vrot.slane %v6398_v39, 4  ;;  %v797_v38 = vshrl.u32 %v715_v59, 16  ;;  %v800_v42 = vshll.u32 %v715_v59, 16  ;;  %v6464_v44 = vrot.slane %v3293_v63, 7  ;;  %5656 = vmatprep.subr.bf16.mxu1 %v5936_v0 }
  0x80   : > { %1300 = vrot.lane.b32.xlu0 %v1206_v6, %s5937_s20  ;;  %v761_v6 = vshrl.u32 %v710_v1, 16  ;;  %v1469_v57 = vshrl.u32 %v6428_v53, 16  ;;  %v6474_v39 = vld [vmem:[#allocation2 + $0x34] sm:$0xf]  ;;  %v795_v59 = vrot.slane %v6386_v18, 4  ;;  %v810_v63 = vshrl.u32 %v717_v51, 16 }
  0x81   : > { %1298 = vrot.lane.b32.xlu1 %v1205_v23, %s5937_s20  ;;  %v777_v23 = vrot.slane %v775_v4, 7  ;;  %v805_v4 = vshrl.u32 %v716_v14, 16  ;;  %v1472_v5 = vshll.u32 %v6428_v53, 16  ;;  %v813_v20 = vshll.u32 %v717_v51, 16  ;;  %4739 = vmatpush1.bf16.msra.mxu0 %v5741_v43  ;;  %v5742_v14 = vld [vmem:[%s8629_s3 + $0x18] sm:$0xff]  }
  0x82   : > { %v5443_v3 = vrot.slane %v761_v6, 11  ;;  %v819_v56 = vshrl.u32 %v718_v29, 16  ;;  %v812_v53 = vrot.slane %v810_v63, 7  ;;  %v822_v11 = vshll.u32 %v718_v29, 16  ;;  %v719_v8 = vld [vmem:[#allocation2 + $0x40] sm:$0x8]  ;;  %4740 = vmatprep.subr.bf16.mxu0 %v5936_v0  ;;  %5665 = vmatpush1.bf16.msra.mxu1 %v5741_v43 }
  0x83   : > { %v780_v1 = vor.u32 %v778_v13, %v777_v23  ;;  %v720_v13 = vld [vmem:[#allocation2 + $0x44] sm:$0xf]  ;;  %v2744_v51 = vor.u32 %v6426_v50, %v6417_v41  ;;  %v3304_v23 = vrot.slane %v3302_v16, 7  ;;  %v1478_v29 = vshll.u32 %v6474_v39, 16  ;;  %5657 = vmatprep.subr.bf16.mxu1 %v5936_v0  ;;  %v6531_v63 = vld [vmem:[#allocation2 + $0x58] sm:$0xf] }
  0x84   : > { %1804 = vrot.lane.b32.xlu0 %v1433_v54, %s5938_s14  ;;  %v6459_v54 = vrot.slane %v2734_v52, 4  ;;  %v799_v52 = vrot.slane %v797_v38, 7  ;;  %v821_v55 = vrot.slane %v819_v56, 7  ;;  %v817_v16 = vrot.slane %v812_v53, 4  ;;  %v2661_v25 = vld [vmem:[#allocation2 + $0x44] sm:$0xf] }
  0x85   : > { %1302 = vrot.lane.b32.xlu1 %v1207_v48, %s5937_s20  ;;  %v772_v48 = vsel %vm6316_vm11, %v5443_v3, %v771_v10  ;;  %v781_v6 = vsel %vm6316_vm11, %v773_v12, %v780_v1  ;;  %v5445_v10 = vrot.slane %v805_v4, 11  ;;  %v3305_v12 = vshll.u32 %v6419_v33, 16  ;;  %s5939_s20 = smov 48   ;;  %v721_v3 = vld [vmem:[#allocation2 + $0x48] sm:$0xf]  ;;  %4741 = vmatpush1.bf16.msra.mxu0 %v5742_v14 }
  0x86   : > { %1144 = vst.msk [vmem:[#allocation3] sm:$0xf] %vm451_vm0, %v772_v48  ;;  %1145 = vst.msk [vmem:[#allocation3 + $0x8] sm:$0xf] %vm451_vm0, %v781_v6  ;;  %v802_v18 = vor.u32 %v800_v42, %v799_v52  ;;  %v815_v33 = vor.u32 %v813_v20, %v812_v53  ;;  %v6508_v38 = vrot.slane %v1469_v57, 4  ;;  %v6510_v42 = vrot.slane %v1472_v5, 5  ;;  %4742 = vmatprep.subr.bf16.mxu0 %v5936_v0 }
  0x87   : > { %v824_v43 = vor.u32 %v822_v11, %v821_v55  ;;  %v3300_v57 = vrot.slane %v6464_v44, 4  ;;  %v827_v4 = vshrl.u32 %v719_v8, 16  ;;  %v832_v48 = vshrl.u32 %v720_v13, 16  ;;  %v5743_v52 = vld [vmem:[%s8629_s3 + $0x10] sm:$0xff]   ;;  %5666 = vmatpush1.bf16.msra.mxu1 %v5742_v14  ;;  %v6535_v6 = vld [vmem:[#allocation2 + $0x38] sm:$0x1] }
  0x88   : > { %1808 = vrot.lane.b32.xlu0 %v1457_v19, %s5938_s14  ;;  %v524_v19 = vld [vmem:[#allocation2 + $0x4c] sm:$0x1]  ;;  %v803_v50 = vsel %vm6316_vm11, %v795_v59, %v802_v18  ;;  %v816_v1 = vsel %vm6316_vm11, %v5445_v10, %v815_v33  ;;  %v1482_v59 = vshrl.u32 %v6474_v39, 16  ;;  %v835_v9 = vshll.u32 %v720_v13, 16  ;;  %5658 = vmatprep.subr.bf16.mxu1 %v5936_v0  ;;  %v3220_v10 = vld [vmem:[#allocation2 + $0x40] sm:$0x8] }
  0x89   : > { %1806 = vrot.lane.b32.xlu1 %v1443_v2, %s5938_s14  ;;  %v2462_v2 = vld [vmem:[#allocation2 + $0x1c] sm:$0xf]  ;;  %1147 = vst.msk [vmem:[#allocation3 + $0x18] sm:$0xf] %vm451_vm0, %v803_v50  ;;  %v525_v21 = vsel %vm6240_vm5, 0, %v524_v19  ;;  %v825_v58 = vsel %vm6316_vm11, %v817_v16, %v824_v43  ;;  %v3307_v5 = vor.u32 %v3305_v12, %v3304_v23  ;;  %v5446_v39 = vrot.slane %v827_v4, 11  ;;  %4743 = vmatpush1.bf16.msra.mxu0 %v5743_v52 }
  0x8a   : > { %526 = vst [vmem:[#allocation2 + $0x4c] sm:$0x1] %v525_v21  ;;  %1148 = vst.msk [vmem:[#allocation3 + $0x20] sm:$0xf] %vm451_vm0, %v816_v1  ;;  %v834_v20 = vrot.slane %v832_v48, 7  ;;  %v844_v56 = vshll.u32 %v721_v3, 16  ;;  %v1475_v53 = vor.u32 %v6510_v42, %v6508_v38  ;;  %v2740_v14 = vsel %vm6285_vm10, %v6459_v54, %v6417_v41  ;;  %4744 = vmatprep.subr.bf16.mxu0 %v5936_v0 }
  0x8b   : > { %1149 = vst.msk [vmem:[#allocation3 + $0x28] sm:$0xf] %vm451_vm0, %v825_v58  ;;  %v2463_v19 = vld [vmem:[#allocation2 + $0x20] sm:$0xf]  ;;  %v480_v13 = vsel %vm6251_vm6, 0, %v479_v22  ;;  %v6549_v23 = vrot.slane %v2744_v51, 4  ;;  %5667 = vmatpush1.bf16.msra.mxu1 %v5743_v52  ;;  %v6583_v43 = vsel %vm6316_vm11, %v3300_v57, %v3307_v5 }
  0x8c   : > { %2333 = vrot.lane.b32.xlu0 %v1993_v46, %s5939_s20  ;;  %v2660_v46 = vld [vmem:[#allocation2 + $0x38] sm:$0x1]  ;;  %v6551_v12 = vld [vmem:[#allocation2 + $0x44] sm:$0xf]  ;;  %v837_v55 = vor.u32 %v835_v9, %v834_v20  ;;  %v839_v8 = vrot.slane %v834_v20, 4  ;;  %v6561_v50 = vrot.slane %v1478_v29, 5  ;;  %5659 = vmatprep.subr.bf16.mxu1 %v5936_v0 }
  0x8d   : > { %1810 = vrot.lane.b32.xlu1 %v1467_v35, %s5938_s14  ;;  %v841_v35 = vshrl.u32 %v721_v3, 16  ;;  %v2747_v18 = vshll.u32 %v2660_v46, 16  ;;  %481 = vst [vmem:[#allocation2 + $0x54] sm:$0x8] %v480_v13  ;;  %v6563_v33 = vrot.slane %v1482_v59, 4  ;;  %v3288_v17 = vshrl.u32 %v3220_v10, 16 }
  0x8e   : > { %v724_v16 = vld [vmem:[#allocation2 + $0x5c] sm:$0xf]  ;;  %v482_v3 = vld [vmem:[#allocation2 + $0x68] sm:$0x8]  ;;  %v854_v29 = vshrl.u32 %v6531_v63, 16  ;;  %v6585_v60 = vrot.slane %v1475_v53, 4 }
  0x8f   : > { %v843_v11 = vrot.slane %v841_v35, 7  ;;  %v6576_v38 = vld [vmem:[#allocation2 + $0x6c] sm:$0xf]  ;;  %v6579_v42 = vrot.slane %v2747_v18, 5  ;;  %v1939_v21 = vld [vmem:[#allocation2 + $0x40] sm:$0x8]  ;;  %v1485_v57 = vor.u32 %v6563_v33, %v6561_v50 }
  0x90   : > { %2526 = vrot.lane.b32.xlu0 %v2462_v2, %s5940_s29  ;;  %v5744_v2 = vld [vmem:[%s8629_s3 + $0x8] sm:$0xff]   ;;  %v856_v22 = vrot.slane %v854_v29, 7  ;;  %v857_v46 = vshll.u32 %v6531_v63, 16  ;;  %v863_v1 = vshrl.u32 %v724_v16, 16  ;;  %v866_v4 = vshll.u32 %v724_v16, 16  ;;  %v5745_v9 = vld [vmem:[%s8629_s3] sm:$0xff]  }
  0x91   : > { %2335 = vrot.lane.b32.xlu1 %v6344_v27, %s5939_s20  ;;  %v6559_v27 = vor.u32 %v3296_v15, %v6464_v44  ;;  %v846_v51 = vor.u32 %v844_v56, %v843_v11  ;;  %v1488_v15 = vshll.u32 %v6535_v6, 16  ;;  %v838_v44 = vsel %vm6316_vm11, %v5446_v39, %v837_v55  ;;  %4745 = vmatpush1.bf16.msra.mxu0 %v5744_v2  ;;  %v6596_v52 = vld [vmem:[#allocation2 + $0x48] sm:$0xf]  ;;  %v3746_v35 = vld [vmem:[#allocation2 + $0x30] sm:$0xf] }
  0x92   : > { %1150 = vst.msk [vmem:[#allocation3 + $0x30] sm:$0xf] %vm451_vm0, %v838_v44  ;;  %v2031_v48 = vshrl.u32 %v6551_v12, 16  ;;  %v483_v59 = vsel %vm6251_vm6, 0, %v482_v3  ;;  %v876_v58 = vshrl.u32 %v6576_v38, 16  ;;  %4746 = vmatprep.subr.bf16.mxu0 %v5936_v0  ;;  %5668 = vmatpush1.bf16.msra.mxu1 %v5744_v2  ;;  %v6611_v63 = vrot.slane %v3288_v17, 11 }
  0x93   : > { %v847_v28 = vsel %vm6316_vm11, %v839_v8, %v846_v51  ;;  %v6613_v5 = vrot.slane %v1488_v15, 5  ;;  %v861_v6 = vrot.slane %v856_v22, 4  ;;  %v865_v39 = vrot.slane %v863_v1, 7  ;;  %484 = vst [vmem:[#allocation2 + $0x68] sm:$0x8] %v483_v59  ;;  %5660 = vmatprep.subr.bf16.mxu1 %v5936_v0 }
  0x94   : > { %3087 = vrot.lane.b32.xlu0 %v2716_v31, %s5941_s7  ;;  %v727_v31 = vld [vmem:[#allocation2 + $0x70] sm:$0xf]  ;;  %1151 = vst.msk [vmem:[#allocation3 + $0x38] sm:$0xf] %vm451_vm0, %v847_v28  ;;  %v2026_v20 = vshrl.u32 %v1939_v21, 16  ;;  %v2034_v56 = vshll.u32 %v6551_v12, 16  ;;  %v859_v11 = vor.u32 %v857_v46, %v856_v22  ;;  %v1481_v47 = vsel %vm6285_vm10, %v6585_v60, %v6561_v50 }
  0x95   : > { %2528 = vrot.lane.b32.xlu1 %v2463_v19, %s5940_s29  ;;  %v722_v19 = vld [vmem:[#allocation2 + $0x54] sm:$0x8]  ;;  %v878_v18 = vrot.slane %v876_v58, 7  ;;  %v885_v10 = vshrl.u32 %v727_v31, 16  ;;  %v2040_v24 = vshrl.u32 %v6596_v52, 16  ;;  %v868_v13 = vor.u32 %v866_v4, %v865_v39  ;;  %4747 = vmatpush1.bf16.msra.mxu0 %v5745_v9 }
  0x96   : > { %v849_v53 = vshrl.u32 %v722_v19, 16  ;;  %v6624_v55 = vrot.slane %v2031_v48, 7  ;;  %v888_v2 = vshll.u32 %v727_v31, 16  ;;  %4762 = vmatprep.subr.bf16.mxu0 %v5936_v0  ;;  %5669 = vmatpush1.bf16.msra.mxu1 %v5745_v9  ;;  %v879_v51 = vshll.u32 %v6576_v38, 16  ;;  %v485_v16 = vld [vmem:[#allocation2 + $0x7c] sm:$0x8] }
  0x97   : > { %v883_v12 = vrot.slane %v878_v18, 4  ;;  %v887_v8 = vrot.slane %v885_v10, 7  ;;  %v869_v33 = vsel %vm6316_vm11, %v861_v6, %v868_v13  ;;  %5661 = vmatprep.subr.bf16.mxu1 %v5936_v0  ;;  %v3747_v3 = vld [vmem:[#allocation2 + $0x34] sm:$0xf]  ;;  %v2752_v17 = vshrl.u32 %v2661_v25, 16 }
  0x98   : > { %3617 = vrot.lane.b32.xlu0 %v3277_v61, %s5942_s18  ;;  %v2662_v61 = vld [vmem:[#allocation2 + $0x48] sm:$0xf]  ;;  %v2755_v15 = vshll.u32 %v2661_v25, 16  ;;  %1153 = vst.msk [vmem:[#allocation3 + $0x48] sm:$0xf] %vm451_vm0, %v869_v33  ;;  %v6644_v31 = vrot.slane %v1485_v57, 4  ;;  %v6651_v1 = vor.u32 %v2034_v56, %v6624_v55  ;;  %v881_v9 = vor.u32 %v879_v51, %v878_v18 }
  0x99   : > { %3089 = vrot.lane.b32.xlu1 %v2726_v37, %s5941_s7  ;;  %v5447_v37 = vrot.slane %v849_v53, 11  ;;  %v2761_v44 = vshll.u32 %v2662_v61, 16  ;;  %v890_v29 = vor.u32 %v888_v2, %v887_v8  ;;  %v6640_v28 = vld [vmem:[#allocation2 + $0x80] sm:$0xf]  ;;  %v6646_v21 = vrot.slane %v2026_v20, 11  ;;  %4763 = vmatpush2.bf16.msra.mxu0 %v5746_v30 }
  0x9a   : > { %v2765_v38 = vshrl.u32 %v2662_v61, 16  ;;  %v730_v22 = vld [vmem:[#allocation2 + $0x84] sm:$0xf]  ;;  %v2464_v46 = vld [vmem:[#allocation2 + $0x30] sm:$0xf]  ;;  %v2042_v4 = vrot.slane %v2040_v24, 7  ;;  %5670 = vmatpush2.bf16.msra.mxu1 %v5746_v30  ;;  %v2750_v10 = vsel %vm6285_vm10, %v6549_v23, %v6579_v42  ;;  %v3299_v24 = vsel %vm6316_vm11, %v6611_v63, %v6559_v27 }
  0x9b   : > { %v860_v0 = vsel %vm6316_vm11, %v5447_v37, %v859_v11  ;;  %v2043_v48 = vshll.u32 %v6596_v52, 16  ;;  %v891_v57 = vsel %vm6316_vm11, %v883_v12, %v890_v29  ;;  %v6663_v59 = vld [vmem:[#allocation2 + $0x58] sm:$0xf]  ;;  %v486_v52 = vsel %vm6251_vm6, 0, %v485_v16  ;;  %v6671_v56 = vld [vmem:[#allocation2 + $0x5c] sm:$0xf] }
  0x9c   : > { %3810 = vrot.lane.b32.xlu0 %v3746_v35, %s5943_s17  ;;  %1152 = vst.msk [vmem:[#allocation3 + $0x40] sm:$0xf] %vm451_vm0, %v860_v0  ;;  %1155 = vst.msk [vmem:[#allocation3 + $0x58] sm:$0xf] %vm451_vm0, %v891_v57  ;;  %v898_v35 = vshrl.u32 %v6640_v28, 16  ;;  %v2754_v6 = vrot.slane %v2752_v17, 4  ;;  %v1491_v27 = vsel %vm6285_vm10, %v6644_v31, %v6613_v5  ;;  %v2037_v51 = vsel %vm6316_vm11, %v6646_v21, %v6651_v1 }
  0x9d   : > { %3619 = vrot.lane.b32.xlu1 %v6415_v32, %s5942_s18  ;;  %v725_v32 = vld [vmem:[#allocation2 + $0x68] sm:$0x8]  ;;  %v2757_v39 = vrot.slane %v2755_v15, 5  ;;  %v6669_v20 = vrot.slane %v2761_v44, 5  ;;  %487 = vst [vmem:[#allocation2 + $0x7c] sm:$0x8] %v486_v52  ;;  %v6695_v30 = vor.u32 %v2043_v48, %v2042_v4 }
  0x9e   : > { %v871_v58 = vshrl.u32 %v725_v32, 16  ;;  %v907_v26 = vshrl.u32 %v730_v22, 16  ;;  %v2767_v36 = vrot.slane %v2765_v38, 4  ;;  %v900_v19 = vrot.slane %v898_v35, 7  ;;  %v488_v53 = vld [vmem:[#allocation2 + $0x90] sm:$0x8] }
  0x9f   : > { %v910_v18 = vshll.u32 %v730_v22, 16  ;;  %v3315_v25 = vshrl.u32 %v6663_v59, 16  ;;  %v3324_v11 = vshrl.u32 %v6671_v56, 16  ;;  %v901_v12 = vshll.u32 %v6640_v28, 16  ;;  %v6688_v2 = vld [vmem:[#allocation2 + $0x94] sm:$0xf] }
  0xa0   : > { %2337 = vrot.lane.b32.xlu0 %v2015_v62, %s5939_s20  ;;  %v5448_v62 = vrot.slane %v871_v58, 11  ;;  %v909_v61 = vrot.slane %v907_v26, 7  ;;  %v905_v8 = vrot.slane %v900_v19, 4  ;;  %v2038_v63 = vrot.slane %v6624_v55, 4  ;;  %v733_v33 = vld [vmem:[#allocation2 + $0x98] sm:$0xf] }
  0xa1   : > { %3812 = vrot.lane.b32.xlu1 %v3747_v3, %s5943_s17  ;;  %v2758_v16 = vor.u32 %v2757_v39, %v2754_v6  ;;  %v2768_v3 = vor.u32 %v2767_v36, %v6669_v20  ;;  %v489_v17 = vsel %vm6251_vm6, 0, %v488_v53  ;;  %v491_v15 = vld [vmem:[#allocation2 + $0xa4] sm:$0x8]  ;;  %v6707_v44 = vld [vmem:[#allocation2 + $0xa8] sm:$0xf]  ;;  %v6709_v28 = vrot.slane %v3315_v25, 7 }
  0xa2   : > { %v882_v13 = vsel %vm6316_vm11, %v5448_v62, %v881_v9  ;;  %v912_v37 = vor.u32 %v910_v18, %v909_v61  ;;  %v2465_v29 = vld [vmem:[#allocation2 + $0x34] sm:$0xf]  ;;  %v3327_v38 = vshll.u32 %v6671_v56, 16  ;;  %490 = vst [vmem:[#allocation2 + $0x90] sm:$0x8] %v489_v17  ;;  %v920_v0 = vshrl.u32 %v6688_v2, 16 }
  0xa3   : > { %1154 = vst.msk [vmem:[#allocation3 + $0x50] sm:$0xf] %vm451_vm0, %v882_v13  ;;  %v3326_v22 = vrot.slane %v3324_v11, 7  ;;  %v903_v48 = vor.u32 %v901_v12, %v900_v19  ;;  %v929_v32 = vshrl.u32 %v733_v33, 16  ;;  %v932_v57 = vshll.u32 %v733_v33, 16 }
  0xa4   : > { %2530 = vrot.lane.b32.xlu0 %v2464_v46, %s5940_s29  ;;  %v6721_v46 = vld [vmem:[#allocation2 + $0x44] sm:$0xf]  ;;  %v728_v4 = vld [vmem:[#allocation2 + $0x7c] sm:$0x8]  ;;  %v922_v9 = vrot.slane %v920_v0, 7  ;;  %v492_v52 = vsel %vm6251_vm6, 0, %v491_v15 }
  0xa5   : > { %2339 = vrot.lane.b32.xlu1 %v6424_v49, %s5939_s20  ;;  %v913_v49 = vsel %vm6316_vm11, %v905_v8, %v912_v37  ;;  %v893_v58 = vshrl.u32 %v728_v4, 16  ;;  %v942_v35 = vshrl.u32 %v6707_v44, 16  ;;  %v736_v6 = vld [vmem:[#allocation2 + $0xac] sm:$0xf]  ;;  %v6728_v41 = vrot.slane %v2758_v16, 4 }
  0xa6   : > { %1157 = vst.msk [vmem:[#allocation3 + $0x68] sm:$0xf] %vm451_vm0, %v913_v49  ;;  %v6730_v54 = vld [vmem:[#allocation2 + $0x4c] sm:$0x1]  ;;  %v3318_v39 = vshll.u32 %v6663_v59, 16  ;;  %v931_v56 = vrot.slane %v929_v32, 7  ;;  %v6743_v17 = vor.u32 %v3327_v38, %v3326_v22 }
  0xa7   : > { %493 = vst [vmem:[#allocation2 + $0xa4] sm:$0x8] %v492_v52  ;;  %v527_v26 = vld [vmem:[#allocation2 + $0x60] sm:$0x1]  ;;  %v3748_v36 = vld [vmem:[#allocation2 + $0x44] sm:$0xf] }
  0xa8   : > { %3091 = vrot.lane.b32.xlu0 %v2740_v14, %s5941_s7  ;;  %v6732_v14 = vrot.slane %v2768_v3, 4  ;;  %v6735_v62 = vld [vmem:[#allocation2 + $0x48] sm:$0xf]  ;;  %v5449_v19 = vrot.slane %v893_v58, 11  ;;  %v923_v18 = vshll.u32 %v6688_v2, 16  ;;  %v927_v25 = vrot.slane %v922_v9, 4 }
  0xa9   : > { %2532 = vrot.lane.b32.xlu1 %v2465_v29, %s5940_s29  ;;  %v944_v61 = vrot.slane %v942_v35, 7  ;;  %v494_v53 = vld [vmem:[#allocation2 + $0xb8] sm:$0x8]  ;;  %v3322_v11 = vrot.slane %v6709_v28, 4  ;;  %v934_v13 = vor.u32 %v932_v57, %v931_v56  ;;  %v951_v12 = vshrl.u32 %v736_v6, 16 }
  0xaa   : > { %v954_v8 = vshll.u32 %v736_v6, 16  ;;  %v6740_v37 = vld [vmem:[#allocation2 + $0xbc] sm:$0xf]  ;;  %v2771_v16 = vshll.u32 %v6730_v54, 16  ;;  %v3223_v3 = vld [vmem:[#allocation2 + $0x54] sm:$0x8]  ;;  %v904_v15 = vsel %vm6316_vm11, %v5449_v19, %v903_v48  ;;  %v925_v32 = vor.u32 %v923_v18, %v922_v9 }
  0xab   : > { %v1493_v2 = vshrl.u32 %v6721_v46, 16  ;;  %v739_v29 = vld [vmem:[#allocation2 + $0xc0] sm:$0xf]  ;;  %1156 = vst.msk [vmem:[#allocation3 + $0x60] sm:$0xf] %vm451_vm0, %v904_v15  ;;  %v935_v38 = vsel %vm6316_vm11, %v927_v25, %v934_v13  ;;  %v945_v49 = vshll.u32 %v6707_v44, 16 }
  0xac   : > { %3621 = vrot.lane.b32.xlu0 %v3299_v24, %s5942_s18  ;;  %v731_v24 = vld [vmem:[#allocation2 + $0x90] sm:$0x8]  ;;  %v949_v0 = vrot.slane %v944_v61, 4  ;;  %v953_v22 = vrot.slane %v951_v12, 7  ;;  %v1496_v4 = vshll.u32 %v6721_v46, 16  ;;  %v528_v23 = vsel %vm6240_vm5, 0, %v527_v26 }
  0xad   : > { %3093 = vrot.lane.b32.xlu1 %v2750_v10, %s5941_s7  ;;  %v915_v48 = vshrl.u32 %v731_v24, 16  ;;  %1159 = vst.msk [vmem:[#allocation3 + $0x78] sm:$0xf] %vm451_vm0, %v935_v38  ;;  %v3310_v42 = vshrl.u32 %v3223_v3, 16  ;;  %v1502_v10 = vshll.u32 %v6735_v62, 16  ;;  %v495_v44 = vsel %vm6251_vm6, 0, %v494_v53 }
  0xae   : > { %v956_v57 = vor.u32 %v954_v8, %v953_v22  ;;  %529 = vst [vmem:[#allocation2 + $0x60] sm:$0x1] %v528_v23  ;;  %v3749_v58 = vld [vmem:[#allocation2 + $0x48] sm:$0xf]  ;;  %v6767_v46 = vrot.slane %v1493_v2, 4  ;;  %v1506_v9 = vshrl.u32 %v6735_v62, 16  ;;  %v6817_v38 = vsel %vm6316_vm11, %v3322_v11, %v6743_v17 }
  0xaf   : > { %v5450_v35 = vrot.slane %v915_v48, 11  ;;  %v734_v6 = vld [vmem:[#allocation2 + $0xa4] sm:$0x8]  ;;  %496 = vst [vmem:[#allocation2 + $0xb8] sm:$0x8] %v495_v44  ;;  %v964_v54 = vshrl.u32 %v6740_v37, 16 }
  0xb0   : > { %3814 = vrot.lane.b32.xlu0 %v3748_v36, %s5943_s17  ;;  %v1380_v56 = vld [vmem:[#allocation2 + $0x4c] sm:$0x1]  ;;  %v937_v26 = vshrl.u32 %v734_v6, 16  ;;  %v947_v36 = vor.u32 %v945_v49, %v944_v61  ;;  %v957_v19 = vsel %vm6316_vm11, %v949_v0, %v956_v57  ;;  %v973_v18 = vshrl.u32 %v739_v29, 16  ;;  %v6796_v50 = vld [vmem:[#allocation2 + $0xd0] sm:$0xf] }
  0xb1   : > { %3623 = vrot.lane.b32.xlu1 %v6583_v43, %s5942_s18  ;;  %v1498_v25 = vrot.slane %v1496_v4, 5  ;;  %v926_v62 = vsel %vm6316_vm11, %v5450_v35, %v925_v32  ;;  %1161 = vst.msk [vmem:[#allocation3 + $0x88] sm:$0xf] %vm451_vm0, %v957_v19  ;;  %v966_v53 = vrot.slane %v964_v54, 7  ;;  %v976_v13 = vshll.u32 %v739_v29, 16 }
  0xb2   : > { %v1241_v33 = vpop.permute.xlu0 %1240  ;;  %v6785_v43 = vrot.slane %v2771_v16, 5  ;;  %v6790_v61 = vor.u32 %v3318_v39, %v6709_v28  ;;  %1158 = vst.msk [vmem:[#allocation3 + $0x70] sm:$0xf] %vm451_vm0, %v926_v62  ;;  %v5451_v12 = vrot.slane %v937_v26, 11  ;;  %v975_v8 = vrot.slane %v973_v18, 7 }
  0xb3   : > { %1337 = vst.msk [vmem:[#allocation3] sm:$0xf] %vm1336_vm12, %v1241_v33  ;;  %v497_v33 = vld [vmem:[#allocation2 + $0xcc] sm:$0x8]  ;;  %v6793_v3 = vrot.slane %v3310_v42, 11  ;;  %v1512_v2 = vshll.u32 %v1380_v56, 16  ;;  %v2046_v16 = vsel %vm6316_vm11, %v2038_v63, %v6695_v30  ;;  %v1499_v49 = vor.u32 %v1498_v25, %v6767_v46 }
  0xb4   : > { %1812 = vrot.lane.b32.xlu0 %v1481_v47, %s5938_s14  ;;  %v967_v15 = vshll.u32 %v6740_v37, 16  ;;  %v971_v29 = vrot.slane %v966_v53, 4  ;;  %v6799_v60 = vrot.slane %v1502_v10, 5  ;;  %v1508_v47 = vrot.slane %v1506_v9, 4  ;;  %v2466_v24 = vld [vmem:[#allocation2 + $0x44] sm:$0xf] }
  0xb5   : > { %3816 = vrot.lane.b32.xlu1 %v3749_v58, %s5943_s17  ;;  %v948_v59 = vsel %vm6316_vm11, %v5451_v12, %v947_v36  ;;  %v978_v39 = vor.u32 %v976_v13, %v975_v8  ;;  %v2764_v37 = vsel %vm6285_vm10, %v6728_v41, %v6669_v20  ;;  %v1942_v0 = vld [vmem:[#allocation2 + $0x54] sm:$0x8]  ;;  %v2774_v20 = vsel %vm6285_vm10, %v6732_v14, %v6785_v43  ;;  %v6831_v63 = vld [vmem:[#allocation2 + $0x58] sm:$0xf]  ;;  %v500_v4 = vld [vmem:[#allocation2 + $0xe0] sm:$0x8] }
  0xb6   : > { %v1243_v52 = vpop.permute.xlu0 %1242  ;;  %1160 = vst.msk [vmem:[#allocation3 + $0x80] sm:$0xf] %vm451_vm0, %v948_v59  ;;  %v742_v55 = vld [vmem:[#allocation2 + $0xd4] sm:$0xf]  ;;  %v737_v30 = vld [vmem:[#allocation2 + $0xb8] sm:$0x8]  ;;  %v3321_v21 = vsel %vm6316_vm11, %v6793_v3, %v6790_v61  ;;  %v969_v22 = vor.u32 %v967_v15, %v966_v53  ;;  %v1509_v48 = vor.u32 %v1508_v47, %v6799_v60 }
  0xb7   : > { %1338 = vst.msk [vmem:[#allocation3 + $0x8] sm:$0xf] %vm1336_vm12, %v1243_v52  ;;  %v979_v28 = vsel %vm6316_vm11, %v971_v29, %v978_v39  ;;  %v498_v41 = vsel %vm6251_vm6, 0, %v497_v33  ;;  %v986_v11 = vshrl.u32 %v6796_v50, 16  ;;  %v6842_v1 = vrot.slane %v1512_v2, 5 }
  0xb8   : > { %2341 = vrot.lane.b32.xlu0 %v2037_v51, %s5939_s20  ;;  %v2664_v51 = vld [vmem:[#allocation2 + $0x58] sm:$0xf]  ;;  %v959_v17 = vshrl.u32 %v737_v30, 16  ;;  %1163 = vst.msk [vmem:[#allocation3 + $0x98] sm:$0xf] %vm451_vm0, %v979_v28  ;;  %v2048_v32 = vshrl.u32 %v1942_v0, 16 }
  0xb9   : > { %499 = vst [vmem:[#allocation2 + $0xcc] sm:$0x8] %v498_v41  ;;  %1814 = vrot.lane.b32.xlu1 %v1491_v27, %s5938_s14  ;;  %v6852_v23 = vld [vmem:[#allocation2 + $0x5c] sm:$0xf]  ;;  %v988_v42 = vrot.slane %v986_v11, 7  ;;  %v995_v10 = vshrl.u32 %v742_v55, 16 }
  0xba   : > { %v6854_v57 = vld [vmem:[#allocation2 + $0xe4] sm:$0xf]  ;;  %v6856_v44 = vrot.slane %v1499_v49, 4  ;;  %v2053_v58 = vshrl.u32 %v6831_v63, 16  ;;  %v5452_v52 = vrot.slane %v959_v17, 11  ;;  %v998_v46 = vshll.u32 %v742_v55, 16 }
  0xbb   : > { %v745_v9 = vld [vmem:[#allocation2 + $0xe8] sm:$0xf]  ;;  %v1245_v35 = vpop.permute.xlu1 %1244  ;;  %v2776_v5 = vshrl.u32 %v2664_v51, 16  ;;  %v2779_v31 = vshll.u32 %v2664_v51, 16  ;;  %v993_v27 = vrot.slane %v988_v42, 4  ;;  %v997_v6 = vrot.slane %v995_v10, 7 }
  0xbc   : > { %2534 = vrot.lane.b32.xlu0 %v2466_v24, %s5940_s29  ;;  %1339 = vst.msk [vmem:[#allocation3 + $0x10] sm:$0xf] %vm1336_vm12, %v1245_v35  ;;  %v2467_v54 = vld [vmem:[#allocation2 + $0x48] sm:$0xf]  ;;  %v6861_v56 = vld [vmem:[#allocation2 + $0x5c] sm:$0xf]  ;;  %v970_v26 = vsel %vm6316_vm11, %v5452_v52, %v969_v22  ;;  %v1505_v33 = vsel %vm6285_vm10, %v6856_v44, %v6799_v60 }
  0xbd   : > { %v989_v36 = vshll.u32 %v6796_v50, 16  ;;  %v501_v19 = vsel %vm6251_vm6, 0, %v500_v4  ;;  %v1008_v18 = vshrl.u32 %v6854_v57, 16  ;;  %2343 = vrot.lane.b32.xlu1 %v2046_v16, %s5939_s20  ;;  %v1249_v25 = vpop.permute.xlu0 %1248  ;;  %v6870_v62 = vrot.slane %v1509_v48, 4  ;;  %1162 = vst.msk [vmem:[#allocation3 + $0x90] sm:$0xf] %vm451_vm0, %v970_v26 }
  0xbe   : > { %v1000_v53 = vor.u32 %v998_v46, %v997_v6  ;;  %502 = vst [vmem:[#allocation2 + $0xe0] sm:$0x8] %v501_v19  ;;  %v1017_v13 = vshrl.u32 %v745_v9, 16  ;;  %v1020_v12 = vshll.u32 %v745_v9, 16  ;;  %v503_v8 = vld [vmem:[#allocation2 + $0xf4] sm:$0x8] }
  0xbf   : > { %1341 = vst.msk [vmem:[#allocation3 + $0x20] sm:$0xf] %vm1336_vm12, %v1249_v25  ;;  %v6878_v2 = vrot.slane %v2048_v32, 11  ;;  %v2062_v15 = vshrl.u32 %v6852_v23, 16  ;;  %v1010_v29 = vrot.slane %v1008_v18, 7  ;;  %v1247_v47 = vpop.permute.xlu1 %1246  ;;  %v6884_v59 = vrot.slane %v2776_v5, 4 }
  0xc0   : > { %v6881_v50 = vld [vmem:[#allocation2 + $0xf8] sm:$0xf]  ;;  %3095 = vrot.lane.b32.xlu0 %v2764_v37, %s5941_s7  ;;  %v6886_v39 = vrot.slane %v2779_v31, 5  ;;  %v740_v16 = vld [vmem:[#allocation2 + $0xcc] sm:$0x8]  ;;  %v1001_v24 = vsel %vm6316_vm11, %v993_v27, %v1000_v53  ;;  %v1019_v49 = vrot.slane %v1017_v13, 7  ;;  %v991_v28 = vor.u32 %v989_v36, %v988_v42 }
  0xc1   : > { %v6890_v0 = vld [vmem:[#allocation2 + $0xfc] sm:$0xf]  ;;  %1340 = vst.msk [vmem:[#allocation3 + $0x18] sm:$0xf] %vm1336_vm12, %v1247_v47  ;;  %v6893_v55 = vrot.slane %v2053_v58, 7  ;;  %v981_v30 = vshrl.u32 %v740_v16, 16  ;;  %2536 = vrot.lane.b32.xlu1 %v2467_v54, %s5940_s29  ;;  %v1253_v41 = vpop.permute.xlu0 %1252  ;;  %v1515_v54 = vsel %vm6285_vm10, %v6870_v62, %v6842_v1 }
  0xc2   : > { %1165 = vst.msk [vmem:[#allocation3 + $0xa8] sm:$0xf] %vm451_vm0, %v1001_v24  ;;  %v1015_v37 = vrot.slane %v1010_v29, 4  ;;  %v2056_v11 = vshll.u32 %v6831_v63, 16  ;;  %v2785_v51 = vshll.u32 %v6861_v56, 16  ;;  %v1011_v17 = vshll.u32 %v6854_v57, 16 }
  0xc3   : > { %v1022_v22 = vor.u32 %v1020_v12, %v1019_v49  ;;  %1343 = vst.msk [vmem:[#allocation3 + $0x30] sm:$0xf] %vm1336_vm12, %v1253_v41  ;;  %v3750_v4 = vld [vmem:[#allocation2 + $0x58] sm:$0xf]  ;;  %v2789_v48 = vshrl.u32 %v6861_v56, 16  ;;  %v5453_v32 = vrot.slane %v981_v30, 11  ;;  %v1251_v58 = vpop.permute.xlu1 %1250  ;;  %v2782_v52 = vor.u32 %v6886_v39, %v6884_v59 }
  0xc4   : > { %v504_v42 = vsel %vm6251_vm6, 0, %v503_v8  ;;  %v1030_v10 = vshrl.u32 %v6881_v50, 16  ;;  %3625 = vrot.lane.b32.xlu0 %v3321_v21, %s5942_s18  ;;  %v2064_v63 = vrot.slane %v2062_v15, 7  ;;  %v2065_v57 = vshll.u32 %v6852_v23, 16  ;;  %v6914_v46 = vld [vmem:[#allocation2 + $0x68] sm:$0x8] }
  0xc5   : > { %v6916_v9 = vld [vmem:[#allocation2 + $0x6c] sm:$0xf]  ;;  %v1023_v35 = vsel %vm6316_vm11, %v1015_v37, %v1022_v22  ;;  %505 = vst [vmem:[#allocation2 + $0xf4] sm:$0x8] %v504_v42  ;;  %1342 = vst.msk [vmem:[#allocation3 + $0x28] sm:$0xf] %vm1336_vm12, %v1251_v58  ;;  %v992_v61 = vsel %vm6316_vm11, %v5453_v32, %v991_v28  ;;  %3097 = vrot.lane.b32.xlu1 %v2774_v20, %s5941_s7  ;;  %v1013_v36 = vor.u32 %v1011_v17, %v1010_v29 }
  0xc6   : > { %v743_v3 = vld [vmem:[#allocation2 + $0xe0] sm:$0x8]  ;;  %1167 = vst.msk [vmem:[#allocation3 + $0xb8] sm:$0xf] %vm451_vm0, %v1023_v35  ;;  %v1032_v21 = vrot.slane %v1030_v10, 7  ;;  %v1039_v23 = vshrl.u32 %v6890_v0, 16  ;;  %v1257_v6 = vpop.permute.xlu0 %1256  ;;  %v2058_v53 = vor.u32 %v2056_v11, %v6893_v55  ;;  %v2067_v47 = vor.u32 %v2065_v57, %v2064_v63 }
  0xc7   : > { %v1042_v5 = vshll.u32 %v6890_v0, 16  ;;  %v539_v31 = vld [vmem:[#allocation2 + $0xb0] sm:$0x1]  ;;  %v506_v27 = vld [vmem:[#allocation2 + $0x108] sm:$0x8]  ;;  %v6936_v56 = vrot.slane %v2785_v51, 5  ;;  %v1255_v25 = vpop.permute.xlu1 %1254 }
  0xc8   : > { %1164 = vst.msk [vmem:[#allocation3 + $0xa0] sm:$0xf] %vm451_vm0, %v992_v61  ;;  %v1003_v26 = vshrl.u32 %v743_v3, 16  ;;  %v6939_v19 = vld [vmem:[#allocation2 + $0x10c] sm:$0xf]  ;;  %v2791_v18 = vrot.slane %v2789_v48, 4  ;;  %3818 = vrot.lane.b32.xlu0 %v3750_v4, %s5943_s17  ;;  %v2059_v58 = vsel %vm6316_vm11, %v6878_v2, %v2058_v53 }
  0xc9   : > { %1345 = vst.msk [vmem:[#allocation3 + $0x40] sm:$0xf] %vm1336_vm12, %v1257_v6  ;;  %v3337_v14 = vshrl.u32 %v6916_v9, 16  ;;  %v1037_v43 = vrot.slane %v1032_v21, 4  ;;  %v1041_v20 = vrot.slane %v1039_v23, 7  ;;  %v2060_v13 = vrot.slane %v6893_v55, 4  ;;  %3627 = vrot.lane.b32.xlu1 %v6817_v38, %s5942_s18 }
  0xca   : > { %v6946_v12 = vld [vmem:[#allocation2 + $0x70] sm:$0xf]  ;;  %v5454_v8 = vrot.slane %v1003_v26, 11  ;;  %v1033_v15 = vshll.u32 %v6881_v50, 16  ;;  %1344 = vst.msk [vmem:[#allocation3 + $0x38] sm:$0xf] %vm1336_vm12, %v1255_v25  ;;  %v1261_v49 = vpop.permute.xlu0 %1260  ;;  %v2792_v37 = vor.u32 %v2791_v18, %v6936_v56 }
  0xcb   : > { %v3751_v29 = vld [vmem:[#allocation2 + $0x5c] sm:$0xf]  ;;  %v6950_v59 = vrot.slane %v2782_v52, 4  ;;  %v3332_v39 = vshrl.u32 %v6914_v46, 16  ;;  %v1044_v16 = vor.u32 %v1042_v5, %v1041_v20  ;;  %v751_v24 = vld [vmem:[#allocation2 + $0x110] sm:$0xf]  ;;  %v1259_v17 = vpop.permute.xlu1 %1258  ;;  %v2068_v63 = vsel %vm6316_vm11, %v2060_v13, %v2067_v47 }
  0xcc   : > { %v1014_v0 = vsel %vm6316_vm11, %v5454_v8, %v1013_v36  ;;  %v540_v50 = vsel %vm6240_vm5, 0, %v539_v31  ;;  %v507_v55 = vsel %vm6251_vm6, 0, %v506_v27  ;;  %v1052_v30 = vshrl.u32 %v6939_v19, 16  ;;  %1347 = vst.msk [vmem:[#allocation3 + $0x50] sm:$0xf] %vm1336_vm12, %v1261_v49  ;;  %1816 = vrot.lane.b32.xlu0 %v1505_v33, %s5938_s14 }
  0xcd   : > { %v2666_v28 = vld [vmem:[#allocation2 + $0x60] sm:$0x1]  ;;  %v6964_v41 = vrot.slane %v3337_v14, 7  ;;  %v3340_v38 = vshll.u32 %v6916_v9, 16  ;;  %1166 = vst.msk [vmem:[#allocation3 + $0xb0] sm:$0xf] %vm451_vm0, %v1014_v0  ;;  %v1045_v51 = vsel %vm6316_vm11, %v1037_v43, %v1044_v16  ;;  %v1035_v48 = vor.u32 %v1033_v15, %v1032_v21  ;;  %3820 = vrot.lane.b32.xlu1 %v3751_v29, %s5943_s17 }
  0xce   : > { %v746_v11 = vld [vmem:[#allocation2 + $0xf4] sm:$0x8]  ;;  %541 = vst [vmem:[#allocation2 + $0xb0] sm:$0x1] %v540_v50  ;;  %508 = vst [vmem:[#allocation2 + $0x108] sm:$0x8] %v507_v55  ;;  %v1265_v52 = vpop.permute.xlu0 %1264  ;;  %v2788_v3 = vsel %vm6285_vm10, %v6950_v59, %v6936_v56 }
  0xcf   : > { %v6976_v22 = vld [vmem:[#allocation2 + $0x58] sm:$0xf]  ;;  %v1025_v4 = vshrl.u32 %v746_v11, 16  ;;  %1169 = vst.msk [vmem:[#allocation3 + $0xc8] sm:$0xf] %vm451_vm0, %v1045_v51  ;;  %v1054_v32 = vrot.slane %v1052_v30, 7  ;;  %v1263_v27 = vpop.permute.xlu1 %1262  ;;  %v7003_v6 = vor.u32 %v3340_v38, %v6964_v41 }
  0xd0   : > { %v1061_v42 = vshrl.u32 %v751_v24, 16  ;;  %v509_v10 = vld [vmem:[#allocation2 + $0x11c] sm:$0x8]  ;;  %1346 = vst.msk [vmem:[#allocation3 + $0x48] sm:$0xf] %vm1336_vm12, %v1259_v17  ;;  %v3346_v60 = vshrl.u32 %v6946_v12, 16  ;;  %2345 = vrot.lane.b32.xlu0 %v2059_v58, %s5939_s20 }
  0xd1   : > { %v6986_v44 = vld [vmem:[#allocation2 + $0x5c] sm:$0xf]  ;;  %v1064_v33 = vshll.u32 %v751_v24, 16  ;;  %v6988_v57 = vld [vmem:[#allocation2 + $0x120] sm:$0xf]  ;;  %v2795_v46 = vshll.u32 %v2666_v28, 16  ;;  %1818 = vrot.lane.b32.xlu1 %v1515_v54, %s5938_s14 }
  0xd2   : > { %v5455_v9 = vrot.slane %v1025_v4, 11  ;;  %v1059_v35 = vrot.slane %v1054_v32, 4  ;;  %v1063_v61 = vrot.slane %v1061_v42, 7  ;;  %1349 = vst.msk [vmem:[#allocation3 + $0x60] sm:$0xf] %vm1336_vm12, %v1265_v52  ;;  %v6996_v21 = vrot.slane %v2792_v37, 4  ;;  %v1269_v25 = vpop.permute.xlu0 %1268 }
  0xd3   : > { %v2468_v2 = vld [vmem:[#allocation2 + $0x58] sm:$0xf]  ;;  %v6998_v23 = vrot.slane %v3332_v39, 11  ;;  %v1393_v5 = vld [vmem:[#allocation2 + $0xa8] sm:$0xf]  ;;  %v1055_v31 = vshll.u32 %v6939_v19, 16  ;;  %v1267_v1 = vpop.permute.xlu1 %1266 }
  0xd4   : > { %v3349_v26 = vshll.u32 %v6946_v12, 16  ;;  %v1036_v36 = vsel %vm6316_vm11, %v5455_v9, %v1035_v48  ;;  %v1066_v18 = vor.u32 %v1064_v33, %v1063_v61  ;;  %v754_v56 = vld [vmem:[#allocation2 + $0x124] sm:$0xf]  ;;  %1348 = vst.msk [vmem:[#allocation3 + $0x58] sm:$0xf] %vm1336_vm12, %v1263_v27  ;;  %v1517_v14 = vshrl.u32 %v6976_v22, 16  ;;  %2538 = vrot.lane.b32.xlu0 %v2468_v2, %s5940_s29 }
  0xd5   : > { %v1520_v43 = vshll.u32 %v6976_v22, 16  ;;  %1168 = vst.msk [vmem:[#allocation3 + $0xc0] sm:$0xf] %vm451_vm0, %v1036_v36  ;;  %v510_v19 = vsel %vm6251_vm6, 0, %v509_v10  ;;  %v1074_v20 = vshrl.u32 %v6988_v57, 16  ;;  %v7021_v53 = vrot.slane %v2795_v46, 5  ;;  %2347 = vrot.lane.b32.xlu1 %v2068_v63, %s5939_s20 }
  0xd6   : > { %v3348_v13 = vrot.slane %v3346_v60, 7  ;;  %v1526_v12 = vshll.u32 %v6986_v44, 16  ;;  %v749_v8 = vld [vmem:[#allocation2 + $0x108] sm:$0x8]  ;;  %v1067_v15 = vsel %vm6316_vm11, %v1059_v35, %v1066_v18  ;;  %511 = vst [vmem:[#allocation2 + $0x11c] sm:$0x8] %v510_v19  ;;  %v1057_v39 = vor.u32 %v1055_v31, %v1054_v32  ;;  %v1273_v37 = vpop.permute.xlu0 %1272 }
  0xd7   : > { %1351 = vst.msk [vmem:[#allocation3 + $0x70] sm:$0xf] %vm1336_vm12, %v1269_v25  ;;  %v1613_v29 = vshrl.u32 %v1393_v5, 16  ;;  %v1616_v47 = vshll.u32 %v1393_v5, 16  ;;  %v1047_v59 = vshrl.u32 %v749_v8, 16  ;;  %v1530_v62 = vshrl.u32 %v6986_v44, 16  ;;  %v1271_v58 = vpop.permute.xlu1 %1270 }
  0xd8   : > { %1171 = vst.msk [vmem:[#allocation3 + $0xd8] sm:$0xf] %vm451_vm0, %v1067_v15  ;;  %v7030_v54 = vld [vmem:[#allocation2 + $0xac] sm:$0xf]  ;;  %v1076_v16 = vrot.slane %v1074_v20, 7  ;;  %v1083_v24 = vshrl.u32 %v754_v56, 16  ;;  %v3343_v38 = vsel %vm6316_vm11, %v6998_v23, %v7003_v6  ;;  %3099 = vrot.lane.b32.xlu0 %v2788_v3, %s5941_s7  ;;  %v2798_v63 = vsel %vm6285_vm10, %v6996_v21, %v7021_v53 }
  0xd9   : > { %v1086_v49 = vshll.u32 %v754_v56, 16  ;;  %1350 = vst.msk [vmem:[#allocation3 + $0x68] sm:$0xf] %vm1336_vm12, %v1267_v1  ;;  %v3344_v0 = vrot.slane %v6964_v41, 4  ;;  %v1519_v50 = vrot.slane %v1517_v14, 4  ;;  %v1522_v55 = vrot.slane %v1520_v43, 5 }
  0xda   : > { %v5456_v30 = vrot.slane %v1047_v59, 11  ;;  %v512_v28 = vld [vmem:[#allocation2 + $0x130] sm:$0x8]  ;;  %v1077_v11 = vshll.u32 %v6988_v57, 16  ;;  %v1081_v51 = vrot.slane %v1076_v16, 4  ;;  %v1085_v17 = vrot.slane %v1083_v24, 7  ;;  %v1277_v2 = vpop.permute.xlu0 %1276 }
  0xdb   : > { %v7040_v22 = vld [vmem:[#allocation2 + $0x134] sm:$0xf]  ;;  %v2469_v4 = vld [vmem:[#allocation2 + $0x5c] sm:$0xf]  ;;  %1353 = vst.msk [vmem:[#allocation3 + $0x80] sm:$0xf] %vm1336_vm12, %v1273_v37  ;;  %v3351_v41 = vor.u32 %v3349_v26, %v3348_v13  ;;  %v1523_v52 = vor.u32 %v1522_v55, %v1519_v50  ;;  %v1275_v56 = vpop.permute.xlu1 %1274 }
  0xdc   : > { %v1615_v48 = vrot.slane %v1613_v29, 4  ;;  %v1618_v32 = vrot.slane %v1616_v47, 5  ;;  %v1058_v42 = vsel %vm6316_vm11, %v5456_v30, %v1057_v39  ;;  %v757_v10 = vld [vmem:[#allocation2 + $0x138] sm:$0xf]  ;;  %v7050_v60 = vrot.slane %v1526_v12, 5  ;;  %2540 = vrot.lane.b32.xlu1 %v2469_v4, %s5940_s29  ;;  %3629 = vrot.lane.b32.xlu0 %v3343_v38, %s5942_s18 }
  0xdd   : > { %v7052_v44 = vrot.slane %v1530_v62, 4  ;;  %1170 = vst.msk [vmem:[#allocation3 + $0xd0] sm:$0xf] %vm451_vm0, %v1058_v42  ;;  %v7055_v33 = vld [vmem:[#allocation2 + $0x6c] sm:$0xf]  ;;  %v1088_v57 = vor.u32 %v1086_v49, %v1085_v17  ;;  %v1622_v46 = vshll.u32 %v7030_v54, 16  ;;  %v1079_v23 = vor.u32 %v1077_v11, %v1076_v16 }
  0xde   : > { %1352 = vst.msk [vmem:[#allocation3 + $0x78] sm:$0xf] %vm1336_vm12, %v1271_v58  ;;  %v752_v9 = vld [vmem:[#allocation2 + $0x11c] sm:$0x8]  ;;  %v513_v35 = vsel %vm6251_vm6, 0, %v512_v28  ;;  %v1096_v61 = vshrl.u32 %v7040_v22, 16  ;;  %v1619_v6 = vor.u32 %v1618_v32, %v1615_v48  ;;  %v3352_v25 = vsel %vm6316_vm11, %v3344_v0, %v3351_v41  ;;  %v1281_v15 = vpop.permute.xlu0 %1280 }
  0xdf   : > { %v1383_v3 = vld [vmem:[#allocation2 + $0x60] sm:$0x1]  ;;  %v1069_v21 = vshrl.u32 %v752_v9, 16  ;;  %v1089_v5 = vsel %vm6316_vm11, %v1081_v51, %v1088_v57  ;;  %514 = vst [vmem:[#allocation2 + $0x130] sm:$0x8] %v513_v35  ;;  %v1105_v31 = vshrl.u32 %v757_v10, 16  ;;  %v1533_v29 = vor.u32 %v7052_v44, %v7050_v60  ;;  %v1279_v50 = vpop.permute.xlu1 %1278 }
  0xe0   : > { %1355 = vst.msk [vmem:[#allocation3 + $0x90] sm:$0xf] %vm1336_vm12, %v1277_v2  ;;  %v3752_v27 = vld [vmem:[#allocation2 + $0x6c] sm:$0xf]  ;;  %v1626_v26 = vshrl.u32 %v7030_v54, 16  ;;  %v1098_v36 = vrot.slane %v1096_v61, 7  ;;  %3101 = vrot.lane.b32.xlu1 %v2798_v63, %s5941_s7 }
  0xe1   : > { %1173 = vst.msk [vmem:[#allocation3 + $0xe8] sm:$0xf] %vm451_vm0, %v1089_v5  ;;  %v1108_v18 = vshll.u32 %v757_v10, 16  ;;  %v2075_v14 = vshrl.u32 %v7055_v33, 16  ;;  %v5457_v43 = vrot.slane %v1069_v21, 11  ;;  %v1107_v19 = vrot.slane %v1105_v31, 7  ;;  %3822 = vrot.lane.b32.xlu0 %v3752_v27, %s5943_s17 }
  0xe2   : > { %v530_v20 = vld [vmem:[#allocation2 + $0x74] sm:$0x1]  ;;  %1354 = vst.msk [vmem:[#allocation3 + $0x88] sm:$0xf] %vm1336_vm12, %v1275_v56  ;;  %v1524_v53 = vrot.slane %v1523_v52, 4  ;;  %v1536_v13 = vshll.u32 %v1383_v3, 16  ;;  %v1285_v41 = vpop.permute.xlu0 %1284 }
  0xe3   : > { %v1945_v12 = vld [vmem:[#allocation2 + $0x68] sm:$0x8]  ;;  %v1103_v8 = vrot.slane %v1098_v36, 4  ;;  %v7076_v47 = vld [vmem:[#allocation2 + $0x70] sm:$0xf]  ;;  %v1080_v59 = vsel %vm6316_vm11, %v5457_v43, %v1079_v23  ;;  %v1099_v1 = vshll.u32 %v7040_v22, 16  ;;  %v1110_v62 = vor.u32 %v1108_v18, %v1107_v19  ;;  %v1283_v52 = vpop.permute.xlu1 %1282 }
  0xe4   : > { %v7080_v39 = vld [vmem:[#allocation2 + $0xbc] sm:$0xf]  ;;  %1357 = vst.msk [vmem:[#allocation3 + $0xa0] sm:$0xf] %vm1336_vm12, %v1281_v15  ;;  %v1620_v54 = vrot.slane %v1619_v6, 4  ;;  %v1624_v16 = vrot.slane %v1622_v46, 5  ;;  %v1529_v11 = vsel %vm6285_vm10, %v1524_v53, %v7050_v60  ;;  %3631 = vrot.lane.b32.xlu1 %v3352_v25, %s5942_s18 }
  0xe5   : > { %v1628_v24 = vrot.slane %v1626_v26, 4  ;;  %1172 = vst.msk [vmem:[#allocation3 + $0xe0] sm:$0xf] %vm451_vm0, %v1080_v59  ;;  %v531_v49 = vsel %vm6240_vm5, 0, %v530_v20  ;;  %v542_v0 = vld [vmem:[#allocation2 + $0xc4] sm:$0x1]  ;;  %v1111_v38 = vsel %vm6316_vm11, %v1103_v8, %v1110_v62  ;;  %v1101_v10 = vor.u32 %v1099_v1, %v1098_v36  ;;  %1820 = vrot.lane.b32.xlu0 %v1529_v11, %s5938_s14 }
  0xe6   : > { %v1395_v55 = vld [vmem:[#allocation2 + $0xb0] sm:$0x1]  ;;  %v2070_v30 = vshrl.u32 %v1945_v12, 16  ;;  %v7088_v28 = vrot.slane %v2075_v14, 7  ;;  %v2078_v37 = vshll.u32 %v7055_v33, 16  ;;  %v1538_v51 = vrot.slane %v1536_v13, 5  ;;  %v1289_v27 = vpop.permute.xlu0 %1288 }
  0xe7   : > { %532 = vst [vmem:[#allocation2 + $0x74] sm:$0x1] %v531_v49  ;;  %1356 = vst.msk [vmem:[#allocation3 + $0x98] sm:$0xf] %vm1336_vm12, %v1279_v50  ;;  %v1957_v17 = vld [vmem:[#allocation2 + $0xb8] sm:$0x8]  ;;  %v1625_v60 = vsel %vm6285_vm10, %v1620_v54, %v1624_v16  ;;  %v1629_v44 = vor.u32 %v1628_v24, %v1624_v16  ;;  %v1287_v19 = vpop.permute.xlu1 %1286 }
  0xe8   : > { %v2163_v22 = vshrl.u32 %v7080_v39, 16  ;;  %v755_v4 = vld [vmem:[#allocation2 + $0x130] sm:$0x8]  ;;  %1175 = vst.msk [vmem:[#allocation3 + $0xf8] sm:$0xf] %vm451_vm0, %v1111_v38  ;;  %v1534_v48 = vrot.slane %v1533_v29, 4  ;;  %v2080_v9 = vor.u32 %v2078_v37, %v7088_v28 }
  0xe9   : > { %v2084_v32 = vshrl.u32 %v7076_v47, 16  ;;  %v1091_v42 = vshrl.u32 %v755_v4, 16  ;;  %v2667_v58 = vld [vmem:[#allocation2 + $0x6c] sm:$0xf]  ;;  %v3753_v63 = vld [vmem:[#allocation2 + $0x70] sm:$0xf]  ;;  %1836 = vrot.lane.b32.xlu0 %v1625_v60, %s5938_s14 }
  0xea   : > { %1359 = vst.msk [vmem:[#allocation3 + $0xb0] sm:$0xf] %vm1336_vm12, %v1285_v41  ;;  %v1632_v33 = vshll.u32 %v1395_v55, 16  ;;  %v543_v57 = vsel %vm6240_vm5, 0, %v542_v0  ;;  %v5463_v46 = vrot.slane %v2070_v30, 11  ;;  %v2158_v35 = vshrl.u32 %v1957_v17, 16  ;;  %3824 = vrot.lane.b32.xlu1 %v3753_v63, %s5943_s17 }
  0xeb   : > { %v1959_v61 = vld [vmem:[#allocation2 + $0xc0] sm:$0xf]  ;;  %v5458_v2 = vrot.slane %v1091_v42, 11  ;;  %544 = vst [vmem:[#allocation2 + $0xc4] sm:$0x1] %v543_v57  ;;  %v7109_v3 = vrot.slane %v2163_v22, 7  ;;  %v1539_v18 = vsel %vm6285_vm10, %v1534_v48, %v1538_v51  ;;  %v1291_v16 = vpop.permute.xlu1 %1290 }
  0xec   : > { %1358 = vst.msk [vmem:[#allocation3 + $0xa8] sm:$0xf] %vm1336_vm12, %v1283_v52  ;;  %v2166_v21 = vshll.u32 %v7080_v39, 16  ;;  %v2668_v23 = vld [vmem:[#allocation2 + $0x70] sm:$0xf]  ;;  %v2800_v5 = vshrl.u32 %v2667_v58, 16  ;;  %v2081_v20 = vsel %vm6316_vm11, %v5463_v46, %v2080_v9 }
  0xed   : > { %v2803_v31 = vshll.u32 %v2667_v58, 16  ;;  %v2086_v6 = vrot.slane %v2084_v32, 7  ;;  %v2087_v26 = vshll.u32 %v7076_v47, 16  ;;  %v1102_v36 = vsel %vm6316_vm11, %v5458_v2, %v1101_v10  ;;  %1361 = vst.msk [vmem:[#allocation3 + $0xc0] sm:$0xf] %vm1336_vm12, %v1289_v27  ;;  %v1293_v47 = vpop.permute.xlu0 %1292  ;;  %2349 = vrot.lane.b32.xlu0 %v2081_v20, %s5939_s20 }
  0xee   : > { %v1630_v56 = vrot.slane %v1629_v44, 4  ;;  %v1634_v14 = vrot.slane %v1632_v33, 5  ;;  %v2172_v43 = vshrl.u32 %v1959_v61, 16  ;;  %1174 = vst.msk [vmem:[#allocation3 + $0xf0] sm:$0xf] %vm451_vm0, %v1102_v36  ;;  %v2809_v25 = vshll.u32 %v2668_v23, 16  ;;  %1822 = vrot.lane.b32.xlu1 %v1539_v18, %s5938_s14 }
  0xef   : > { %v2813_v53 = vshrl.u32 %v2668_v23, 16  ;;  %1360 = vst.msk [vmem:[#allocation3 + $0xb8] sm:$0xf] %vm1336_vm12, %v1287_v19  ;;  %v5467_v13 = vrot.slane %v2158_v35, 11  ;;  %v2168_v12 = vor.u32 %v2166_v21, %v7109_v3  ;;  %v2802_v8 = vrot.slane %v2800_v5, 4  ;;  %v1295_v4 = vpop.permute.xlu1 %1294 }
  0xf0   : > { %v2805_v15 = vrot.slane %v2803_v31, 5  ;;  %v2679_v29 = vld [vmem:[#allocation2 + $0xbc] sm:$0xf]  ;;  %v2082_v59 = vrot.slane %v7088_v28, 4  ;;  %v2089_v39 = vor.u32 %v2087_v26, %v2086_v6  ;;  %v1635_v1 = vsel %vm6285_vm10, %v1630_v56, %v1634_v14  ;;  %1363 = vst.msk [vmem:[#allocation3 + $0xd0] sm:$0xf] %vm1336_vm12, %v1293_v47 }
  0xf1   : > { %v2174_v62 = vrot.slane %v2172_v43, 7  ;;  %v2175_v54 = vshll.u32 %v1959_v61, 16  ;;  %v7131_v24 = vrot.slane %v2809_v25, 5  ;;  %v2815_v49 = vrot.slane %v2813_v53, 4  ;;  %v2680_v0 = vld [vmem:[#allocation2 + $0xc0] sm:$0xf]  ;;  %v1297_v38 = vpop.permute.xlu0 %1296 }
  0xf2   : > { %v2896_v50 = vshrl.u32 %v2679_v29, 16  ;;  %v2899_v55 = vshll.u32 %v2679_v29, 16  ;;  %1362 = vst.msk [vmem:[#allocation3 + $0xc8] sm:$0xf] %vm1336_vm12, %v1291_v16  ;;  %v2169_v30 = vsel %vm6316_vm11, %v5467_v13, %v2168_v12  ;;  %v2806_v28 = vor.u32 %v2805_v15, %v2802_v8  ;;  %1838 = vrot.lane.b32.xlu1 %v1635_v1, %s5938_s14  ;;  %1365 = vst.msk [vmem:[#allocation3 + $0xe0] sm:$0xf] %vm1336_vm12, %v1297_v38 }
  0xf3   : > { %v2090_v37 = vsel %vm6316_vm11, %v2082_v59, %v2089_v39  ;;  %v2170_v11 = vrot.slane %v7109_v3, 4  ;;  %v2177_v51 = vor.u32 %v2175_v54, %v2174_v62  ;;  %v2905_v17 = vshll.u32 %v2680_v0, 16  ;;  %2365 = vrot.lane.b32.xlu0 %v2169_v30, %s5939_s20  ;;  %v2470_v41 = vld [vmem:[#allocation2 + $0x6c] sm:$0xf]  ;;  %1364 = vst.msk [vmem:[#allocation3 + $0xd8] sm:$0xf] %vm1336_vm12, %v1295_v4  ;;  %v1299_v2 = vpop.permute.xlu1 %1298 }
  0xf4   : > { %v2909_v22 = vshrl.u32 %v2680_v0, 16  ;;  %v2816_v48 = vor.u32 %v2815_v49, %v7131_v24  ;;  %v2898_v32 = vrot.slane %v2896_v50, 4  ;;  %v2901_v42 = vrot.slane %v2899_v55, 5  ;;  %v7146_v58 = vld [vmem:[#allocation2 + $0x7c] sm:$0x8] }
  0xf5   : > { %v7144_v10 = vrot.slane %v2806_v28, 4  ;;  %v3939_v63 = vld [vmem:[#allocation2 + $0x30] sm:$0xf]  ;;  %v1301_v60 = vpop.permute.xlu0 %1300  ;;  %v7149_v44 = vld [vmem:[#allocation2 + $0x80] sm:$0xf]  ;;  %v2178_v52 = vsel %vm6316_vm11, %v2170_v11, %v2177_v51  ;;  %vm1900_vm13 = vcmask 388352  }
  0xf6   : > { %2351 = vrot.lane.b32.xlu1 %v2090_v37, %s5939_s20  ;;  %v7151_v33 = vld [vmem:[#allocation2 + $0x84] sm:$0xf]  ;;  %v3940_v57 = vld [vmem:[#allocation2 + $0x34] sm:$0xf]  ;;  %1367 = vst.msk [vmem:[#allocation3 + $0xf0] sm:$0xf] %vm1336_vm12, %v1301_v60  ;;  %v2902_v21 = vor.u32 %v2901_v42, %v2898_v32 }
  0xf7   : > { %v2478_v46 = vld [vmem:[#allocation2 + $0xbc] sm:$0xf]  ;;  %v2669_v9 = vld [vmem:[#allocation2 + $0x74] sm:$0x1]  ;;  %v7156_v35 = vrot.slane %v2905_v17, 5  ;;  %v2911_v61 = vrot.slane %v2909_v22, 4  ;;  %2542 = vrot.lane.b32.xlu0 %v2470_v41, %s5940_s29  ;;  %v2812_v31 = vsel %vm6285_vm10, %v7144_v10, %v7131_v24  ;;  %v1303_v15 = vpop.permute.xlu1 %1302 }
  0xf8   : > { %v7159_v3 = vrot.slane %v2816_v48, 4  ;;  %vm2429_vm14 = vcmask 519552   ;;  %v7161_v23 = vld [vmem:[#allocation2 + $0xd0] sm:$0xf]  ;;  %v3988_v5 = vshrl.u32 %v3939_v63, 16  ;;  %v3354_v27 = vshrl.u32 %v7146_v58, 16 }
  0xf9   : > { %1366 = vst.msk [vmem:[#allocation3 + $0xe8] sm:$0xf] %vm1336_vm12, %v1299_v2  ;;  %v3359_v6 = vshrl.u32 %v7149_v44, 16  ;;  %v3368_v26 = vshrl.u32 %v7151_v33, 16  ;;  %v3941_v36 = vld [vmem:[#allocation2 + $0x38] sm:$0x1]  ;;  %v1805_v56 = vpop.permute.xlu0 %1804  ;;  %v2912_v25 = vor.u32 %v2911_v61, %v7156_v35 }
  0xfa   : > { %2367 = vrot.lane.b32.xlu1 %v2178_v52, %s5939_s20  ;;  %v2471_v18 = vld [vmem:[#allocation2 + $0x70] sm:$0xf]  ;;  %v2819_v14 = vshll.u32 %v2669_v9, 16  ;;  %v3990_v43 = vrot.slane %v3988_v5, 4  ;;  %v3991_v19 = vshll.u32 %v3939_v63, 16  ;;  %v3997_v20 = vshll.u32 %v3940_v57, 16 }
  0xfb   : > { %1901 = vst.msk [vmem:[#allocation3] sm:$0xf] %vm1900_vm13, %v1805_v56  ;;  %v3362_v53 = vshll.u32 %v7149_v44, 16  ;;  %v3241_v13 = vld [vmem:[#allocation2 + $0xcc] sm:$0x8]  ;;  %v3447_v12 = vshrl.u32 %v7161_v23, 16  ;;  %2558 = vrot.lane.b32.xlu0 %v2478_v46, %s5940_s29  ;;  %v1807_v22 = vpop.permute.xlu1 %1806 }
  0xfc   : > { %v4001_v8 = vshrl.u32 %v3940_v57, 16  ;;  %v2903_v29 = vrot.slane %v2902_v21, 4  ;;  %v2681_v47 = vld [vmem:[#allocation2 + $0xc4] sm:$0x1]  ;;  %v3993_v59 = vrot.slane %v3991_v19, 5  ;;  %v3999_v39 = vrot.slane %v3997_v20, 5 }
  0xfd   : > { %v4007_v1 = vshll.u32 %v3941_v36, 16  ;;  %1368 = vst.msk [vmem:[#allocation3 + $0xf8] sm:$0xf] %vm1336_vm12, %v1303_v15  ;;  %v3361_v62 = vrot.slane %v3359_v6, 7  ;;  %v3370_v54 = vrot.slane %v3368_v26, 7  ;;  %v3371_v16 = vshll.u32 %v7151_v33, 16  ;;  %v1809_v0 = vpop.permute.xlu0 %1808 }
  0xfe   : > { %v4003_v24 = vrot.slane %v4001_v8, 4  ;;  %2544 = vrot.lane.b32.xlu1 %v2471_v18, %s5940_s29  ;;  %v2479_v49 = vld [vmem:[#allocation2 + $0xc0] sm:$0xf]  ;;  %v2821_v50 = vrot.slane %v2819_v14, 5  ;;  %v3442_v55 = vshrl.u32 %v3241_v13, 16  ;;  %v3450_v30 = vshll.u32 %v7161_v23, 16 }
  0xff   : > { %v3994_v28 = vor.u32 %v3993_v59, %v3990_v43  ;;  %1903 = vst.msk [vmem:[#allocation3 + $0x10] sm:$0xf] %vm1900_vm13, %v1809_v0  ;;  %v2915_v37 = vshll.u32 %v2681_v47, 16  ;;  %v7182_v38 = vrot.slane %v3447_v12, 7  ;;  %v7184_v11 = vld [vmem:[#allocation2 + $0xd4] sm:$0xf]  ;;  %3103 = vrot.lane.b32.xlu0 %v2812_v31, %s5941_s7  ;;  %v2908_v4 = vsel %vm6285_vm10, %v2903_v29, %v7156_v35 }
 0x100   : > { %v4004_v51 = vor.u32 %v4003_v24, %v3999_v39  ;;  %v4009_v17 = vrot.slane %v4007_v1, 5  ;;  %v2913_v41 = vrot.slane %v2912_v25, 4  ;;  %v5479_v48 = vrot.slane %v3354_v27, 11  ;;  %v1384_v32 = vld [vmem:[#allocation2 + $0x6c] sm:$0xf] }
 0x101   : > { %v3995_v42 = vrot.slane %v3994_v28, 4  ;;  %1902 = vst.msk [vmem:[#allocation3 + $0x8] sm:$0xf] %vm1900_vm13, %v1807_v22  ;;  %v3364_v10 = vor.u32 %v3362_v53, %v3361_v62  ;;  %v3366_v58 = vrot.slane %v3361_v62, 4  ;;  %v3373_v63 = vor.u32 %v3371_v16, %v3370_v54  ;;  %v2334_v33 = vpop.permute.xlu0 %2333  ;;  %v1385_v61 = vld [vmem:[#allocation2 + $0x70] sm:$0xf] }
 0x102   : > { %v4005_v60 = vrot.slane %v4004_v51, 4  ;;  %2560 = vrot.lane.b32.xlu1 %v2479_v49, %s5940_s29  ;;  %v2822_v44 = vsel %vm6285_vm10, %v7159_v3, %v2821_v50  ;;  %v5483_v57 = vrot.slane %v3442_v55, 11  ;;  %v3456_v52 = vshrl.u32 %v7184_v11, 16  ;;  %2430 = vst.msk [vmem:[#allocation3] sm:$0xf] %vm2429_vm14, %v2334_v33  ;;  %v1811_v3 = vpop.permute.xlu1 %1810 }
 0x103   : > { %v4000_v46 = vsel %vm6285_vm10, %v3995_v42, %v3999_v39  ;;  %v2917_v9 = vrot.slane %v2915_v37, 5  ;;  %v3452_v35 = vor.u32 %v3450_v30, %v7182_v38  ;;  %v1541_v2 = vshrl.u32 %v1384_v32, 16  ;;  %3119 = vrot.lane.b32.xlu0 %v2908_v4, %s5941_s7  ;;  %v1396_v5 = vld [vmem:[#allocation2 + $0xbc] sm:$0xf]  ;;  %v533_v31 = vld [vmem:[#allocation2 + $0x88] sm:$0x1] }
 0x104   : > { %v4010_v21 = vsel %vm6285_vm10, %v4005_v60, %v4009_v17  ;;  %4403 = vst.msk [vmem:[#allocation3 + $0x4] sm:$0xf] %vm451_vm0, %v4000_v46  ;;  %vm2622_vm15 = vcmask 650752   ;;  %v1544_v23 = vshll.u32 %v1384_v32, 16  ;;  %v3365_v27 = vsel %vm6316_vm11, %v5479_v48, %v3364_v10  ;;  %v1397_v36 = vld [vmem:[#allocation2 + $0xc0] sm:$0xf] }
 0x105   : > { %4404 = vst.msk [vmem:[#allocation3 + $0xc] sm:$0xf] %vm451_vm0, %v4010_v21  ;;  %v3374_v6 = vsel %vm6316_vm11, %v3366_v58, %v3373_v63  ;;  %vm3183_vm2 = vcmask 781952   ;;  %v3459_v26 = vshll.u32 %v7184_v11, 16  ;;  %v3942_v18 = vld [vmem:[#allocation2 + $0x44] sm:$0xf]  ;;  %v2527_v56 = vpop.permute.xlu0 %2526  ;;  %v2918_v25 = vsel %vm6285_vm10, %v2913_v41, %v2917_v9 }
 0x106   : > { %1904 = vst.msk [vmem:[#allocation3 + $0x18] sm:$0xf] %vm1900_vm13, %v1811_v3  ;;  %3105 = vrot.lane.b32.xlu1 %v2822_v44, %s5941_s7  ;;  %v3458_v14 = vrot.slane %v3456_v52, 7  ;;  %vm3713_vm3 = vcmask 913152   ;;  %v1550_v43 = vshll.u32 %v1385_v61, 16  ;;  %v1554_v19 = vshrl.u32 %v1385_v61, 16  ;;  %v2336_v15 = vpop.permute.xlu1 %2335 }
 0x107   : > { %v3943_v20 = vld [vmem:[#allocation2 + $0x48] sm:$0xf]  ;;  %2623 = vst.msk [vmem:[#allocation3] sm:$0xf] %vm2622_vm15, %v2527_v56  ;;  %v3453_v53 = vsel %vm6316_vm11, %v5483_v57, %v3452_v35  ;;  %v1543_v13 = vrot.slane %v1541_v2, 4  ;;  %v534_v12 = vsel %vm6240_vm5, 0, %v533_v31  ;;  %3633 = vrot.lane.b32.xlu0 %v3365_v27, %s5942_s18 }
 0x108   : > { %v3944_v8 = vld [vmem:[#allocation2 + $0x4c] sm:$0x1]  ;;  %v1546_v29 = vrot.slane %v1544_v23, 5  ;;  %v1637_v47 = vshrl.u32 %v1396_v5, 16  ;;  %535 = vst [vmem:[#allocation2 + $0x88] sm:$0x1] %v534_v12  ;;  %v3461_v28 = vor.u32 %v3459_v26, %v3458_v14 }
 0x109   : > { %v4012_v59 = vshrl.u32 %v3942_v18, 16  ;;  %v4015_v39 = vshll.u32 %v3942_v18, 16  ;;  %2431 = vst.msk [vmem:[#allocation3 + $0x8] sm:$0xf] %vm2429_vm14, %v2336_v15  ;;  %v1640_v1 = vshll.u32 %v1396_v5, 16  ;;  %v1646_v62 = vshll.u32 %v1397_v36, 16  ;;  %v3088_v24 = vpop.permute.xlu0 %3087 }
 0x10a   : > { %v4021_v54 = vshll.u32 %v3943_v20, 16  ;;  %v4025_v16 = vshrl.u32 %v3943_v20, 16  ;;  %3121 = vrot.lane.b32.xlu1 %v2918_v25, %s5941_s7  ;;  %v1650_v49 = vshrl.u32 %v1397_v36, 16  ;;  %v4031_v55 = vshll.u32 %v3944_v8, 16  ;;  %3184 = vst.msk [vmem:[#allocation3] sm:$0xf] %vm3183_vm2, %v3088_v24  ;;  %v2529_v17 = vpop.permute.xlu1 %2528 }
 0x10b   : > { %v4014_v0 = vrot.slane %v4012_v59, 4  ;;  %v4017_v50 = vrot.slane %v4015_v39, 5  ;;  %v3454_v30 = vrot.slane %v7182_v38, 4  ;;  %v545_v51 = vld [vmem:[#allocation2 + $0xd8] sm:$0x1]  ;;  %3649 = vrot.lane.b32.xlu0 %v3453_v53, %s5942_s18  ;;  %v1547_v4 = vor.u32 %v1546_v29, %v1543_v13 }
 0x10c   : > { %v4023_v37 = vrot.slane %v4021_v54, 5  ;;  %v4027_v11 = vrot.slane %v4025_v16, 4  ;;  %v3754_v22 = vld [vmem:[#allocation2 + $0x80] sm:$0xf]  ;;  %v7225_v41 = vrot.slane %v1550_v43, 5  ;;  %v1556_v48 = vrot.slane %v1554_v19, 4 }
 0x10d   : > { %v7227_v32 = vld [vmem:[#allocation2 + $0x80] sm:$0xf]  ;;  %v4018_v42 = vor.u32 %v4017_v50, %v4014_v0  ;;  %2624 = vst.msk [vmem:[#allocation3 + $0x8] sm:$0xf] %vm2622_vm15, %v2529_v17  ;;  %v1386_v10 = vld [vmem:[#allocation2 + $0x74] sm:$0x1]  ;;  %v3618_v44 = vpop.permute.xlu0 %3617  ;;  %v3462_v9 = vsel %vm6316_vm11, %v3454_v30, %v3461_v28 }
 0x10e   : > { %v1639_v58 = vrot.slane %v1637_v47, 4  ;;  %v1642_v38 = vrot.slane %v1640_v1, 5  ;;  %v4028_v63 = vor.u32 %v4027_v11, %v4023_v37  ;;  %v4033_v60 = vrot.slane %v4031_v55, 5  ;;  %3635 = vrot.lane.b32.xlu1 %v3374_v6, %s5942_s18  ;;  %3714 = vst.msk [vmem:[#allocation3] sm:$0xf] %vm3713_vm3, %v3618_v44  ;;  %v3090_v21 = vpop.permute.xlu1 %3089 }
 0x10f   : > { %v7231_v33 = vrot.slane %v1646_v62, 5  ;;  %v1652_v57 = vrot.slane %v1650_v49, 4  ;;  %v4019_v52 = vrot.slane %v4018_v42, 4  ;;  %v546_v46 = vsel %vm6240_vm5, 0, %v545_v51  ;;  %v1398_v35 = vld [vmem:[#allocation2 + $0xc4] sm:$0x1]  ;;  %3826 = vrot.lane.b32.xlu0 %v3754_v22, %s5943_s17 }
 0x110   : > { %v2097_v61 = vshrl.u32 %v7227_v32, 16  ;;  %v4029_v2 = vrot.slane %v4028_v63, 4  ;;  %547 = vst [vmem:[#allocation2 + $0xd8] sm:$0x1] %v546_v46  ;;  %vm3906_vm4 = vcmask 1044352   ;;  %v1560_v3 = vshll.u32 %v1386_v10, 16 }
 0x111   : > { %v1948_v23 = vld [vmem:[#allocation2 + $0x7c] sm:$0x8]  ;;  %v7240_v5 = vld [vmem:[#allocation2 + $0x84] sm:$0xf]  ;;  %v4024_v31 = vsel %vm6285_vm10, %v4019_v52, %v4023_v37  ;;  %3185 = vst.msk [vmem:[#allocation3 + $0x8] sm:$0xf] %vm3183_vm2, %v3090_v21  ;;  %v1557_v26 = vor.u32 %v1556_v48, %v7225_v41  ;;  %v1643_v36 = vor.u32 %v1642_v38, %v1639_v58  ;;  %v3811_v43 = vpop.permute.xlu0 %3810  ;;  %v1653_v19 = vor.u32 %v1652_v57, %v7231_v33 }
 0x112   : > { %v3762_v27 = vld [vmem:[#allocation2 + $0xd0] sm:$0xf]  ;;  %v1548_v6 = vrot.slane %v1547_v4, 4  ;;  %v4034_v56 = vsel %vm6285_vm10, %v4029_v2, %v4033_v60  ;;  %4405 = vst.msk [vmem:[#allocation3 + $0x14] sm:$0xf] %vm451_vm0, %v4024_v31  ;;  %3651 = vrot.lane.b32.xlu1 %v3462_v9, %s5942_s18  ;;  %v1656_v20 = vshll.u32 %v1398_v35, 16  ;;  %v3620_v15 = vpop.permute.xlu1 %3619 }
 0x113   : > { %v7246_v18 = vld [vmem:[#allocation2 + $0xd0] sm:$0xf]  ;;  %v3755_v14 = vld [vmem:[#allocation2 + $0x84] sm:$0xf]  ;;  %4406 = vst.msk [vmem:[#allocation3 + $0x1c] sm:$0xf] %vm451_vm0, %v4034_v56  ;;  %3842 = vrot.lane.b32.xlu0 %v3762_v27, %s5943_s17 }
 0x114   : > { %3907 = vst.msk [vmem:[#allocation3] sm:$0xf] %vm3906_vm4, %v3811_v43  ;;  %v2092_v25 = vshrl.u32 %v1948_v23, 16  ;;  %v7255_v53 = vrot.slane %v2097_v61, 7  ;;  %v2100_v13 = vshll.u32 %v7227_v32, 16  ;;  %v2106_v12 = vshrl.u32 %v7240_v5, 16 }
 0x115   : > { %v1960_v8 = vld [vmem:[#allocation2 + $0xcc] sm:$0x8]  ;;  %v2185_v29 = vshrl.u32 %v7246_v18, 16  ;;  %3715 = vst.msk [vmem:[#allocation3 + $0x8] sm:$0xf] %vm3713_vm3, %v3620_v15  ;;  %v1553_v47 = vsel %vm6285_vm10, %v1548_v6, %v7225_v41  ;;  %v1558_v59 = vrot.slane %v1557_v26, 4  ;;  %v2338_v54 = vpop.permute.xlu0 %2337 }
 0x116   : > { %v1562_v39 = vrot.slane %v1560_v3, 5  ;;  %v1644_v1 = vrot.slane %v1643_v36, 4  ;;  %v7265_v62 = vld [vmem:[#allocation2 + $0xd4] sm:$0xf]  ;;  %3828 = vrot.lane.b32.xlu1 %v3755_v14, %s5943_s17  ;;  %v7268_v16 = vrot.slane %v1653_v19, 4  ;;  %v7270_v24 = vrot.slane %v1656_v20, 5  ;;  %v3813_v11 = vpop.permute.xlu1 %3812 }
 0x117   : > { %v2180_v49 = vshrl.u32 %v1960_v8, 16  ;;  %v2670_v0 = vld [vmem:[#allocation2 + $0x80] sm:$0xf]  ;;  %v3763_v50 = vld [vmem:[#allocation2 + $0xd4] sm:$0xf]  ;;  %v5464_v55 = vrot.slane %v2092_v25, 11  ;;  %v2102_v30 = vor.u32 %v2100_v13, %v7255_v53  ;;  %1824 = vrot.lane.b32.xlu0 %v1553_v47, %s5938_s14 }
 0x118   : > { %2432 = vst.msk [vmem:[#allocation3 + $0x10] sm:$0xf] %vm2429_vm14, %v2338_v54  ;;  %v2108_v28 = vrot.slane %v2106_v12, 7  ;;  %v2109_v37 = vshll.u32 %v7240_v5, 16  ;;  %v7276_v51 = vrot.slane %v2185_v29, 7  ;;  %v2188_v17 = vshll.u32 %v7246_v18, 16 }
 0x119   : > { %v2194_v22 = vshrl.u32 %v7265_v62, 16  ;;  %v3945_v4 = vld [vmem:[#allocation2 + $0x58] sm:$0xf]  ;;  %3908 = vst.msk [vmem:[#allocation3 + $0x8] sm:$0xf] %vm3906_vm4, %v3813_v11  ;;  %v1563_v41 = vsel %vm6285_vm10, %v1558_v59, %v1562_v39  ;;  %v1649_v48 = vsel %vm6285_vm10, %v1644_v1, %v7231_v33  ;;  %v2824_v32 = vshrl.u32 %v2670_v0, 16  ;;  %v2531_v42 = vpop.permute.xlu0 %2530 }
 0x11a   : > { %3844 = vrot.lane.b32.xlu1 %v3763_v50, %s5943_s17  ;;  %v1659_v10 = vsel %vm6285_vm10, %v7268_v16, %v7270_v24  ;;  %vm4683_vm7 = vcmask 130048   ;;  %v2104_v58 = vrot.slane %v7255_v53, 4  ;;  %v5468_v38 = vrot.slane %v2180_v49, 11  ;;  %v3946_v63 = vld [vmem:[#allocation2 + $0x5c] sm:$0xf]  ;;  %v2340_v9 = vpop.permute.xlu1 %2339 }
 0x11b   : > { %2625 = vst.msk [vmem:[#allocation3 + $0x10] sm:$0xf] %vm2622_vm15, %v2531_v42  ;;  %v2103_v60 = vsel %vm6316_vm11, %v5464_v55, %v2102_v30  ;;  %v2111_v44 = vor.u32 %v2109_v37, %v2108_v28  ;;  %v2671_v33 = vld [vmem:[#allocation2 + $0x84] sm:$0xf]  ;;  %v2827_v57 = vshll.u32 %v2670_v0, 16  ;;  %v4036_v46 = vshrl.u32 %v3945_v4, 16  ;;  %1840 = vrot.lane.b32.xlu0 %v1649_v48, %s5938_s14 }
 0x11c   : > { %v3947_v52 = vld [vmem:[#allocation2 + $0x60] sm:$0x1]  ;;  %v2190_v35 = vor.u32 %v2188_v17, %v7276_v51  ;;  %v2196_v61 = vrot.slane %v2194_v22, 7  ;;  %v2197_v2 = vshll.u32 %v7265_v62, 16  ;;  %v2682_v21 = vld [vmem:[#allocation2 + $0xd0] sm:$0xf] }
 0x11d   : > { %v4039_v3 = vshll.u32 %v3945_v4, 16  ;;  %2433 = vst.msk [vmem:[#allocation3 + $0x18] sm:$0xf] %vm2429_vm14, %v2340_v9  ;;  %v2826_v23 = vrot.slane %v2824_v32, 4  ;;  %v4038_v5 = vrot.slane %v4036_v46, 4  ;;  %v4045_v31 = vshll.u32 %v3946_v63, 16  ;;  %v3092_v6 = vpop.permute.xlu0 %3091 }
 0x11e   : > { %v4049_v27 = vshrl.u32 %v3946_v63, 16  ;;  %1826 = vrot.lane.b32.xlu1 %v1563_v41, %s5938_s14  ;;  %v2833_v26 = vshll.u32 %v2671_v33, 16  ;;  %v2837_v36 = vshrl.u32 %v2671_v33, 16  ;;  %v4055_v56 = vshll.u32 %v3947_v52, 16  ;;  %3186 = vst.msk [vmem:[#allocation3 + $0x10] sm:$0xf] %vm3183_vm2, %v3092_v6  ;;  %v2533_v53 = vpop.permute.xlu1 %2532 }
 0x11f   : > { %v4041_v18 = vrot.slane %v4039_v3, 5  ;;  %v2829_v14 = vrot.slane %v2827_v57, 5  ;;  %v2683_v43 = vld [vmem:[#allocation2 + $0xd4] sm:$0xf]  ;;  %v2920_v19 = vshrl.u32 %v2682_v21, 16  ;;  %v4047_v20 = vrot.slane %v4045_v31, 5  ;;  %2353 = vrot.lane.b32.xlu0 %v2103_v60, %s5939_s20 }
 0x120   : > { %v4051_v25 = vrot.slane %v4049_v27, 4  ;;  %v5747_v13 = vld [vmem:[#allocation3] ss:$8 sps:$4 sm:$0xff]   ;;  %v5749_v12 = vld [vmem:[#allocation3 + $0x4] ss:$8 sps:$4 sm:$0xff]   ;;  %v2923_v8 = vshll.u32 %v2682_v21, 16  ;;  %v2191_v29 = vsel %vm6316_vm11, %v5468_v38, %v2190_v35  ;;  %v2112_v1 = vsel %vm6316_vm11, %v2104_v58, %v2111_v44 }
 0x121   : > { %v4042_v15 = vor.u32 %v4041_v18, %v4038_v5  ;;  %2626 = vst.msk [vmem:[#allocation3 + $0x18] sm:$0xf] %vm2622_vm15, %v2533_v53  ;;  %v2192_v47 = vrot.slane %v7276_v51, 4  ;;  %v4057_v39 = vrot.slane %v4055_v56, 5  ;;  %5532 = vmatprep.mubr.msk.bf16.mxu0 %vm4683_vm7, %v5749_v12  ;;  %v3622_v62 = vpop.permute.xlu0 %3621  ;;  %v2199_v54 = vor.u32 %v2197_v2, %v2196_v61  ;;  %v3233_v24 = vld [vmem:[#allocation2 + $0x94] sm:$0xf] }
 0x122   : > { %v4052_v59 = vor.u32 %v4051_v25, %v4047_v20  ;;  %1842 = vrot.lane.b32.xlu1 %v1659_v10, %s5938_s14  ;;  %v7310_v16 = vrot.slane %v2833_v26, 5  ;;  %4765 = vmatmul.mubr.bf16.vlgmr.msra.gmra.mxu0 %v5747_v13  ;;  %3716 = vst.msk [vmem:[#allocation3 + $0x10] sm:$0xf] %vm3713_vm3, %v3622_v62  ;;  %v2830_v0 = vor.u32 %v2829_v14, %v2826_v23  ;;  %v2839_v50 = vrot.slane %v2837_v36, 4  ;;  %v3094_v28 = vpop.permute.xlu1 %3093  ;;  %v2472_v37 = vld [vmem:[#allocation2 + $0x80] sm:$0xf] }
 0x123   : > { %v4043_v49 = vrot.slane %v4042_v15, 4  ;;  %v2929_v55 = vshll.u32 %v2683_v43, 16  ;;  %2369 = vrot.lane.b32.xlu0 %v2191_v29, %s5939_s20  ;;  %v2922_v11 = vrot.slane %v2920_v19, 4  ;;  %v2925_v51 = vrot.slane %v2923_v8, 5  ;;  %3187 = vst.msk [vmem:[#allocation3 + $0x18] sm:$0xf] %vm3183_vm2, %v3094_v28 }
 0x124   : > { %v4053_v30 = vrot.slane %v4052_v59, 4  ;;  %v2933_v17 = vshrl.u32 %v2683_v43, 16  ;;  %v2672_v4 = vld [vmem:[#allocation2 + $0x88] sm:$0x1]  ;;  %v3232_v41 = vld [vmem:[#allocation2 + $0x90] sm:$0x8]  ;;  %v2200_v10 = vsel %vm6316_vm11, %v2192_v47, %v2199_v54  ;;  %v2840_v38 = vor.u32 %v2839_v50, %v7310_v16 }
 0x125   : > { %v4048_v22 = vsel %vm6285_vm10, %v4043_v49, %v4047_v20  ;;  %v3381_v48 = vshrl.u32 %v3233_v24, 16  ;;  %v3815_v42 = vpop.permute.xlu0 %3814  ;;  %v2831_v58 = vrot.slane %v2830_v0, 4  ;;  %v7326_v63 = vrot.slane %v2929_v55, 5  ;;  %v2480_v44 = vld [vmem:[#allocation2 + $0xd0] sm:$0xf] }
 0x126   : > { %v4058_v32 = vsel %vm6285_vm10, %v4053_v30, %v4057_v39  ;;  %4407 = vst.msk [vmem:[#allocation3 + $0x24] sm:$0xf] %vm451_vm0, %v4048_v22  ;;  %2355 = vrot.lane.b32.xlu1 %v2112_v1, %s5939_s20  ;;  %v3624_v60 = vpop.permute.xlu1 %3623  ;;  %v2843_v33 = vshll.u32 %v2672_v4, 16  ;;  %v2926_v57 = vor.u32 %v2925_v51, %v2922_v11  ;;  %v2935_v52 = vrot.slane %v2933_v17, 4  ;;  %v2473_v9 = vld [vmem:[#allocation2 + $0x84] sm:$0xf] }
 0x127   : > { %4408 = vst.msk [vmem:[#allocation3 + $0x2c] sm:$0xf] %vm451_vm0, %v4058_v32  ;;  %2546 = vrot.lane.b32.xlu0 %v2472_v37, %s5940_s29  ;;  %v3376_v46 = vshrl.u32 %v3232_v41, 16  ;;  %v7330_v35 = vrot.slane %v3381_v48, 7  ;;  %v3384_v61 = vshll.u32 %v3233_v24, 16  ;;  %v2836_v27 = vsel %vm6285_vm10, %v2831_v58, %v7310_v16 }
 0x128   : > { %3909 = vst.msk [vmem:[#allocation3 + $0x10] sm:$0xf] %vm3906_vm4, %v3815_v42  ;;  %v7332_v2 = vld [vmem:[#allocation2 + $0x98] sm:$0xf]  ;;  %v3244_v21 = vld [vmem:[#allocation2 + $0xe0] sm:$0x8]  ;;  %v2936_v19 = vor.u32 %v2935_v52, %v7326_v63 }
 0x129   : > { %3717 = vst.msk [vmem:[#allocation3 + $0x18] sm:$0xf] %vm3713_vm3, %v3624_v60  ;;  %v1813_v3 = vpop.permute.xlu0 %1812  ;;  %v7335_v23 = vld [vmem:[#allocation2 + $0xe4] sm:$0xf]  ;;  %v536_v5 = vld [vmem:[#allocation2 + $0x9c] sm:$0x1]  ;;  %v7351_v25 = vor.u32 %v3384_v61, %v7330_v35 }
 0x12a   : > { %2371 = vrot.lane.b32.xlu1 %v2200_v10, %s5939_s20  ;;  %v3948_v31 = vld [vmem:[#allocation2 + $0x6c] sm:$0xf]  ;;  %1905 = vst.msk [vmem:[#allocation3 + $0x20] sm:$0xf] %vm1900_vm13, %v1813_v3  ;;  %v7341_v6 = vrot.slane %v2840_v38, 4  ;;  %v3817_v18 = vpop.permute.xlu1 %3816  ;;  %v7344_v56 = vrot.slane %v2843_v33, 5 }
 0x12b   : > { %v3949_v26 = vld [vmem:[#allocation2 + $0x70] sm:$0xf]  ;;  %v3950_v36 = vld [vmem:[#allocation2 + $0x74] sm:$0x1]  ;;  %2562 = vrot.lane.b32.xlu0 %v2480_v44, %s5940_s29  ;;  %v2927_v14 = vrot.slane %v2926_v57, 4  ;;  %v7347_v20 = vrot.slane %v3376_v46, 11 }
 0x12c   : > { %v2684_v43 = vld [vmem:[#allocation2 + $0xd8] sm:$0x1]  ;;  %3910 = vst.msk [vmem:[#allocation3 + $0x18] sm:$0xf] %vm3906_vm4, %v3817_v18  ;;  %v3390_v53 = vshrl.u32 %v7332_v2, 16  ;;  %v3469_v13 = vshrl.u32 %v7335_v23, 16  ;;  %v2846_v49 = vsel %vm6285_vm10, %v7341_v6, %v7344_v56 }
 0x12d   : > { %v537_v12 = vsel %vm6240_vm5, 0, %v536_v5  ;;  %v2342_v8 = vpop.permute.xlu0 %2341  ;;  %v3393_v15 = vshll.u32 %v7332_v2, 16  ;;  %v3464_v29 = vshrl.u32 %v3244_v21, 16  ;;  %v4060_v47 = vshrl.u32 %v3948_v31, 16  ;;  %v2481_v39 = vld [vmem:[#allocation2 + $0xd4] sm:$0xf] }
 0x12e   : > { %2548 = vrot.lane.b32.xlu1 %v2473_v9, %s5940_s29  ;;  %538 = vst [vmem:[#allocation2 + $0x9c] sm:$0x1] %v537_v12  ;;  %v4063_v59 = vshll.u32 %v3948_v31, 16  ;;  %2434 = vst.msk [vmem:[#allocation3 + $0x20] sm:$0xf] %vm2429_vm14, %v2342_v8  ;;  %v2939_v1 = vshll.u32 %v2684_v43, 16  ;;  %v1815_v24 = vpop.permute.xlu1 %1814  ;;  %v2932_v0 = vsel %vm6285_vm10, %v2927_v14, %v7326_v63  ;;  %v3387_v52 = vsel %vm6316_vm11, %v7347_v20, %v7351_v25 }
 0x12f   : > { %v4069_v62 = vshll.u32 %v3949_v26, 16  ;;  %v4073_v54 = vshrl.u32 %v3949_v26, 16  ;;  %v4079_v16 = vshll.u32 %v3950_v36, 16  ;;  %3107 = vrot.lane.b32.xlu0 %v2836_v27, %s5941_s7  ;;  %v7368_v50 = vld [vmem:[#allocation2 + $0xe8] sm:$0xf]  ;;  %v4062_v30 = vrot.slane %v4060_v47, 4 }
 0x130   : > { %v1387_v55 = vld [vmem:[#allocation2 + $0x80] sm:$0xf]  ;;  %v4065_v28 = vrot.slane %v4063_v59, 5  ;;  %1906 = vst.msk [vmem:[#allocation3 + $0x28] sm:$0xf] %vm1900_vm13, %v1815_v24  ;;  %v7371_v37 = vrot.slane %v3469_v13, 7 }
 0x131   : > { %v3472_v11 = vshll.u32 %v7335_v23, 16  ;;  %v4071_v51 = vrot.slane %v4069_v62, 5  ;;  %v4075_v17 = vrot.slane %v4073_v54, 4  ;;  %v548_v22 = vld [vmem:[#allocation2 + $0xec] sm:$0x1]  ;;  %v4437_v4 = vld [vmem:[#allocation3 + $0x10] sm:$0xff]  ;;  %v2535_v41 = vpop.permute.xlu0 %2534 }
 0x132   : > { %2564 = vrot.lane.b32.xlu1 %v2481_v39, %s5940_s29  ;;  %v2937_v48 = vrot.slane %v2936_v19, 4  ;;  %v3392_v32 = vrot.slane %v3390_v53, 7  ;;  %v5484_v42 = vrot.slane %v3464_v29, 11  ;;  %v4066_v10 = vor.u32 %v4065_v28, %v4062_v30  ;;  %2627 = vst.msk [vmem:[#allocation3 + $0x20] sm:$0xf] %vm2622_vm15, %v2535_v41  ;;  %v2344_v44 = vpop.permute.xlu1 %2343 }
 0x133   : > { %v2941_v58 = vrot.slane %v2939_v1, 5  ;;  %v3478_v38 = vshrl.u32 %v7368_v50, 16  ;;  %v4076_v63 = vor.u32 %v4075_v17, %v4071_v51  ;;  %v4081_v60 = vrot.slane %v4079_v16, 5  ;;  %v4438_v33 = vld [vmem:[#allocation3 + $0x18] sm:$0xff]  ;;  %3123 = vrot.lane.b32.xlu0 %v2932_v0, %s5941_s7  ;;  %2435 = vst.msk [vmem:[#allocation3 + $0x28] sm:$0xf] %vm2429_vm14, %v2344_v44 }
 0x134   : > { %v5750_v57 = vld [vmem:[#allocation3 + $0x14] ss:$8 sps:$4 sm:$0xff]   ;;  %v1565_v46 = vshrl.u32 %v1387_v55, 16  ;;  %v4067_v9 = vrot.slane %v4066_v10, 4  ;;  %v549_v61 = vsel %vm6240_vm5, 0, %v548_v22  ;;  %v5493_v2 = vcombine.low %v4437_v4, %v4438_v33 }
 0x135   : > { %v3474_v21 = vor.u32 %v3472_v11, %v7371_v37  ;;  %v1568_v3 = vshll.u32 %v1387_v55, 16  ;;  %v4077_v23 = vrot.slane %v4076_v63, 4  ;;  %550 = vst [vmem:[#allocation2 + $0xec] sm:$0x1] %v549_v61  ;;  %5533 = vmatprep.mubr.msk.bf16.mxu0 %vm4683_vm7, %v5750_v57  ;;  %v3096_v5 = vpop.permute.xlu0 %3095  ;;  %v3388_v31 = vrot.slane %v7330_v35, 4 }
 0x136   : > { %3109 = vrot.lane.b32.xlu1 %v2846_v49, %s5941_s7  ;;  %v3395_v27 = vor.u32 %v3393_v15, %v3392_v32  ;;  %v1399_v6 = vld [vmem:[#allocation2 + $0xd0] sm:$0xf]  ;;  %v4072_v26 = vsel %vm6285_vm10, %v4067_v9, %v4071_v51  ;;  %4773 = vmatmul.mubr.bf16.gmra.mxu0 %v5493_v2  ;;  %v2942_v36 = vsel %vm6285_vm10, %v2937_v48, %v2941_v58  ;;  %v3480_v18 = vrot.slane %v3478_v38, 7  ;;  %v1388_v14 = vld [vmem:[#allocation2 + $0x84] sm:$0xf]  ;;  %v2537_v35 = vpop.permute.xlu1 %2536 }
 0x137   : > { %3188 = vst.msk [vmem:[#allocation3 + $0x20] sm:$0xf] %vm3183_vm2, %v3096_v5  ;;  %v3481_v56 = vshll.u32 %v7368_v50, 16  ;;  %v4082_v43 = vsel %vm6285_vm10, %v4077_v23, %v4081_v60  ;;  %3637 = vrot.lane.b32.xlu0 %v3387_v52, %s5942_s18  ;;  %v1567_v19 = vrot.slane %v1565_v46, 4  ;;  %v3475_v20 = vsel %vm6316_vm11, %v5484_v42, %v3474_v21  ;;  %v1400_v53 = vld [vmem:[#allocation2 + $0xd4] sm:$0xf] }
 0x138   : > { %4409 = vst.msk [vmem:[#allocation3 + $0x34] sm:$0xf] %vm451_vm0, %v4072_v26  ;;  %4410 = vst.msk [vmem:[#allocation3 + $0x3c] sm:$0xf] %vm451_vm0, %v4082_v43  ;;  %v1570_v25 = vrot.slane %v1568_v3, 5  ;;  %v1661_v13 = vshrl.u32 %v1399_v6, 16  ;;  %v3396_v47 = vsel %vm6316_vm11, %v3388_v31, %v3395_v27 }
 0x139   : > { %2628 = vst.msk [vmem:[#allocation3 + $0x28] sm:$0xf] %vm2622_vm15, %v2537_v35  ;;  %v1664_v12 = vshll.u32 %v1399_v6, 16  ;;  %v3626_v8 = vpop.permute.xlu0 %3625  ;;  %v1574_v15 = vshll.u32 %v1388_v14, 16  ;;  %v1578_v29 = vshrl.u32 %v1388_v14, 16  ;;  %v3476_v59 = vrot.slane %v7371_v37, 4 }
 0x13a   : > { %3125 = vrot.lane.b32.xlu1 %v2942_v36, %s5941_s7  ;;  %3718 = vst.msk [vmem:[#allocation3 + $0x20] sm:$0xf] %vm3713_vm3, %v3626_v8  ;;  %v3483_v39 = vor.u32 %v3481_v56, %v3480_v18  ;;  %v3098_v1 = vpop.permute.xlu1 %3097  ;;  %v1670_v62 = vshll.u32 %v1400_v53, 16  ;;  %v1674_v54 = vshrl.u32 %v1400_v53, 16  ;;  %v1952_v16 = vld [vmem:[#allocation2 + $0x94] sm:$0xf]  ;;  %v1571_v49 = vor.u32 %v1570_v25, %v1567_v19 }
 0x13b   : > { %3653 = vrot.lane.b32.xlu0 %v3475_v20, %s5942_s18  ;;  %3189 = vst.msk [vmem:[#allocation3 + $0x28] sm:$0xf] %vm3183_vm2, %v3098_v1  ;;  %v3756_v24 = vld [vmem:[#allocation2 + $0x94] sm:$0xf]  ;;  %v1663_v0 = vrot.slane %v1661_v13, 4  ;;  %v1666_v50 = vrot.slane %v1664_v12, 5 }
 0x13c   : > { %v1576_v30 = vrot.slane %v1574_v15, 5  ;;  %v1580_v28 = vrot.slane %v1578_v29, 4  ;;  %v3484_v37 = vsel %vm6316_vm11, %v3476_v59, %v3483_v39  ;;  %v1389_v11 = vld [vmem:[#allocation2 + $0x88] sm:$0x1]  ;;  %v2119_v51 = vshrl.u32 %v1952_v16, 16 }
 0x13d   : > { %v3819_v55 = vpop.permute.xlu0 %3818  ;;  %v7415_v22 = vrot.slane %v1670_v62, 5  ;;  %v1676_v4 = vrot.slane %v1674_v54, 4  ;;  %v1951_v41 = vld [vmem:[#allocation2 + $0x90] sm:$0x8]  ;;  %v3764_v48 = vld [vmem:[#allocation2 + $0xe4] sm:$0xf]  ;;  %v1667_v42 = vor.u32 %v1666_v50, %v1663_v0 }
 0x13e   : > { %3639 = vrot.lane.b32.xlu1 %v3396_v47, %s5942_s18  ;;  %3911 = vst.msk [vmem:[#allocation3 + $0x20] sm:$0xf] %vm3906_vm4, %v3819_v55  ;;  %v3628_v17 = vpop.permute.xlu1 %3627  ;;  %v1572_v32 = vrot.slane %v1571_v49, 4  ;;  %v1401_v10 = vld [vmem:[#allocation2 + $0xd8] sm:$0x1]  ;;  %v1581_v38 = vor.u32 %v1580_v28, %v1576_v30  ;;  %v1584_v63 = vshll.u32 %v1389_v11, 16 }
 0x13f   : > { %3830 = vrot.lane.b32.xlu0 %v3756_v24, %s5943_s17  ;;  %3719 = vst.msk [vmem:[#allocation3 + $0x28] sm:$0xf] %vm3713_vm3, %v3628_v17  ;;  %v7419_v60 = vld [vmem:[#allocation2 + $0x98] sm:$0xf]  ;;  %v7421_v44 = vld [vmem:[#allocation2 + $0xe4] sm:$0xf]  ;;  %v1677_v61 = vor.u32 %v1676_v4, %v7415_v22 }
 0x140   : > { %v3757_v33 = vld [vmem:[#allocation2 + $0x98] sm:$0xf]  ;;  %v2114_v57 = vshrl.u32 %v1951_v41, 16  ;;  %v7424_v52 = vrot.slane %v2119_v51, 7  ;;  %v2122_v46 = vshll.u32 %v1952_v16, 16  ;;  %v1680_v2 = vshll.u32 %v1401_v10, 16 }
 0x141   : > { %v1817_v58 = vpop.permute.xlu0 %1816  ;;  %v1963_v21 = vld [vmem:[#allocation2 + $0xe0] sm:$0x8]  ;;  %v1577_v3 = vsel %vm6285_vm10, %v1572_v32, %v1576_v30  ;;  %v1668_v23 = vrot.slane %v1667_v42, 4  ;;  %v2128_v5 = vshrl.u32 %v7419_v60, 16  ;;  %v2207_v31 = vshrl.u32 %v7421_v44, 16 }
 0x142   : > { %3655 = vrot.lane.b32.xlu1 %v3484_v37, %s5942_s18  ;;  %1907 = vst.msk [vmem:[#allocation3 + $0x30] sm:$0xf] %vm1900_vm13, %v1817_v58  ;;  %v3821_v9 = vpop.permute.xlu1 %3820  ;;  %v1582_v6 = vrot.slane %v1581_v38, 4  ;;  %v1586_v26 = vrot.slane %v1584_v63, 5  ;;  %v3765_v36 = vld [vmem:[#allocation2 + $0xe8] sm:$0xf]  ;;  %v2124_v56 = vor.u32 %v2122_v46, %v7424_v52 }
 0x143   : > { %3846 = vrot.lane.b32.xlu0 %v3764_v48, %s5943_s17  ;;  %3912 = vst.msk [vmem:[#allocation3 + $0x28] sm:$0xf] %vm3906_vm4, %v3821_v9  ;;  %v5465_v18 = vrot.slane %v2114_v57, 11  ;;  %v2202_v14 = vshrl.u32 %v1963_v21, 16  ;;  %v7436_v43 = vld [vmem:[#allocation2 + $0xe8] sm:$0xf]  ;;  %v1673_v13 = vsel %vm6285_vm10, %v1668_v23, %v7415_v22 }
 0x144   : > { %v1678_v19 = vrot.slane %v1677_v61, 4  ;;  %v1682_v20 = vrot.slane %v1680_v2, 5  ;;  %v2131_v25 = vshll.u32 %v7419_v60, 16  ;;  %v2673_v53 = vld [vmem:[#allocation2 + $0x94] sm:$0xf]  ;;  %v2130_v12 = vrot.slane %v2128_v5, 7 }
 0x145   : > { %v2346_v27 = vpop.permute.xlu0 %2345  ;;  %v7444_v8 = vrot.slane %v2207_v31, 7  ;;  %v2210_v15 = vshll.u32 %v7421_v44, 16  ;;  %v3951_v29 = vld [vmem:[#allocation2 + $0x80] sm:$0xf]  ;;  %v1587_v47 = vsel %vm6285_vm10, %v1582_v6, %v1586_v26  ;;  %v4439_v59 = vld [vmem:[#allocation3 + $0x20] sm:$0xff]  ;;  %v2216_v1 = vshrl.u32 %v7436_v43, 16 }
 0x146   : > { %3832 = vrot.lane.b32.xlu1 %v3757_v33, %s5943_s17  ;;  %2436 = vst.msk [vmem:[#allocation3 + $0x30] sm:$0xf] %vm2429_vm14, %v2346_v27  ;;  %v1819_v35 = vpop.permute.xlu1 %1818  ;;  %v7451_v62 = vld [vmem:[#allocation2 + $0x98] sm:$0xf]  ;;  %v3952_v54 = vld [vmem:[#allocation2 + $0x84] sm:$0xf]  ;;  %v2125_v16 = vsel %vm6316_vm11, %v5465_v18, %v2124_v56  ;;  %v1683_v37 = vsel %vm6285_vm10, %v1678_v19, %v1682_v20  ;;  %v2133_v4 = vor.u32 %v2131_v25, %v2130_v12 }
 0x147   : > { %1828 = vrot.lane.b32.xlu0 %v1577_v3, %s5938_s14  ;;  %1908 = vst.msk [vmem:[#allocation3 + $0x38] sm:$0xf] %vm1900_vm13, %v1819_v35  ;;  %v2126_v24 = vrot.slane %v7424_v52, 4  ;;  %v5469_v49 = vrot.slane %v2202_v14, 11  ;;  %v2848_v0 = vshrl.u32 %v2673_v53, 16  ;;  %v2219_v11 = vshll.u32 %v7436_v43, 16 }
 0x148   : > { %v3953_v50 = vld [vmem:[#allocation2 + $0x88] sm:$0x1]  ;;  %v5752_v28 = vld [vmem:[#allocation3 + $0x24] ss:$8 sps:$4 sm:$0xff]   ;;  %v2851_v51 = vshll.u32 %v2673_v53, 16  ;;  %v4084_v17 = vshrl.u32 %v3951_v29, 16  ;;  %v2212_v41 = vor.u32 %v2210_v15, %v7444_v8 }
 0x149   : > { %v2539_v39 = vpop.permute.xlu0 %2538  ;;  %v2685_v48 = vld [vmem:[#allocation2 + $0xe4] sm:$0xf]  ;;  %v4087_v32 = vshll.u32 %v3951_v29, 16  ;;  %5534 = vmatprep.mubr.msk.bf16.mxu0 %vm4683_vm7, %v5752_v28  ;;  %v2218_v10 = vrot.slane %v2216_v1, 7  ;;  %v2857_v58 = vshll.u32 %v7451_v62, 16  ;;  %v4093_v63 = vshll.u32 %v3952_v54, 16 }
 0x14a   : > { %3848 = vrot.lane.b32.xlu1 %v3765_v36, %s5943_s17  ;;  %2629 = vst.msk [vmem:[#allocation3 + $0x30] sm:$0xf] %vm2622_vm15, %v2539_v39  ;;  %v2348_v55 = vpop.permute.xlu1 %2347  ;;  %v4440_v30 = vld [vmem:[#allocation3 + $0x28] sm:$0xff]  ;;  %v4086_v38 = vrot.slane %v4084_v17, 4  ;;  %v7467_v60 = vrot.slane %v2848_v0, 4  ;;  %v4097_v33 = vshrl.u32 %v3952_v54, 16  ;;  %v2213_v3 = vsel %vm6316_vm11, %v5469_v49, %v2212_v41 }
 0x14b   : > { %1844 = vrot.lane.b32.xlu0 %v1673_v13, %s5938_s14  ;;  %2437 = vst.msk [vmem:[#allocation3 + $0x38] sm:$0xf] %vm2429_vm14, %v2348_v55  ;;  %v5495_v22 = vcombine.low %v4439_v59, %v4440_v30  ;;  %v4089_v44 = vrot.slane %v4087_v32, 5  ;;  %v4103_v57 = vshll.u32 %v3953_v50, 16  ;;  %v2853_v46 = vrot.slane %v2851_v51, 5 }
 0x14c   : > { %v2861_v9 = vshrl.u32 %v7451_v62, 16  ;;  %v2944_v61 = vshrl.u32 %v2685_v48, 16  ;;  %v4095_v2 = vrot.slane %v4093_v63, 5  ;;  %v3963_v21 = vld [vmem:[#allocation2 + $0xd0] sm:$0xf]  ;;  %v2947_v23 = vshll.u32 %v2685_v48, 16 }
 0x14d   : > { %v3100_v42 = vpop.permute.xlu0 %3099  ;;  %4781 = vmatmul.mubr.bf16.gmra.mxu0 %v5495_v22  ;;  %v4090_v5 = vor.u32 %v4089_v44, %v4086_v38  ;;  %v4099_v31 = vrot.slane %v4097_v33, 4  ;;  %v2134_v27 = vsel %vm6316_vm11, %v2126_v24, %v2133_v4  ;;  %v2214_v26 = vrot.slane %v7444_v8, 4  ;;  %v2686_v56 = vld [vmem:[#allocation2 + $0xe8] sm:$0xf]  ;;  %v2474_v14 = vld [vmem:[#allocation2 + $0x94] sm:$0xf] }
 0x14e   : > { %1830 = vrot.lane.b32.xlu1 %v1587_v47, %s5938_s14  ;;  %3190 = vst.msk [vmem:[#allocation3 + $0x30] sm:$0xf] %vm3183_vm2, %v3100_v42  ;;  %v2541_v52 = vpop.permute.xlu1 %2540  ;;  %v2221_v36 = vor.u32 %v2219_v11, %v2218_v10  ;;  %v7478_v18 = vrot.slane %v2857_v58, 5  ;;  %v4105_v19 = vrot.slane %v4103_v57, 5  ;;  %v3964_v20 = vld [vmem:[#allocation2 + $0xd4] sm:$0xf]  ;;  %v2854_v13 = vor.u32 %v2853_v46, %v7467_v60 }
 0x14f   : > { %2357 = vrot.lane.b32.xlu0 %v2125_v16, %s5939_s20  ;;  %2630 = vst.msk [vmem:[#allocation3 + $0x38] sm:$0xf] %vm2622_vm15, %v2541_v52  ;;  %v4091_v43 = vrot.slane %v4090_v5, 4  ;;  %v4100_v35 = vor.u32 %v4099_v31, %v4095_v2  ;;  %v4180_v25 = vshrl.u32 %v3963_v21, 16  ;;  %v7483_v12 = vrot.slane %v2861_v9, 4 }
 0x150   : > { %v2946_v8 = vrot.slane %v2944_v61, 4  ;;  %v3965_v15 = vld [vmem:[#allocation2 + $0xd8] sm:$0x1]  ;;  %v4183_v29 = vshll.u32 %v3963_v21, 16  ;;  %v2949_v47 = vrot.slane %v2947_v23, 5  ;;  %v2953_v16 = vshll.u32 %v2686_v56, 16 }
 0x151   : > { %v3630_v6 = vpop.permute.xlu0 %3629  ;;  %v7486_v59 = vld [vmem:[#allocation2 + $0xa8] sm:$0xf]  ;;  %v4096_v39 = vsel %vm6285_vm10, %v4091_v43, %v4095_v2  ;;  %v4101_v1 = vrot.slane %v4100_v35, 4  ;;  %v4182_v62 = vrot.slane %v4180_v25, 4  ;;  %v2957_v24 = vshrl.u32 %v2686_v56, 16 }
 0x152   : > { %1846 = vrot.lane.b32.xlu1 %v1683_v37, %s5938_s14  ;;  %3720 = vst.msk [vmem:[#allocation3 + $0x30] sm:$0xf] %vm3713_vm3, %v3630_v6  ;;  %v3102_v53 = vpop.permute.xlu1 %3101  ;;  %v4185_v49 = vrot.slane %v4183_v29, 5  ;;  %v4189_v0 = vshll.u32 %v3964_v20, 16  ;;  %v2222_v50 = vsel %vm6316_vm11, %v2214_v26, %v2221_v36  ;;  %v2675_v55 = vld [vmem:[#allocation2 + $0x9c] sm:$0x1]  ;;  %v2864_v10 = vor.u32 %v7483_v12, %v7478_v18 }
 0x153   : > { %2373 = vrot.lane.b32.xlu0 %v2213_v3, %s5939_s20  ;;  %3191 = vst.msk [vmem:[#allocation3 + $0x38] sm:$0xf] %vm3183_vm2, %v3102_v53  ;;  %v4106_v30 = vsel %vm6285_vm10, %v4101_v1, %v4105_v19  ;;  %v4193_v28 = vshrl.u32 %v3964_v20, 16  ;;  %v4199_v37 = vshll.u32 %v3965_v15, 16  ;;  %v3235_v51 = vld [vmem:[#allocation2 + $0xa4] sm:$0x8]  ;;  %v2950_v58 = vor.u32 %v2949_v47, %v2946_v8 }
 0x154   : > { %4411 = vst.msk [vmem:[#allocation3 + $0x44] sm:$0xf] %vm451_vm0, %v4096_v39  ;;  %v3403_v17 = vshrl.u32 %v7486_v59, 16  ;;  %4412 = vst.msk [vmem:[#allocation3 + $0x4c] sm:$0xf] %vm451_vm0, %v4106_v30  ;;  %v4186_v22 = vor.u32 %v4185_v49, %v4182_v62  ;;  %v4191_v4 = vrot.slane %v4189_v0, 5 }
 0x155   : > { %v3823_v54 = vpop.permute.xlu0 %3822  ;;  %v551_v41 = vld [vmem:[#allocation2 + $0x100] sm:$0x1]  ;;  %v2475_v48 = vld [vmem:[#allocation2 + $0x98] sm:$0xf]  ;;  %v2482_v32 = vld [vmem:[#allocation2 + $0xe4] sm:$0xf] }
 0x156   : > { %2359 = vrot.lane.b32.xlu1 %v2134_v27, %s5939_s20  ;;  %3913 = vst.msk [vmem:[#allocation3 + $0x30] sm:$0xf] %vm3906_vm4, %v3823_v54  ;;  %v3632_v11 = vpop.permute.xlu1 %3631  ;;  %v2855_v42 = vrot.slane %v2854_v13, 4  ;;  %v7503_v38 = vld [vmem:[#allocation2 + $0xf8] sm:$0xf]  ;;  %v4195_v63 = vrot.slane %v4193_v28, 4 }
 0x157   : > { %2550 = vrot.lane.b32.xlu0 %v2474_v14, %s5940_s29  ;;  %3721 = vst.msk [vmem:[#allocation3 + $0x38] sm:$0xf] %vm3713_vm3, %v3632_v11  ;;  %v2867_v44 = vshll.u32 %v2675_v55, 16  ;;  %v2955_v33 = vrot.slane %v2953_v16, 5  ;;  %v2959_v57 = vrot.slane %v2957_v24, 4  ;;  %v4187_v46 = vrot.slane %v4186_v22, 4 }
 0x158   : > { %v7506_v52 = vld [vmem:[#allocation2 + $0xac] sm:$0xf]  ;;  %v3398_v9 = vshrl.u32 %v3235_v51, 16  ;;  %v3247_v61 = vld [vmem:[#allocation2 + $0xf4] sm:$0x8]  ;;  %v4196_v2 = vor.u32 %v4195_v63, %v4191_v4  ;;  %v4201_v21 = vrot.slane %v4199_v37, 5  ;;  %v2860_v36 = vsel %vm6285_vm10, %v2855_v42, %v7478_v18 }
 0x159   : > { %v1821_v60 = vpop.permute.xlu0 %1820  ;;  %v552_v3 = vsel %vm6240_vm5, 0, %v551_v41  ;;  %v2687_v5 = vld [vmem:[#allocation2 + $0xec] sm:$0x1]  ;;  %v7512_v31 = vrot.slane %v3403_v17, 7  ;;  %v3406_v27 = vshll.u32 %v7486_v59, 16  ;;  %v3491_v6 = vshrl.u32 %v7503_v38, 16 }
 0x15a   : > { %2375 = vrot.lane.b32.xlu1 %v2222_v50, %s5939_s20  ;;  %1909 = vst.msk [vmem:[#allocation3 + $0x40] sm:$0xf] %vm1900_vm13, %v1821_v60  ;;  %v4192_v26 = vsel %vm6285_vm10, %v4187_v46, %v4191_v4  ;;  %553 = vst [vmem:[#allocation2 + $0x100] sm:$0x1] %v552_v3  ;;  %v2951_v56 = vrot.slane %v2950_v58, 4  ;;  %v4197_v43 = vrot.slane %v4196_v2, 4  ;;  %v2960_v25 = vor.u32 %v2959_v57, %v2955_v33 }
 0x15b   : > { %2566 = vrot.lane.b32.xlu0 %v2482_v32, %s5940_s29  ;;  %v1390_v14 = vld [vmem:[#allocation2 + $0x94] sm:$0xf]  ;;  %4419 = vst.msk [vmem:[#allocation3 + $0x84] sm:$0xf] %vm451_vm0, %v4192_v26  ;;  %v2865_v19 = vrot.slane %v2864_v10, 4  ;;  %v2869_v20 = vrot.slane %v2867_v44, 5  ;;  %v3408_v47 = vor.u32 %v3406_v27, %v7512_v31 }
 0x15c   : > { %v3825_v23 = vpop.permute.xlu1 %3824  ;;  %v3412_v53 = vshrl.u32 %v7506_v52, 16  ;;  %v2483_v13 = vld [vmem:[#allocation2 + $0xe8] sm:$0xf]  ;;  %v2963_v12 = vshll.u32 %v2687_v5, 16  ;;  %v5481_v8 = vrot.slane %v3398_v9, 11  ;;  %v3486_v15 = vshrl.u32 %v3247_v61, 16 }
 0x15d   : > { %3914 = vst.msk [vmem:[#allocation3 + $0x38] sm:$0xf] %vm3906_vm4, %v3825_v23  ;;  %v1837_v35 = vpop.permute.xlu0 %1836  ;;  %v4202_v18 = vsel %vm6285_vm10, %v4197_v43, %v4201_v21  ;;  %v7530_v59 = vrot.slane %v3491_v6, 7  ;;  %v3494_v39 = vshll.u32 %v7503_v38, 16  ;;  %v3249_v1 = vld [vmem:[#allocation2 + $0xfc] sm:$0xf]  ;;  %v2956_v54 = vsel %vm6285_vm10, %v2951_v56, %v2955_v33 }
 0x15e   : > { %2552 = vrot.lane.b32.xlu1 %v2475_v48, %s5940_s29  ;;  %1917 = vst.msk [vmem:[#allocation3 + $0x80] sm:$0xf] %vm1900_vm13, %v1837_v35  ;;  %v1589_v62 = vshrl.u32 %v1390_v14, 16  ;;  %v1592_v16 = vshll.u32 %v1390_v14, 16  ;;  %v4441_v24 = vld [vmem:[#allocation3 + $0x30] sm:$0xff]  ;;  %v3414_v0 = vrot.slane %v3412_v53, 7  ;;  %v2870_v30 = vsel %vm6285_vm10, %v2865_v19, %v2869_v20 }
 0x15f   : > { %3111 = vrot.lane.b32.xlu0 %v2860_v36, %s5941_s7  ;;  %4420 = vst.msk [vmem:[#allocation3 + $0x8c] sm:$0xf] %vm451_vm0, %v4202_v18  ;;  %v3415_v50 = vshll.u32 %v7506_v52, 16  ;;  %v1391_v55 = vld [vmem:[#allocation2 + $0x98] sm:$0xf]  ;;  %v2961_v28 = vrot.slane %v2960_v25, 4  ;;  %v3409_v4 = vsel %vm6316_vm11, %v5481_v8, %v3408_v47  ;;  %v3496_v48 = vor.u32 %v3494_v39, %v7530_v59 }
 0x160   : > { %v1823_v29 = vpop.permute.xlu1 %1822  ;;  %v2965_v37 = vrot.slane %v2963_v12, 5  ;;  %v3500_v11 = vshrl.u32 %v3249_v1, 16  ;;  %v5754_v22 = vld [vmem:[#allocation3 + $0x34] ss:$8 sps:$4 sm:$0xff]   ;;  %v5485_v41 = vrot.slane %v3486_v15, 11  ;;  %v1591_v32 = vrot.slane %v1589_v62, 4 }
 0x161   : > { %1910 = vst.msk [vmem:[#allocation3 + $0x48] sm:$0xf] %vm1900_vm13, %v1823_v29  ;;  %v2350_v49 = vpop.permute.xlu0 %2349  ;;  %v1594_v10 = vrot.slane %v1592_v16, 5  ;;  %v1598_v58 = vshll.u32 %v1391_v55, 16  ;;  %v1602_v38 = vshrl.u32 %v1391_v55, 16  ;;  %5535 = vmatprep.mubr.msk.bf16.mxu0 %vm4683_vm7, %v5754_v22  ;;  %v3410_v44 = vrot.slane %v7512_v31, 4 }
 0x162   : > { %2568 = vrot.lane.b32.xlu1 %v2483_v13, %s5940_s29  ;;  %2438 = vst.msk [vmem:[#allocation3 + $0x40] sm:$0xf] %vm2429_vm14, %v2350_v49  ;;  %v1402_v63 = vld [vmem:[#allocation2 + $0xe4] sm:$0xf]  ;;  %v3417_v33 = vor.u32 %v3415_v50, %v3414_v0  ;;  %v2966_v57 = vsel %vm6285_vm10, %v2961_v28, %v2965_v37  ;;  %v3502_v52 = vrot.slane %v3500_v11, 7  ;;  %v3503_v46 = vshll.u32 %v3249_v1, 16 }
 0x163   : > { %3127 = vrot.lane.b32.xlu0 %v2956_v54, %s5941_s7  ;;  %v1403_v61 = vld [vmem:[#allocation2 + $0xe8] sm:$0xf]  ;;  %v1685_v2 = vshrl.u32 %v1402_v63, 16  ;;  %v1688_v21 = vshll.u32 %v1402_v63, 16  ;;  %v3497_v3 = vsel %vm6316_vm11, %v5485_v41, %v3496_v48  ;;  %v1595_v23 = vor.u32 %v1594_v10, %v1591_v32  ;;  %v1392_v31 = vld [vmem:[#allocation2 + $0x9c] sm:$0x1] }
 0x164   : > { %v1839_v51 = vpop.permute.xlu1 %1838  ;;  %v4442_v17 = vld [vmem:[#allocation3 + $0x38] sm:$0xff]  ;;  %v7557_v5 = vrot.slane %v1598_v58, 5  ;;  %v1604_v27 = vrot.slane %v1602_v38, 4  ;;  %v3418_v6 = vsel %vm6316_vm11, %v3410_v44, %v3417_v33  ;;  %v554_v36 = vld [vmem:[#allocation2 + $0x114] sm:$0x1]  ;;  %v3498_v56 = vrot.slane %v7530_v59, 4 }
 0x165   : > { %1918 = vst.msk [vmem:[#allocation3 + $0x88] sm:$0xf] %vm1900_vm13, %v1839_v51  ;;  %v5497_v42 = vcombine.low %v4441_v24, %v4442_v17  ;;  %v2366_v60 = vpop.permute.xlu0 %2365  ;;  %v3505_v14 = vor.u32 %v3503_v46, %v3502_v52  ;;  %v1694_v43 = vshll.u32 %v1403_v61, 16  ;;  %v1698_v35 = vshrl.u32 %v1403_v61, 16  ;;  %v1404_v19 = vld [vmem:[#allocation2 + $0xec] sm:$0x1] }
 0x166   : > { %3113 = vrot.lane.b32.xlu1 %v2870_v30, %s5941_s7  ;;  %2446 = vst.msk [vmem:[#allocation3 + $0x80] sm:$0xf] %vm2429_vm14, %v2366_v60  ;;  %v1608_v25 = vshll.u32 %v1392_v31, 16  ;;  %v1687_v53 = vrot.slane %v1685_v2, 4  ;;  %v1690_v13 = vrot.slane %v1688_v21, 5  ;;  %v7568_v15 = vrot.slane %v1595_v23, 4 }
 0x167   : > { %4789 = vmatmul.mubr.bf16.gmra.mxu0 %v5497_v42  ;;  %3641 = vrot.lane.b32.xlu0 %v3409_v4, %s5942_s18  ;;  %v7565_v12 = vld [vmem:[#allocation2 + $0xa8] sm:$0xf]  ;;  %v1605_v18 = vor.u32 %v1604_v27, %v7557_v5  ;;  %v555_v29 = vsel %vm6240_vm5, 0, %v554_v36  ;;  %v1704_v59 = vshll.u32 %v1404_v19, 16  ;;  %v1954_v39 = vld [vmem:[#allocation2 + $0xa4] sm:$0x8]  ;;  %v3506_v62 = vsel %vm6316_vm11, %v3498_v56, %v3505_v14 }
 0x168   : > { %v2352_v9 = vpop.permute.xlu1 %2351  ;;  %v3758_v8 = vld [vmem:[#allocation2 + $0xa8] sm:$0xf]  ;;  %556 = vst [vmem:[#allocation2 + $0x114] sm:$0x1] %v555_v29  ;;  %v3954_v1 = vld [vmem:[#allocation2 + $0x94] sm:$0xf]  ;;  %v1691_v30 = vor.u32 %v1690_v13, %v1687_v53  ;;  %v1601_v11 = vsel %vm6285_vm10, %v7568_v15, %v7557_v5 }
 0x169   : > { %2439 = vst.msk [vmem:[#allocation3 + $0x48] sm:$0xf] %vm2429_vm14, %v2352_v9  ;;  %v2543_v26 = vpop.permute.xlu0 %2542  ;;  %v7577_v54 = vrot.slane %v1694_v43, 5  ;;  %v1700_v16 = vrot.slane %v1698_v35, 4  ;;  %v2141_v24 = vshrl.u32 %v7565_v12, 16  ;;  %v7581_v55 = vrot.slane %v1608_v25, 5 }
 0x16a   : > { %3129 = vrot.lane.b32.xlu1 %v2966_v57, %s5941_s7  ;;  %2631 = vst.msk [vmem:[#allocation3 + $0x40] sm:$0xf] %vm2622_vm15, %v2543_v26  ;;  %v3955_v49 = vld [vmem:[#allocation2 + $0x98] sm:$0xf]  ;;  %v7583_v28 = vld [vmem:[#allocation2 + $0xac] sm:$0xf] }
 0x16b   : > { %3657 = vrot.lane.b32.xlu0 %v3497_v3, %s5942_s18  ;;  %v3766_v50 = vld [vmem:[#allocation2 + $0xf8] sm:$0xf]  ;;  %v3759_v37 = vld [vmem:[#allocation2 + $0xac] sm:$0xf]  ;;  %v7590_v51 = vrot.slane %v1605_v18, 4  ;;  %v2136_v17 = vshrl.u32 %v1954_v39, 16  ;;  %v1701_v38 = vor.u32 %v1700_v16, %v7577_v54 }
 0x16c   : > { %v2368_v20 = vpop.permute.xlu1 %2367  ;;  %v7592_v22 = vld [vmem:[#allocation2 + $0xf8] sm:$0xf]  ;;  %v4108_v4 = vshrl.u32 %v3954_v1, 16  ;;  %v7595_v48 = vrot.slane %v1704_v59, 5  ;;  %v3956_v32 = vld [vmem:[#allocation2 + $0x9c] sm:$0x1] }
 0x16d   : > { %2447 = vst.msk [vmem:[#allocation3 + $0x88] sm:$0xf] %vm2429_vm14, %v2368_v20  ;;  %v2559_v47 = vpop.permute.xlu0 %2558  ;;  %v4111_v42 = vshll.u32 %v3954_v1, 16  ;;  %v4117_v10 = vshll.u32 %v3955_v49, 16  ;;  %v4121_v58 = vshrl.u32 %v3955_v49, 16  ;;  %v7599_v63 = vrot.slane %v2141_v24, 7 }
 0x16e   : > { %3643 = vrot.lane.b32.xlu1 %v3418_v6, %s5942_s18  ;;  %2639 = vst.msk [vmem:[#allocation3 + $0x80] sm:$0xf] %vm2622_vm15, %v2559_v47  ;;  %v2144_v60 = vshll.u32 %v7565_v12, 16  ;;  %v2150_v44 = vshrl.u32 %v7583_v28, 16  ;;  %v1966_v33 = vld [vmem:[#allocation2 + $0xf4] sm:$0x8]  ;;  %v1611_v27 = vsel %vm6285_vm10, %v7590_v51, %v7581_v55 }
 0x16f   : > { %3834 = vrot.lane.b32.xlu0 %v3758_v8, %s5943_s17  ;;  %v1692_v52 = vrot.slane %v1691_v30, 4  ;;  %v4110_v46 = vrot.slane %v4108_v4, 4  ;;  %v4113_v9 = vrot.slane %v4111_v42, 5  ;;  %v4119_v61 = vrot.slane %v4117_v10, 5  ;;  %v3767_v5 = vld [vmem:[#allocation2 + $0xfc] sm:$0xf] }
 0x170   : > { %v2545_v0 = vpop.permute.xlu1 %2544  ;;  %v7605_v2 = vrot.slane %v2136_v17, 11  ;;  %v2229_v21 = vshrl.u32 %v7592_v22, 16  ;;  %v4123_v3 = vrot.slane %v4121_v58, 4  ;;  %v4127_v23 = vshll.u32 %v3956_v32, 16  ;;  %v3966_v56 = vld [vmem:[#allocation2 + $0xe4] sm:$0xf] }
 0x171   : > { %2632 = vst.msk [vmem:[#allocation3 + $0x48] sm:$0xf] %vm2622_vm15, %v2545_v0  ;;  %v3104_v41 = vpop.permute.xlu0 %3103  ;;  %v2153_v6 = vshll.u32 %v7583_v28, 16  ;;  %v2224_v26 = vshrl.u32 %v1966_v33, 16  ;;  %v4114_v36 = vor.u32 %v4113_v9, %v4110_v46  ;;  %v7615_v14 = vrot.slane %v1701_v38, 4 }
 0x172   : > { %3659 = vrot.lane.b32.xlu1 %v3506_v62, %s5942_s18  ;;  %3192 = vst.msk [vmem:[#allocation3 + $0x40] sm:$0xf] %vm3183_vm2, %v3104_v41  ;;  %v2146_v43 = vor.u32 %v2144_v60, %v7599_v63  ;;  %v7618_v35 = vld [vmem:[#allocation2 + $0xfc] sm:$0xf]  ;;  %v2676_v19 = vld [vmem:[#allocation2 + $0xa8] sm:$0xf]  ;;  %v4124_v20 = vor.u32 %v4123_v3, %v4119_v61  ;;  %v1697_v13 = vsel %vm6285_vm10, %v1692_v52, %v7577_v54 }
 0x173   : > { %3850 = vrot.lane.b32.xlu0 %v3766_v50, %s5943_s17  ;;  %v4129_v25 = vrot.slane %v4127_v23, 5  ;;  %v2148_v12 = vrot.slane %v7599_v63, 4  ;;  %v2152_v8 = vrot.slane %v2150_v44, 7  ;;  %v4115_v15 = vrot.slane %v4114_v36, 4  ;;  %v3967_v59 = vld [vmem:[#allocation2 + $0xe8] sm:$0xf] }
 0x174   : > { %v2561_v57 = vpop.permute.xlu1 %2560  ;;  %v7626_v18 = vrot.slane %v2229_v21, 7  ;;  %v2232_v29 = vshll.u32 %v7592_v22, 16  ;;  %v4125_v47 = vrot.slane %v4124_v20, 4  ;;  %v4204_v39 = vshrl.u32 %v3966_v56, 16  ;;  %v3968_v49 = vld [vmem:[#allocation2 + $0xec] sm:$0x1] }
 0x175   : > { %2640 = vst.msk [vmem:[#allocation3 + $0x88] sm:$0xf] %vm2622_vm15, %v2561_v57  ;;  %v3120_v31 = vpop.permute.xlu0 %3119  ;;  %v5470_v62 = vrot.slane %v2224_v26, 11  ;;  %v2238_v16 = vshrl.u32 %v7618_v35, 16  ;;  %v2872_v54 = vshrl.u32 %v2676_v19, 16  ;;  %v4120_v24 = vsel %vm6285_vm10, %v4115_v15, %v4119_v61 }
 0x176   : > { %3836 = vrot.lane.b32.xlu1 %v3759_v37, %s5943_s17  ;;  %3200 = vst.msk [vmem:[#allocation3 + $0x80] sm:$0xf] %vm3183_vm2, %v3120_v31  ;;  %v2875_v0 = vshll.u32 %v2676_v19, 16  ;;  %v4130_v50 = vsel %vm6285_vm10, %v4125_v47, %v4129_v25  ;;  %v4206_v55 = vrot.slane %v4204_v39, 4  ;;  %v4207_v30 = vshll.u32 %v3966_v56, 16 }
 0x177   : > { %1832 = vrot.lane.b32.xlu0 %v1601_v11, %s5938_s14  ;;  %4413 = vst.msk [vmem:[#allocation3 + $0x54] sm:$0xf] %vm451_vm0, %v4120_v24  ;;  %v1707_v37 = vsel %vm6285_vm10, %v7615_v14, %v7595_v48  ;;  %v2147_v11 = vsel %vm6316_vm11, %v7605_v2, %v2146_v43  ;;  %v2677_v51 = vld [vmem:[#allocation2 + $0xac] sm:$0xf]  ;;  %4414 = vst.msk [vmem:[#allocation3 + $0x5c] sm:$0xf] %vm451_vm0, %v4130_v50  ;;  %v2155_v4 = vor.u32 %v2153_v6, %v2152_v8 }
 0x178   : > { %v3106_v53 = vpop.permute.xlu1 %3105  ;;  %v4213_v17 = vshll.u32 %v3967_v59, 16  ;;  %v4217_v22 = vshrl.u32 %v3967_v59, 16  ;;  %v2234_v41 = vor.u32 %v2232_v29, %v7626_v18  ;;  %v2688_v32 = vld [vmem:[#allocation2 + $0xf8] sm:$0xf]  ;;  %v4209_v42 = vrot.slane %v4207_v30, 5 }
 0x179   : > { %3193 = vst.msk [vmem:[#allocation3 + $0x48] sm:$0xf] %vm3183_vm2, %v3106_v53  ;;  %v3634_v1 = vpop.permute.xlu0 %3633  ;;  %v4223_v10 = vshll.u32 %v3968_v49, 16  ;;  %v2240_v58 = vrot.slane %v2238_v16, 7  ;;  %v2241_v38 = vshll.u32 %v7618_v35, 16  ;;  %v2874_v44 = vrot.slane %v2872_v54, 4 }
 0x17a   : > { %3852 = vrot.lane.b32.xlu1 %v3767_v5, %s5943_s17  ;;  %3722 = vst.msk [vmem:[#allocation3 + $0x40] sm:$0xf] %vm3713_vm3, %v3634_v1  ;;  %v4215_v63 = vrot.slane %v4213_v17, 5  ;;  %v4219_v60 = vrot.slane %v4217_v22, 4  ;;  %v2877_v33 = vrot.slane %v2875_v0, 5  ;;  %v2881_v57 = vshll.u32 %v2677_v51, 16 }
 0x17b   : > { %1848 = vrot.lane.b32.xlu0 %v1697_v13, %s5938_s14  ;;  %v4210_v52 = vor.u32 %v4209_v42, %v4206_v55  ;;  %v2885_v9 = vshrl.u32 %v2677_v51, 16  ;;  %v2968_v61 = vshrl.u32 %v2688_v32, 16  ;;  %v4225_v21 = vrot.slane %v4223_v10, 5  ;;  %v2689_v6 = vld [vmem:[#allocation2 + $0xfc] sm:$0xf] }
 0x17c   : > { %v3122_v28 = vpop.permute.xlu1 %3121  ;;  %v4220_v2 = vor.u32 %v4219_v60, %v4215_v63  ;;  %v2235_v3 = vsel %vm6316_vm11, %v5470_v62, %v2234_v41  ;;  %v2971_v23 = vshll.u32 %v2688_v32, 16  ;;  %v2156_v31 = vsel %vm6316_vm11, %v2148_v12, %v2155_v4  ;;  %v557_v36 = vld [vmem:[#allocation2 + $0x128] sm:$0x1]  ;;  %v2678_v35 = vld [vmem:[#allocation2 + $0xb0] sm:$0x1] }
 0x17d   : > { %3201 = vst.msk [vmem:[#allocation3 + $0x88] sm:$0xf] %vm3183_vm2, %v3122_v28  ;;  %v3650_v48 = vpop.permute.xlu0 %3649  ;;  %v4211_v5 = vrot.slane %v4210_v52, 4  ;;  %v2236_v56 = vrot.slane %v7626_v18, 4  ;;  %v2243_v14 = vor.u32 %v2241_v38, %v2240_v58  ;;  %v2878_v43 = vor.u32 %v2877_v33, %v2874_v44  ;;  %v7660_v19 = vld [vmem:[#allocation2 + $0xbc] sm:$0xf] }
 0x17e   : > { %1834 = vrot.lane.b32.xlu1 %v1611_v27, %s5938_s14  ;;  %3730 = vst.msk [vmem:[#allocation3 + $0x80] sm:$0xf] %vm3713_vm3, %v3650_v48  ;;  %v4221_v26 = vrot.slane %v4220_v2, 4  ;;  %v7665_v53 = vrot.slane %v2881_v57, 5  ;;  %v2887_v13 = vrot.slane %v2885_v9, 4  ;;  %v2970_v12 = vrot.slane %v2968_v61, 4 }
 0x17f   : > { %2361 = vrot.lane.b32.xlu0 %v2147_v11, %s5939_s20  ;;  %v4216_v20 = vsel %vm6285_vm10, %v4211_v5, %v4215_v63  ;;  %v7667_v8 = vld [vmem:[#allocation2 + $0x10c] sm:$0xf]  ;;  %v2476_v18 = vld [vmem:[#allocation2 + $0xa8] sm:$0xf]  ;;  %v2973_v29 = vrot.slane %v2971_v23, 5  ;;  %v2977_v47 = vshll.u32 %v2689_v6, 16  ;;  %v2244_v54 = vsel %vm6316_vm11, %v2236_v56, %v2243_v14 }
 0x180   : > { %v3636_v46 = vpop.permute.xlu1 %3635  ;;  %v4226_v15 = vsel %vm6285_vm10, %v4221_v26, %v4225_v21  ;;  %4421 = vst.msk [vmem:[#allocation3 + $0x94] sm:$0xf] %vm451_vm0, %v4216_v20  ;;  %v2981_v59 = vshrl.u32 %v2689_v6, 16  ;;  %v558_v39 = vsel %vm6240_vm5, 0, %v557_v36  ;;  %v3238_v62 = vld [vmem:[#allocation2 + $0xb8] sm:$0x8] }
 0x181   : > { %3723 = vst.msk [vmem:[#allocation3 + $0x48] sm:$0xf] %vm3713_vm3, %v3636_v46  ;;  %v3827_v27 = vpop.permute.xlu0 %3826  ;;  %v3425_v16 = vshrl.u32 %v7660_v19, 16  ;;  %559 = vst [vmem:[#allocation2 + $0x128] sm:$0x1] %v558_v39  ;;  %v2891_v24 = vshll.u32 %v2678_v35, 16  ;;  %v2974_v51 = vor.u32 %v2973_v29, %v2970_v12 }
 0x182   : > { %1850 = vrot.lane.b32.xlu1 %v1707_v37, %s5938_s14  ;;  %3915 = vst.msk [vmem:[#allocation3 + $0x40] sm:$0xf] %vm3906_vm4, %v3827_v27  ;;  %v7681_v49 = vld [vmem:[#allocation2 + $0xc0] sm:$0xf]  ;;  %v3250_v0 = vld [vmem:[#allocation2 + $0x108] sm:$0x8]  ;;  %v2888_v37 = vor.u32 %v2887_v13, %v7665_v53 }
 0x183   : > { %2377 = vrot.lane.b32.xlu0 %v2235_v3, %s5939_s20  ;;  %4422 = vst.msk [vmem:[#allocation3 + $0x9c] sm:$0xf] %vm451_vm0, %v4226_v15  ;;  %v3513_v50 = vshrl.u32 %v7667_v8, 16  ;;  %v2484_v30 = vld [vmem:[#allocation2 + $0xf8] sm:$0xf]  ;;  %v2879_v28 = vrot.slane %v2878_v43, 4 }
 0x184   : > { %v3652_v25 = vpop.permute.xlu1 %3651  ;;  %v7686_v11 = vld [vmem:[#allocation2 + $0x110] sm:$0xf]  ;;  %v7689_v17 = vrot.slane %v2977_v47, 5  ;;  %v2983_v22 = vrot.slane %v2981_v59, 4  ;;  %v3420_v4 = vshrl.u32 %v3238_v62, 16  ;;  %v7692_v10 = vrot.slane %v3425_v16, 7 }
 0x185   : > { %3731 = vst.msk [vmem:[#allocation3 + $0x88] sm:$0xf] %vm3713_vm3, %v3652_v25  ;;  %v3843_v1 = vpop.permute.xlu0 %3842  ;;  %v1405_v41 = vld [vmem:[#allocation2 + $0xf8] sm:$0xf]  ;;  %v2477_v32 = vld [vmem:[#allocation2 + $0xac] sm:$0xf]  ;;  %v2884_v46 = vsel %vm6285_vm10, %v2879_v28, %v7665_v53 }
 0x186   : > { %2363 = vrot.lane.b32.xlu1 %v2156_v31, %s5939_s20  ;;  %3923 = vst.msk [vmem:[#allocation3 + $0x80] sm:$0xf] %vm3906_vm4, %v3843_v1  ;;  %v3428_v48 = vshll.u32 %v7660_v19, 16  ;;  %v3434_v58 = vshrl.u32 %v7681_v49, 16  ;;  %v3508_v38 = vshrl.u32 %v3250_v0, 16  ;;  %v7697_v63 = vrot.slane %v2891_v24, 5 }
 0x187   : > { %2554 = vrot.lane.b32.xlu0 %v2476_v18, %s5940_s29  ;;  %v7699_v60 = vrot.slane %v3513_v50, 7  ;;  %v3516_v44 = vshll.u32 %v7667_v8, 16  ;;  %v3522_v33 = vshrl.u32 %v7686_v11, 16  ;;  %v7703_v57 = vld [vmem:[#allocation2 + $0xfc] sm:$0xf]  ;;  %v7709_v9 = vrot.slane %v2888_v37, 4 }
 0x188   : > { %v3829_v55 = vpop.permute.xlu1 %3828  ;;  %v2690_v61 = vld [vmem:[#allocation2 + $0x100] sm:$0x1]  ;;  %v1709_v2 = vshrl.u32 %v1405_v41, 16  ;;  %v1712_v21 = vshll.u32 %v1405_v41, 16  ;;  %v2975_v3 = vrot.slane %v2974_v51, 4  ;;  %v2984_v23 = vor.u32 %v2983_v22, %v7689_v17 }
 0x189   : > { %3916 = vst.msk [vmem:[#allocation3 + $0x48] sm:$0xf] %vm3906_vm4, %v3829_v55  ;;  %v1825_v42 = vpop.permute.xlu0 %1824  ;;  %v7713_v5 = vrot.slane %v3420_v4, 11  ;;  %v3437_v31 = vshll.u32 %v7681_v49, 16  ;;  %v4443_v27 = vld [vmem:[#allocation3 + $0x40] sm:$0xff]  ;;  %v7718_v26 = vor.u32 %v3428_v48, %v7692_v10  ;;  %v3436_v36 = vrot.slane %v3434_v58, 7 }
 0x18a   : > { %2379 = vrot.lane.b32.xlu1 %v2244_v54, %s5939_s20  ;;  %1911 = vst.msk [vmem:[#allocation3 + $0x50] sm:$0xf] %vm1900_vm13, %v1825_v42  ;;  %v7720_v56 = vrot.slane %v3508_v38, 11  ;;  %v3525_v14 = vshll.u32 %v7686_v11, 16  ;;  %v2485_v43 = vld [vmem:[#allocation2 + $0xfc] sm:$0xf]  ;;  %v7725_v19 = vor.u32 %v3516_v44, %v7699_v60  ;;  %v2894_v8 = vsel %vm6285_vm10, %v7709_v9, %v7697_v63 }
 0x18b   : > { %2570 = vrot.lane.b32.xlu0 %v2484_v30, %s5940_s29  ;;  %v2987_v35 = vshll.u32 %v2690_v61, 16  ;;  %v3524_v20 = vrot.slane %v3522_v33, 7  ;;  %v1718_v25 = vshll.u32 %v7703_v57, 16  ;;  %v5756_v12 = vld [vmem:[#allocation3 + $0x44] ss:$8 sps:$4 sm:$0xff]   ;;  %v7733_v15 = vrot.slane %v1709_v2, 4 }
 0x18c   : > { %v3845_v52 = vpop.permute.xlu1 %3844  ;;  %v7735_v18 = vrot.slane %v1712_v21, 5  ;;  %v7737_v29 = vld [vmem:[#allocation2 + $0x108] sm:$0x8]  ;;  %v7739_v47 = vld [vmem:[#allocation2 + $0x10c] sm:$0xf]  ;;  %v2980_v39 = vsel %vm6285_vm10, %v2975_v3, %v7689_v17  ;;  %v7745_v1 = vrot.slane %v2984_v23, 4  ;;  %5536 = vmatprep.mubr.msk.bf16.mxu0 %vm4683_vm7, %v5756_v12  ;;  %v3431_v0 = vsel %vm6316_vm11, %v7713_v5, %v7718_v26 }
 0x18d   : > { %3924 = vst.msk [vmem:[#allocation3 + $0x88] sm:$0xf] %vm3906_vm4, %v3845_v52  ;;  %v1841_v6 = vpop.permute.xlu0 %1840  ;;  %v3432_v62 = vrot.slane %v7692_v10, 4  ;;  %v7748_v16 = vld [vmem:[#allocation2 + $0x100] sm:$0x1]  ;;  %v317_v54 = vld [vmem:[%s6086_s11 + $0xf0] sm:$0xff]  ;;  %v7758_v50 = vor.u32 %v3437_v31, %v3436_v36  ;;  %v3519_v51 = vsel %vm6316_vm11, %v7720_v56, %v7725_v19  ;;  %v7767_v17 = vor.u32 %v3525_v14, %v3524_v20 }
 0x18e   : > { %2556 = vrot.lane.b32.xlu1 %v2477_v32, %s5940_s29  ;;  %1919 = vst.msk [vmem:[#allocation3 + $0x90] sm:$0xf] %vm1900_vm13, %v1841_v6  ;;  %v318_v24 = vld [vmem:[%s6086_s11 + $0xf8] sm:$0xff]  ;;  %v3520_v55 = vrot.slane %v7699_v60, 4  ;;  %v1722_v30 = vshrl.u32 %v7703_v57, 16  ;;  %v2989_v11 = vrot.slane %v2987_v35, 5  ;;  %v1715_v58 = vor.u32 %v7735_v18, %v7733_v15 }
 0x18f   : > { %3115 = vrot.lane.b32.xlu0 %v2884_v46, %s5941_s7  ;;  %v560_v28 = vld [vmem:[#allocation2 + $0x13c] sm:$0x1]  ;;  %v515_v37 = vld [vmem:[#allocation2 + $0x144] sm:$0x8]  ;;  %v7769_v22 = vrot.slane %v1718_v25, 5  ;;  %v1728_v38 = vshll.u32 %v7748_v16, 16 }
 0x190   : > { %v1827_v53 = vpop.permute.xlu1 %1826  ;;  %v4444_v13 = vld [vmem:[#allocation3 + $0x48] sm:$0xff]  ;;  %v3957_v4 = vld [vmem:[#allocation2 + $0xa8] sm:$0xf]  ;;  %v3958_v41 = vld [vmem:[#allocation2 + $0xac] sm:$0xf]  ;;  %v2246_v57 = vshrl.u32 %v7737_v29, 16  ;;  %v2990_v31 = vsel %vm6285_vm10, %v7745_v1, %v2989_v11 }
 0x191   : > { %1912 = vst.msk [vmem:[#allocation3 + $0x58] sm:$0xf] %vm1900_vm13, %v1827_v53  ;;  %v5499_v59 = vcombine.low %v4443_v27, %v4444_v13  ;;  %v2354_v49 = vpop.permute.xlu0 %2353  ;;  %v5760_v48 = vld [vmem:[#allocation3 + $0x84] ss:$8 sps:$4 sm:$0xff]   ;;  %v5781_v63 = vld [vmem:[%s8627_s1] ss:$0 sm:$0xff] }
 0x192   : > { %2572 = vrot.lane.b32.xlu1 %v2485_v43, %s5940_s29  ;;  %2440 = vst.msk [vmem:[#allocation3 + $0x50] sm:$0xf] %vm2429_vm14, %v2354_v49  ;;  %v356_v44 = vmul.f32 %v5781_v63, %v317_v54  ;;  %v357_v33 = vmul.f32 %v5781_v63, %v318_v24  ;;  %v2251_v52 = vshrl.u32 %v7739_v47, 16  ;;  %v561_v46 = vsel %vm6240_vm5, 0, %v560_v28  ;;  %5540 = vmatprep.mubr.msk.bf16.mxu1 %vm4683_vm7, %v5760_v48  ;;  %v5782_v21 = vld [vmem:[%s8628_s2] ss:$0 sm:$0xff] }
 0x193   : > { %4797 = vmatmul.mubr.bf16.gmra.mxu0 %v5499_v59  ;;  %3131 = vrot.lane.b32.xlu0 %v2980_v39, %s5941_s7  ;;  %v516_v9 = vsel %vm6251_vm6, 0, %v515_v37  ;;  %v1724_v2 = vrot.slane %v1722_v30, 4  ;;  %562 = vst [vmem:[#allocation2 + $0x13c] sm:$0x1] %v561_v46  ;;  %v4132_v5 = vshrl.u32 %v3957_v4, 16  ;;  %v4135_v6 = vshll.u32 %v3957_v4, 16 }
 0x194   : > { %v1843_v32 = vpop.permute.xlu1 %1842  ;;  %v5758_v42 = vld [vmem:[#allocation3 + $0x80] ss:$8 sps:$4 sm:$0xff]   ;;  %v395_v3 = vadd.f32 %v5782_v21, %v356_v44  ;;  %517 = vst [vmem:[#allocation2 + $0x144] sm:$0x8] %v516_v9  ;;  %v396_v23 = vadd.f32 %v5782_v21, %v357_v33  ;;  %v4141_v26 = vshll.u32 %v3958_v41, 16  ;;  %v4145_v36 = vshrl.u32 %v3958_v41, 16 }
 0x195   : > { %1920 = vst.msk [vmem:[#allocation3 + $0x98] sm:$0xf] %vm1900_vm13, %v1843_v32  ;;  %v2370_v61 = vpop.permute.xlu0 %2369  ;;  %4829 = vmatmul.mubr.bf16.vlgmr.msra.gmra.mxu1 %v5758_v42  ;;  %v3959_v27 = vld [vmem:[#allocation2 + $0xb0] sm:$0x1]  ;;  %v2254_v14 = vshll.u32 %v7739_v47, 16  ;;  %v4134_v20 = vrot.slane %v4132_v5, 4  ;;  %v1725_v15 = vor.u32 %v1724_v2, %v7769_v22  ;;  %v3440_v39 = vsel %vm6316_vm11, %v3432_v62, %v7758_v50 }
 0x196   : > { %3117 = vrot.lane.b32.xlu1 %v2894_v8, %s5941_s7  ;;  %2448 = vst.msk [vmem:[#allocation3 + $0x90] sm:$0xf] %vm2429_vm14, %v2370_v61  ;;  %v7796_v43 = vld [vmem:[#allocation2 + $0x110] sm:$0xf]  ;;  %v427_v35 = vmax.f32 %v395_v3, 0.0  ;;  %v428_v19 = vmax.f32 %v396_v23, 0.0  ;;  %v3528_v30 = vsel %vm6316_vm11, %v3520_v55, %v7767_v17 }
 0x197   : > { %3645 = vrot.lane.b32.xlu0 %v3431_v0, %s5942_s18  ;;  %v7799_v25 = vrot.slane %v2251_v52, 7  ;;  %v4137_v53 = vrot.slane %v4135_v6, 5  ;;  %v4143_v13 = vrot.slane %v4141_v26, 5  ;;  %v4147_v12 = vrot.slane %v4145_v36, 4  ;;  %v2691_v18 = vld [vmem:[#allocation2 + $0x10c] sm:$0xf] }
 0x198   : > { %v2356_v56 = vpop.permute.xlu1 %2355  ;;  %v5618_v29 = vpack.c.bf16 %v427_v35, %v427_v35  ;;  %v5619_v47 = vpack.c.bf16 %v428_v19, %v428_v19  ;;  %v4151_v59 = vshll.u32 %v3959_v27, 16  ;;  %v3760_v1 = vld [vmem:[#allocation2 + $0xbc] sm:$0xf]  ;;  %v2260_v54 = vshrl.u32 %v7796_v43, 16  ;;  %v3969_v50 = vld [vmem:[#allocation2 + $0xf8] sm:$0xf] }
 0x199   : > { %2441 = vst.msk [vmem:[#allocation3 + $0x58] sm:$0xf] %vm2429_vm14, %v2356_v56  ;;  %v2547_v8 = vpop.permute.xlu0 %2546  ;;  %v4138_v24 = vor.u32 %v4137_v53, %v4134_v20  ;;  %v4148_v49 = vor.u32 %v4147_v12, %v4143_v13  ;;  %v7816_v10 = vrot.slane %v1715_v58, 4  ;;  %v7818_v28 = vrot.slane %v2246_v57, 11  ;;  %v2692_v11 = vld [vmem:[#allocation2 + $0x110] sm:$0xf] }
 0x19a   : > { %3133 = vrot.lane.b32.xlu1 %v2990_v31, %s5941_s7  ;;  %2633 = vst.msk [vmem:[#allocation3 + $0x50] sm:$0xf] %vm2622_vm15, %v2547_v8  ;;  %v4153_v62 = vrot.slane %v4151_v59, 5  ;;  %v7824_v37 = vor.u32 %v2254_v14, %v7799_v25  ;;  %v2992_v60 = vshrl.u32 %v2691_v18, 16  ;;  %v7827_v17 = vrot.slane %v1725_v15, 4 }
 0x19b   : > { %3661 = vrot.lane.b32.xlu0 %v3519_v51, %s5942_s18  ;;  %708 = vst.msk [vmem:[#allocation2 + $0x148] sm:$0xf] %vm451_vm0, %v5618_v29  ;;  %709 = vst.msk [vmem:[#allocation2 + $0x14c] sm:$0xf] %vm451_vm0, %v5619_v47  ;;  %v4139_v51 = vrot.slane %v4138_v24, 4  ;;  %v4149_v4 = vrot.slane %v4148_v49, 4 }
 0x19c   : > { %v2372_v0 = vpop.permute.xlu1 %2371  ;;  %v7831_v41 = vrot.slane %v1728_v38, 5  ;;  %v2263_v32 = vshll.u32 %v7796_v43, 16  ;;  %v2995_v42 = vshll.u32 %v2691_v18, 16  ;;  %v3970_v48 = vld [vmem:[#allocation2 + $0xfc] sm:$0xf]  ;;  %v2262_v63 = vrot.slane %v2260_v54, 7 }
 0x19d   : > { %2449 = vst.msk [vmem:[#allocation3 + $0x98] sm:$0xf] %vm2429_vm14, %v2372_v0  ;;  %v2563_v55 = vpop.permute.xlu0 %2562  ;;  %v3768_v58 = vld [vmem:[#allocation2 + $0x10c] sm:$0xf]  ;;  %v3253_v44 = vld [vmem:[#allocation2 + $0x11c] sm:$0x8]  ;;  %v4144_v57 = vsel %vm6285_vm10, %v4139_v51, %v4143_v13  ;;  %v4154_v52 = vsel %vm6285_vm10, %v4149_v4, %v4153_v62  ;;  %v1721_v38 = vsel %vm6285_vm10, %v7816_v10, %v7769_v22  ;;  %v2257_v3 = vsel %vm6316_vm11, %v7818_v28, %v7824_v37 }
 0x19e   : > { %3647 = vrot.lane.b32.xlu1 %v3440_v39, %s5942_s18  ;;  %2641 = vst.msk [vmem:[#allocation3 + $0x90] sm:$0xf] %vm2622_vm15, %v2563_v55  ;;  %v1408_v33 = vld [vmem:[#allocation2 + $0x10c] sm:$0xf]  ;;  %v4228_v46 = vshrl.u32 %v3969_v50, 16  ;;  %v2258_v9 = vrot.slane %v7799_v25, 4  ;;  %v1731_v35 = vsel %vm6285_vm10, %v7827_v17, %v7831_v41  ;;  %v7864_v19 = vor.u32 %v2263_v32, %v2262_v63 }
 0x19f   : > { %3838 = vrot.lane.b32.xlu0 %v3760_v1, %s5943_s17  ;;  %v3001_v61 = vshll.u32 %v2692_v11, 16  ;;  %v3005_v2 = vshrl.u32 %v2692_v11, 16  ;;  %v7845_v21 = vld [vmem:[#allocation2 + $0x120] sm:$0xf]  ;;  %4415 = vst.msk [vmem:[#allocation3 + $0x64] sm:$0xf] %vm451_vm0, %v4144_v57 }
 0x1a0   : > { %v2549_v16 = vpop.permute.xlu1 %2548  ;;  %4416 = vst.msk [vmem:[#allocation3 + $0x6c] sm:$0xf] %vm451_vm0, %v4154_v52  ;;  %v7854_v23 = vrot.slane %v2992_v60, 4  ;;  %v7856_v22 = vld [vmem:[#allocation2 + $0x124] sm:$0xf]  ;;  %v4231_v5 = vshll.u32 %v3969_v50, 16 }
 0x1a1   : > { %2634 = vst.msk [vmem:[#allocation3 + $0x58] sm:$0xf] %vm2622_vm15, %v2549_v16  ;;  %v4237_v31 = vshll.u32 %v3970_v48, 16  ;;  %v3108_v27 = vpop.permute.xlu0 %3107  ;;  %v2997_v6 = vrot.slane %v2995_v42, 5  ;;  %v1409_v26 = vld [vmem:[#allocation2 + $0x110] sm:$0xf] }
 0x1a2   : > { %3663 = vrot.lane.b32.xlu1 %v3528_v30, %s5942_s18  ;;  %v1733_v36 = vshrl.u32 %v1408_v33, 16  ;;  %v1736_v56 = vshll.u32 %v1408_v33, 16  ;;  %v4241_v14 = vshrl.u32 %v3970_v48, 16  ;;  %v3761_v43 = vld [vmem:[#allocation2 + $0xc0] sm:$0xf]  ;;  %v3535_v20 = vshrl.u32 %v7845_v21, 16 }
 0x1a3   : > { %3194 = vst.msk [vmem:[#allocation3 + $0x50] sm:$0xf] %vm3183_vm2, %v3108_v27  ;;  %v3971_v53 = vld [vmem:[#allocation2 + $0x100] sm:$0x1]  ;;  %v4230_v13 = vrot.slane %v4228_v46, 4  ;;  %3854 = vrot.lane.b32.xlu0 %v3768_v58, %s5943_s17  ;;  %v7868_v8 = vrot.slane %v3001_v61, 5  ;;  %v2998_v62 = vor.u32 %v2997_v6, %v7854_v23 }
 0x1a4   : > { %v2565_v12 = vpop.permute.xlu1 %2564  ;;  %v7870_v15 = vrot.slane %v3005_v2, 4  ;;  %v3530_v18 = vshrl.u32 %v3253_v44, 16  ;;  %v3544_v29 = vshrl.u32 %v7856_v22, 16  ;;  %v1742_v47 = vshll.u32 %v1409_v26, 16  ;;  %v3769_v10 = vld [vmem:[#allocation2 + $0x110] sm:$0xf] }
 0x1a5   : > { %2642 = vst.msk [vmem:[#allocation3 + $0x98] sm:$0xf] %vm2622_vm15, %v2565_v12  ;;  %v1746_v59 = vshrl.u32 %v1409_v26, 16  ;;  %v4233_v39 = vrot.slane %v4231_v5, 5  ;;  %v4239_v1 = vrot.slane %v4237_v31, 5  ;;  %v3124_v54 = vpop.permute.xlu0 %3123  ;;  %v1735_v24 = vrot.slane %v1733_v36, 4 }
 0x1a6   : > { %3840 = vrot.lane.b32.xlu1 %v3761_v43, %s5943_s17  ;;  %v1738_v49 = vrot.slane %v1736_v56, 5  ;;  %v4243_v0 = vrot.slane %v4241_v14, 4  ;;  %v4247_v30 = vshll.u32 %v3971_v53, 16  ;;  %3202 = vst.msk [vmem:[#allocation3 + $0x90] sm:$0xf] %vm3183_vm2, %v3124_v54  ;;  %v7877_v11 = vrot.slane %v3535_v20, 7 }
 0x1a7   : > { %v2693_v50 = vld [vmem:[#allocation2 + $0x114] sm:$0x1]  ;;  %v3538_v60 = vshll.u32 %v7845_v21, 16  ;;  %v4234_v51 = vor.u32 %v4233_v39, %v4230_v13  ;;  %1852 = vrot.lane.b32.xlu0 %v1721_v38, %s5938_s14  ;;  %v7881_v55 = vrot.slane %v3530_v18, 11  ;;  %v3546_v32 = vrot.slane %v3544_v29, 7 }
 0x1a8   : > { %v3110_v4 = vpop.permute.xlu1 %3109  ;;  %v3547_v42 = vshll.u32 %v7856_v22, 16  ;;  %v7884_v48 = vld [vmem:[#allocation2 + $0x120] sm:$0xf]  ;;  %v4244_v58 = vor.u32 %v4243_v0, %v4239_v1  ;;  %v7887_v63 = vrot.slane %v1742_v47, 5  ;;  %v1410_v44 = vld [vmem:[#allocation2 + $0x114] sm:$0x1]  ;;  %v3008_v16 = vor.u32 %v7870_v15, %v7868_v8 }
 0x1a9   : > { %3195 = vst.msk [vmem:[#allocation3 + $0x58] sm:$0xf] %vm3183_vm2, %v3110_v4  ;;  %v1748_v33 = vrot.slane %v1746_v59, 4  ;;  %v4235_v57 = vrot.slane %v4234_v51, 4  ;;  %v4249_v52 = vrot.slane %v4247_v30, 5  ;;  %v3638_v46 = vpop.permute.xlu0 %3637  ;;  %v3011_v38 = vshll.u32 %v2693_v50, 16 }
 0x1aa   : > { %3856 = vrot.lane.b32.xlu1 %v3769_v10, %s5943_s17  ;;  %v1739_v61 = vor.u32 %v1738_v49, %v1735_v24  ;;  %v4245_v2 = vrot.slane %v4244_v58, 4  ;;  %v563_v21 = vld [vmem:[#allocation2 + $0x150] sm:$0x1]  ;;  %3724 = vst.msk [vmem:[#allocation3 + $0x50] sm:$0xf] %vm3713_vm3, %v3638_v46  ;;  %v2999_v23 = vrot.slane %v2998_v62, 4  ;;  %v7894_v22 = vor.u32 %v3538_v60, %v7877_v11 }
 0x1ab   : > { %v2273_v5 = vshrl.u32 %v7884_v48, 16  ;;  %v4240_v31 = vsel %vm6285_vm10, %v4235_v57, %v4239_v1  ;;  %v461_v27 = vld [vmem:[#allocation2 + $0x158] sm:$0x8]  ;;  %2381 = vrot.lane.b32.xlu0 %v2257_v3, %s5939_s20  ;;  %v2486_v26 = vld [vmem:[#allocation2 + $0x10c] sm:$0xf]  ;;  %v3542_v36 = vrot.slane %v7877_v11, 4  ;;  %v3549_v56 = vor.u32 %v3547_v42, %v3546_v32 }
 0x1ac   : > { %v3126_v6 = vpop.permute.xlu1 %3125  ;;  %v1752_v14 = vshll.u32 %v1410_v44, 16  ;;  %v1972_v43 = vld [vmem:[#allocation2 + $0x11c] sm:$0x8]  ;;  %v4250_v20 = vsel %vm6285_vm10, %v4245_v2, %v4249_v52  ;;  %4423 = vst.msk [vmem:[#allocation3 + $0xa4] sm:$0xf] %vm451_vm0, %v4240_v31  ;;  %v1749_v53 = vor.u32 %v1748_v33, %v7887_v63  ;;  %v564_v28 = vsel %vm6240_vm5, 0, %v563_v21 }
 0x1ad   : > { %3203 = vst.msk [vmem:[#allocation3 + $0x98] sm:$0xf] %vm3183_vm2, %v3126_v6  ;;  %v7911_v13 = vld [vmem:[#allocation2 + $0x124] sm:$0xf]  ;;  %v7913_v12 = vld [vmem:[#allocation2 + $0x120] sm:$0xf]  ;;  %v3654_v37 = vpop.permute.xlu0 %3653  ;;  %v2266_v59 = vsel %vm6316_vm11, %v2258_v9, %v7864_v19  ;;  %v3004_v17 = vsel %vm6285_vm10, %v2999_v23, %v7868_v8  ;;  %v3541_v25 = vsel %vm6316_vm11, %v7881_v55, %v7894_v22  ;;  %v7950_v9 = vsel %vm6316_vm11, %v3542_v36, %v3549_v56 }
 0x1ae   : > { %4424 = vst.msk [vmem:[#allocation3 + $0xac] sm:$0xf] %vm451_vm0, %v4250_v20  ;;  %1854 = vrot.lane.b32.xlu1 %v1731_v35, %s5938_s14  ;;  %v7924_v3 = vrot.slane %v3008_v16, 4  ;;  %v7926_v15 = vrot.slane %v3011_v38, 5  ;;  %v7928_v18 = vrot.slane %v1739_v61, 4  ;;  %v462_v29 = vsel %vm6251_vm6, 0, %v461_v27 }
 0x1af   : > { %565 = vst [vmem:[#allocation2 + $0x150] sm:$0x1] %v564_v28  ;;  %v3960_v47 = vld [vmem:[#allocation2 + $0xbc] sm:$0xf]  ;;  %3732 = vst.msk [vmem:[#allocation3 + $0x90] sm:$0xf] %vm3713_vm3, %v3654_v37  ;;  %2574 = vrot.lane.b32.xlu0 %v2486_v26, %s5940_s29 }
 0x1b0   : > { %v2268_v41 = vshrl.u32 %v1972_v43, 16  ;;  %v7941_v35 = vrot.slane %v2273_v5, 7  ;;  %463 = vst [vmem:[#allocation2 + $0x158] sm:$0x8] %v462_v29  ;;  %v3961_v39 = vld [vmem:[#allocation2 + $0xc0] sm:$0xf]  ;;  %v3640_v45 = vpop.permute.xlu1 %3639  ;;  %v3014_v10 = vsel %vm6285_vm10, %v7924_v3, %v7926_v15  ;;  %v1745_v62 = vsel %vm6285_vm10, %v7928_v18, %v7887_v63 }
 0x1b1   : > { %v7952_v19 = vrot.slane %v1752_v14, 5  ;;  %v2276_v8 = vshll.u32 %v7884_v48, 16  ;;  %3725 = vst.msk [vmem:[#allocation3 + $0x58] sm:$0xf] %vm3713_vm3, %v3640_v45  ;;  %v2487_v1 = vld [vmem:[#allocation2 + $0x110] sm:$0xf]  ;;  %v3831_v30 = vpop.permute.xlu0 %3830 }
 0x1b2   : > { %v7956_v54 = vrot.slane %v1749_v53, 4  ;;  %v2282_v24 = vshrl.u32 %v7911_v13, 16  ;;  %v3016_v49 = vshrl.u32 %v7913_v12, 16  ;;  %v4156_v0 = vshrl.u32 %v3960_v47, 16  ;;  %2383 = vrot.lane.b32.xlu1 %v2266_v59, %s5939_s20  ;;  %v3962_v50 = vld [vmem:[#allocation2 + $0xc4] sm:$0x1] }
 0x1b3   : > { %v4159_v11 = vshll.u32 %v3960_v47, 16  ;;  %v4165_v60 = vshll.u32 %v3961_v39, 16  ;;  %v3972_v51 = vld [vmem:[#allocation2 + $0x10c] sm:$0xf]  ;;  %3917 = vst.msk [vmem:[#allocation3 + $0x50] sm:$0xf] %vm3906_vm4, %v3831_v30  ;;  %3135 = vrot.lane.b32.xlu0 %v3004_v17, %s5941_s7  ;;  %v7976_v44 = vor.u32 %v2276_v8, %v7941_v35 }
 0x1b4   : > { %v7970_v4 = vrot.slane %v2268_v41, 11  ;;  %v2280_v55 = vrot.slane %v7941_v35, 4  ;;  %v3019_v32 = vshll.u32 %v7913_v12, 16  ;;  %v4158_v42 = vrot.slane %v4156_v0, 4  ;;  %v3973_v48 = vld [vmem:[#allocation2 + $0x110] sm:$0xf]  ;;  %v3656_v58 = vpop.permute.xlu1 %3655 }
 0x1b5   : > { %v2285_v33 = vshll.u32 %v7911_v13, 16  ;;  %v7979_v57 = vld [vmem:[#allocation2 + $0x124] sm:$0xf]  ;;  %v4161_v52 = vrot.slane %v4159_v11, 5  ;;  %v4167_v46 = vrot.slane %v4165_v60, 5  ;;  %v4169_v16 = vshrl.u32 %v3961_v39, 16  ;;  %v3847_v21 = vpop.permute.xlu0 %3846 }
 0x1b6   : > { %3733 = vst.msk [vmem:[#allocation3 + $0x98] sm:$0xf] %vm3713_vm3, %v3656_v58  ;;  %v4175_v38 = vshll.u32 %v3962_v50, 16  ;;  %v4252_v61 = vshrl.u32 %v3972_v51, 16  ;;  %v4255_v2 = vshll.u32 %v3972_v51, 16  ;;  %2576 = vrot.lane.b32.xlu1 %v2487_v1, %s5940_s29  ;;  %v2284_v23 = vrot.slane %v2282_v24, 7 }
 0x1b7   : > { %v7983_v22 = vrot.slane %v3016_v49, 4  ;;  %v4162_v5 = vor.u32 %v4161_v52, %v4158_v42  ;;  %v3974_v31 = vld [vmem:[#allocation2 + $0x114] sm:$0x1]  ;;  %v4261_v27 = vshll.u32 %v3973_v48, 16  ;;  %3925 = vst.msk [vmem:[#allocation3 + $0x90] sm:$0xf] %vm3906_vm4, %v3847_v21  ;;  %3665 = vrot.lane.b32.xlu0 %v3541_v25, %s5942_s18  ;;  %v2279_v41 = vsel %vm6316_vm11, %v7970_v4, %v7976_v44 }
 0x1b8   : > { %v7986_v6 = vrot.slane %v3019_v32, 5  ;;  %v3025_v26 = vshll.u32 %v7979_v57, 16  ;;  %v4171_v36 = vrot.slane %v4169_v16, 4  ;;  %v4254_v56 = vrot.slane %v4252_v61, 4  ;;  %v3975_v14 = vld [vmem:[#allocation2 + $0x120] sm:$0xf]  ;;  %v3833_v43 = vpop.permute.xlu1 %3832 }
 0x1b9   : > { %v3770_v20 = vld [vmem:[#allocation2 + $0x120] sm:$0xf]  ;;  %v3029_v53 = vshrl.u32 %v7979_v57, 16  ;;  %v4163_v12 = vrot.slane %v4162_v5, 4  ;;  %v4177_v28 = vrot.slane %v4175_v38, 5  ;;  %v4257_v37 = vrot.slane %v4255_v2, 5  ;;  %v1829_v17 = vpop.permute.xlu0 %1828 }
 0x1ba   : > { %3918 = vst.msk [vmem:[#allocation3 + $0x58] sm:$0xf] %vm3906_vm4, %v3833_v43  ;;  %v4172_v3 = vor.u32 %v4171_v36, %v4167_v46  ;;  %v4263_v15 = vrot.slane %v4261_v27, 5  ;;  %v4265_v29 = vshrl.u32 %v3973_v48, 16  ;;  %v4271_v47 = vshll.u32 %v3974_v31, 16  ;;  %3137 = vrot.lane.b32.xlu1 %v3014_v10, %s5941_s7 }
 0x1bb   : > { %v3976_v59 = vld [vmem:[#allocation2 + $0x124] sm:$0xf]  ;;  %v4168_v39 = vsel %vm6285_vm10, %v4163_v12, %v4167_v46  ;;  %v4258_v45 = vor.u32 %v4257_v37, %v4254_v56  ;;  %v3977_v25 = vld [vmem:[#allocation2 + $0x128] sm:$0x1]  ;;  %v4276_v8 = vshrl.u32 %v3975_v14, 16  ;;  %v3022_v1 = vor.u32 %v7986_v6, %v7983_v22  ;;  %3858 = vrot.lane.b32.xlu0 %v3770_v20, %s5943_s17  ;;  %v4445_v46 = vld [vmem:[#allocation3 + $0x50] sm:$0xff] }
 0x1bc   : > { %1913 = vst.msk [vmem:[#allocation3 + $0x60] sm:$0xf] %vm1900_vm13, %v1829_v17  ;;  %v8002_v24 = vld [vmem:[#allocation2 + $0x134] sm:$0xf]  ;;  %v4173_v49 = vrot.slane %v4172_v3, 4  ;;  %v4267_v0 = vrot.slane %v4265_v29, 4  ;;  %v3849_v10 = vpop.permute.xlu1 %3848  ;;  %v2287_v22 = vor.u32 %v2285_v33, %v2284_v23 }
 0x1bd   : > { %4417 = vst.msk [vmem:[#allocation3 + $0x74] sm:$0xf] %vm451_vm0, %v4168_v39  ;;  %v4273_v30 = vrot.slane %v4271_v47, 5  ;;  %v4259_v50 = vrot.slane %v4258_v45, 4  ;;  %v4278_v11 = vrot.slane %v4276_v8, 4  ;;  %v4279_v60 = vshll.u32 %v3975_v14, 16  ;;  %v1845_v16 = vpop.permute.xlu0 %1844 }
 0x1be   : > { %v4285_v51 = vshll.u32 %v3976_v59, 16  ;;  %3926 = vst.msk [vmem:[#allocation3 + $0x98] sm:$0xf] %vm3906_vm4, %v3849_v10  ;;  %v8007_v32 = vld [vmem:[#allocation2 + $0x130] sm:$0x8]  ;;  %v4178_v42 = vsel %vm6285_vm10, %v4173_v49, %v4177_v28  ;;  %v4268_v48 = vor.u32 %v4267_v0, %v4263_v15  ;;  %v4289_v58 = vshrl.u32 %v3976_v59, 16  ;;  %3667 = vrot.lane.b32.xlu1 %v7950_v9, %s5942_s18 }
 0x1bf   : > { %v4295_v57 = vshll.u32 %v3977_v25, 16  ;;  %v3771_v52 = vld [vmem:[#allocation2 + $0x124] sm:$0xf]  ;;  %v3557_v38 = vshrl.u32 %v8002_v24, 16  ;;  %4418 = vst.msk [vmem:[#allocation3 + $0x7c] sm:$0xf] %vm451_vm0, %v4178_v42  ;;  %v4264_v61 = vsel %vm6285_vm10, %v4259_v50, %v4263_v15  ;;  %1856 = vrot.lane.b32.xlu0 %v1745_v62, %s5938_s14  ;;  %v1755_v15 = vsel %vm6285_vm10, %v7956_v54, %v7952_v19 }
 0x1c0   : > { %v4281_v2 = vrot.slane %v4279_v60, 5  ;;  %v4287_v21 = vrot.slane %v4285_v51, 5  ;;  %1921 = vst.msk [vmem:[#allocation3 + $0xa0] sm:$0xf] %vm1900_vm13, %v1845_v16  ;;  %v8020_v5 = vrot.slane %v3025_v26, 5  ;;  %v4269_v31 = vrot.slane %v4268_v48, 4  ;;  %v1831_v6 = vpop.permute.xlu1 %1830 }
 0x1c1   : > { %v8022_v9 = vld [vmem:[#allocation2 + $0x120] sm:$0xf]  ;;  %4425 = vst.msk [vmem:[#allocation3 + $0xb4] sm:$0xf] %vm451_vm0, %v4264_v61  ;;  %v4291_v27 = vrot.slane %v4289_v58, 4  ;;  %v8031_v13 = vrot.slane %v3029_v53, 4  ;;  %v2358_v18 = vpop.permute.xlu0 %2357  ;;  %v2288_v29 = vsel %vm6316_vm11, %v2280_v55, %v2287_v22 }
 0x1c2   : > { %v4446_v36 = vld [vmem:[#allocation3 + $0x58] sm:$0xff]  ;;  %v3552_v33 = vshrl.u32 %v8007_v32, 16  ;;  %v3560_v23 = vshll.u32 %v8002_v24, 16  ;;  %v4282_v26 = vor.u32 %v4281_v2, %v4278_v11  ;;  %1914 = vst.msk [vmem:[#allocation3 + $0x68] sm:$0xf] %vm1900_vm13, %v1831_v6  ;;  %v4274_v20 = vsel %vm6285_vm10, %v4269_v31, %v4273_v30  ;;  %3860 = vrot.lane.b32.xlu1 %v3771_v52, %s5943_s17  ;;  %v4453_v63 = vld [vmem:[#allocation3 + $0x90] sm:$0xff] }
 0x1c3   : > { %v5761_v56 = vld [vmem:[#allocation3 + $0x54] ss:$8 sps:$4 sm:$0xff]   ;;  %v5501_v14 = vcombine.low %v4445_v46, %v4446_v36  ;;  %v8036_v43 = vld [vmem:[#allocation2 + $0x138] sm:$0xf]  ;;  %v4292_v12 = vor.u32 %v4291_v27, %v4287_v21  ;;  %v4297_v28 = vrot.slane %v4295_v57, 5  ;;  %v8042_v62 = vrot.slane %v3022_v1, 4  ;;  %2385 = vrot.lane.b32.xlu0 %v2279_v41, %s5939_s20 }
 0x1c4   : > { %5537 = vmatprep.mubr.msk.bf16.mxu0 %vm4683_vm7, %v5761_v56  ;;  %v8044_v53 = vld [vmem:[#allocation2 + $0x128] sm:$0x1]  ;;  %v8046_v37 = vrot.slane %v3557_v38, 7  ;;  %4426 = vst.msk [vmem:[#allocation3 + $0xbc] sm:$0xf] %vm451_vm0, %v4274_v20  ;;  %v4283_v3 = vrot.slane %v4282_v26, 4  ;;  %v1847_v45 = vpop.permute.xlu1 %1846  ;;  %v3032_v51 = vor.u32 %v8031_v13, %v8020_v5 }
 0x1c5   : > { %4805 = vmatmul.mubr.bf16.gmra.mxu0 %v5501_v14  ;;  %2442 = vst.msk [vmem:[#allocation3 + $0x60] sm:$0xf] %vm2429_vm14, %v2358_v18  ;;  %v1757_v47 = vshrl.u32 %v8022_v9, 16  ;;  %v4293_v59 = vrot.slane %v4292_v12, 4  ;;  %v3978_v17 = vld [vmem:[#allocation2 + $0x134] sm:$0xf]  ;;  %v2374_v4 = vpop.permute.xlu0 %2373  ;;  %v3028_v52 = vsel %vm6285_vm10, %v8042_v62, %v8020_v5 }
 0x1c6   : > { %v3979_v39 = vld [vmem:[#allocation2 + $0x138] sm:$0xf]  ;;  %v4454_v25 = vld [vmem:[#allocation3 + $0x98] sm:$0xff]  ;;  %v4288_v35 = vsel %vm6285_vm10, %v4283_v3, %v4287_v21  ;;  %v4300_v19 = vshrl.u32 %v3978_v17, 16  ;;  %v4303_v54 = vshll.u32 %v3978_v17, 16  ;;  %v1760_v0 = vshll.u32 %v8022_v9, 16  ;;  %1858 = vrot.lane.b32.xlu1 %v1755_v15, %s5938_s14 }
 0x1c7   : > { %v5763_v8 = vld [vmem:[#allocation3 + $0x94] ss:$8 sps:$4 sm:$0xff]   ;;  %v4309_v55 = vshll.u32 %v3979_v39, 16  ;;  %1922 = vst.msk [vmem:[#allocation3 + $0xa8] sm:$0xf] %vm1900_vm13, %v1847_v45  ;;  %v5509_v1 = vcombine.low %v4453_v63, %v4454_v25  ;;  %v4298_v30 = vsel %vm6285_vm10, %v4293_v59, %v4297_v28  ;;  %v4313_v10 = vshrl.u32 %v3979_v39, 16 }
 0x1c8   : > { %v2488_v49 = vld [vmem:[#allocation2 + $0x120] sm:$0xf]  ;;  %4427 = vst.msk [vmem:[#allocation3 + $0xc4] sm:$0xf] %vm451_vm0, %v4288_v35  ;;  %5541 = vmatprep.mubr.msk.bf16.mxu1 %vm4683_vm7, %v5763_v8  ;;  %v3566_v44 = vshrl.u32 %v8036_v43, 16  ;;  %v4302_v50 = vrot.slane %v4300_v19, 4  ;;  %v2360_v57 = vpop.permute.xlu1 %2359  ;;  %v3562_v61 = vor.u32 %v3560_v23, %v8046_v37 }
 0x1c9   : > { %v1412_v41 = vld [vmem:[#allocation2 + $0x124] sm:$0xf]  ;;  %4428 = vst.msk [vmem:[#allocation3 + $0xcc] sm:$0xf] %vm451_vm0, %v4298_v30  ;;  %v4305_v11 = vrot.slane %v4303_v54, 5  ;;  %v4311_v60 = vrot.slane %v4309_v55, 5  ;;  %4837 = vmatmul.mubr.bf16.gmra.mxu1 %v5509_v1  ;;  %2578 = vrot.lane.b32.xlu0 %v2488_v49, %s5940_s29  ;;  %v2551_v9 = vpop.permute.xlu0 %2550 }
 0x1ca   : > { %2450 = vst.msk [vmem:[#allocation3 + $0xa0] sm:$0xf] %vm2429_vm14, %v2374_v4  ;;  %v3035_v32 = vshll.u32 %v8044_v53, 16  ;;  %v5488_v42 = vrot.slane %v3552_v33, 11  ;;  %v3980_v48 = vld [vmem:[#allocation2 + $0x13c] sm:$0x1]  ;;  %2387 = vrot.lane.b32.xlu1 %v2288_v29, %s5939_s20 }
 0x1cb   : > { %v4315_v58 = vrot.slane %v4313_v10, 4  ;;  %v3569_v46 = vshll.u32 %v8036_v43, 16  ;;  %v4306_v16 = vor.u32 %v4305_v11, %v4302_v50  ;;  %v4319_v38 = vshll.u32 %v3980_v48, 16  ;;  %2443 = vst.msk [vmem:[#allocation3 + $0x68] sm:$0xf] %vm2429_vm14, %v2360_v57 }
 0x1cc   : > { %v1759_v2 = vrot.slane %v1757_v47, 4  ;;  %v1762_v21 = vrot.slane %v1760_v0, 5  ;;  %v3568_v31 = vrot.slane %v3566_v44, 7  ;;  %v1766_v27 = vshll.u32 %v1412_v41, 16  ;;  %v1976_v6 = vld [vmem:[#allocation2 + $0x134] sm:$0xf]  ;;  %v2376_v24 = vpop.permute.xlu1 %2375 }
 0x1cd   : > { %v4316_v22 = vor.u32 %v4315_v58, %v4311_v60  ;;  %v4307_v5 = vrot.slane %v4306_v16, 4  ;;  %v4321_v36 = vrot.slane %v4319_v38, 5  ;;  %v2489_v56 = vld [vmem:[#allocation2 + $0x124] sm:$0xf]  ;;  %2635 = vst.msk [vmem:[#allocation3 + $0x60] sm:$0xf] %vm2622_vm15, %v2551_v9  ;;  %3139 = vrot.lane.b32.xlu0 %v3028_v52, %s5941_s7  ;;  %v3563_v20 = vsel %vm6316_vm11, %v5488_v42, %v3562_v61  ;;  %v2567_v62 = vpop.permute.xlu0 %2566 }
 0x1ce   : > { %v3033_v13 = vrot.slane %v3032_v51, 4  ;;  %v3037_v33 = vrot.slane %v3035_v32, 5  ;;  %v1770_v26 = vshrl.u32 %v1412_v41, 16  ;;  %v2697_v23 = vld [vmem:[#allocation2 + $0x134] sm:$0xf]  ;;  %v1763_v12 = vor.u32 %v1762_v21, %v1759_v2  ;;  %2580 = vrot.lane.b32.xlu1 %v2489_v56, %s5940_s29 }
 0x1cf   : > { %v4317_v14 = vrot.slane %v4316_v22, 4  ;;  %v4312_v43 = vsel %vm6285_vm10, %v4307_v5, %v4311_v60  ;;  %2451 = vst.msk [vmem:[#allocation3 + $0xa8] sm:$0xf] %vm2429_vm14, %v2376_v24  ;;  %v2295_v28 = vshrl.u32 %v1976_v6, 16  ;;  %v1977_v63 = vld [vmem:[#allocation2 + $0x138] sm:$0xf]  ;;  %v3571_v3 = vor.u32 %v3569_v46, %v3568_v31 }
 0x1d0   : > { %4429 = vst.msk [vmem:[#allocation3 + $0xd4] sm:$0xf] %vm451_vm0, %v4312_v43  ;;  %v3564_v53 = vrot.slane %v8046_v37, 4  ;;  %v1768_v15 = vrot.slane %v1766_v27, 5  ;;  %v1975_v29 = vld [vmem:[#allocation2 + $0x130] sm:$0x8]  ;;  %v3038_v47 = vsel %vm6285_vm10, %v3033_v13, %v3037_v33  ;;  %v2553_v45 = vpop.permute.xlu1 %2552 }
 0x1d1   : > { %v4322_v18 = vsel %vm6285_vm10, %v4317_v14, %v4321_v36  ;;  %2643 = vst.msk [vmem:[#allocation3 + $0xa0] sm:$0xf] %vm2622_vm15, %v2567_v62  ;;  %v1772_v59 = vrot.slane %v1770_v26, 4  ;;  %v3040_v17 = vshrl.u32 %v2697_v23, 16  ;;  %v3043_v39 = vshll.u32 %v2697_v23, 16  ;;  %3669 = vrot.lane.b32.xlu0 %v3563_v20, %s5942_s18  ;;  %v3112_v0 = vpop.permute.xlu0 %3111 }
 0x1d2   : > { %4430 = vst.msk [vmem:[#allocation3 + $0xdc] sm:$0xf] %vm451_vm0, %v4322_v18  ;;  %v3772_v25 = vld [vmem:[#allocation2 + $0x134] sm:$0xf]  ;;  %v1413_v8 = vld [vmem:[#allocation2 + $0x128] sm:$0x1]  ;;  %3141 = vrot.lane.b32.xlu1 %v3038_v47, %s5941_s7  ;;  %v3572_v49 = vsel %vm6316_vm11, %v3564_v53, %v3571_v3 }
 0x1d3   : > { %v2304_v35 = vshrl.u32 %v1977_v63, 16  ;;  %2636 = vst.msk [vmem:[#allocation3 + $0x68] sm:$0xf] %vm2622_vm15, %v2553_v45  ;;  %v1764_v37 = vrot.slane %v1763_v12, 4  ;;  %v2290_v19 = vshrl.u32 %v1975_v29, 16  ;;  %v2297_v54 = vrot.slane %v2295_v28, 7 }
 0x1d4   : > { %v2298_v55 = vshll.u32 %v1976_v6, 16  ;;  %v2698_v1 = vld [vmem:[#allocation2 + $0x138] sm:$0xf]  ;;  %3196 = vst.msk [vmem:[#allocation3 + $0x60] sm:$0xf] %vm3183_vm2, %v3112_v0  ;;  %v1773_v30 = vor.u32 %v1772_v59, %v1768_v15  ;;  %v1776_v10 = vshll.u32 %v1413_v8, 16  ;;  %v2569_v41 = vpop.permute.xlu1 %2568 }
 0x1d5   : > { %v3042_v4 = vrot.slane %v3040_v17, 4  ;;  %v3045_v44 = vrot.slane %v3043_v39, 5  ;;  %3862 = vrot.lane.b32.xlu0 %v3772_v25, %s5943_s17  ;;  %v2306_v50 = vrot.slane %v2304_v35, 7  ;;  %v2307_v11 = vshll.u32 %v1977_v63, 16  ;;  %2644 = vst.msk [vmem:[#allocation3 + $0xa8] sm:$0xf] %vm2622_vm15, %v2569_v41  ;;  %v3128_v52 = vpop.permute.xlu0 %3127 }
 0x1d6   : > { %v3049_v60 = vshll.u32 %v2698_v1, 16  ;;  %v3053_v51 = vshrl.u32 %v2698_v1, 16  ;;  %v1769_v32 = vsel %vm6285_vm10, %v1764_v37, %v1768_v15  ;;  %v5473_v42 = vrot.slane %v2290_v19, 11  ;;  %v8117_v58 = vld [vmem:[#allocation2 + $0x148] sm:$0xf]  ;;  %3671 = vrot.lane.b32.xlu1 %v3572_v49, %s5942_s18 }
 0x1d7   : > { %v2300_v48 = vor.u32 %v2298_v55, %v2297_v54  ;;  %v3773_v57 = vld [vmem:[#allocation2 + $0x138] sm:$0xf]  ;;  %3204 = vst.msk [vmem:[#allocation3 + $0xa0] sm:$0xf] %vm3183_vm2, %v3128_v52  ;;  %v1774_v46 = vrot.slane %v1773_v30, 4  ;;  %v1778_v16 = vrot.slane %v1776_v10, 5  ;;  %v3046_v61 = vor.u32 %v3045_v44, %v3042_v4 }
 0x1d8   : > { %v2302_v38 = vrot.slane %v2297_v54, 4  ;;  %v1414_v2 = vld [vmem:[#allocation2 + $0x134] sm:$0xf]  ;;  %v3114_v21 = vpop.permute.xlu1 %3113  ;;  %v2309_v22 = vor.u32 %v2307_v11, %v2306_v50  ;;  %v8122_v9 = vrot.slane %v3049_v60, 5  ;;  %v3055_v31 = vrot.slane %v3053_v51, 4 }
 0x1d9   : > { %1860 = vrot.lane.b32.xlu0 %v1769_v32, %s5938_s14  ;;  %v3259_v27 = vld [vmem:[#allocation2 + $0x144] sm:$0x8]  ;;  %v3579_v6 = vshrl.u32 %v8117_v58, 16  ;;  %3197 = vst.msk [vmem:[#allocation3 + $0x68] sm:$0xf] %vm3183_vm2, %v3114_v21  ;;  %v2301_v5 = vsel %vm6316_vm11, %v5473_v42, %v2300_v48  ;;  %v3642_v36 = vpop.permute.xlu0 %3641  ;;  %v1781_v56 = vshrl.u32 %v1414_v2, 16  ;;  %v1779_v33 = vsel %vm6285_vm10, %v1774_v46, %v1778_v16 }
 0x1da   : > { %3864 = vrot.lane.b32.xlu1 %v3773_v57, %s5943_s17  ;;  %v1784_v13 = vshll.u32 %v1414_v2, 16  ;;  %3726 = vst.msk [vmem:[#allocation3 + $0x60] sm:$0xf] %vm3713_vm3, %v3642_v36  ;;  %v2490_v26 = vld [vmem:[#allocation2 + $0x134] sm:$0xf]  ;;  %v3047_v14 = vrot.slane %v3046_v61, 4  ;;  %v2310_v12 = vsel %vm6316_vm11, %v2302_v38, %v2309_v22  ;;  %v3056_v28 = vor.u32 %v3055_v31, %v8122_v9 }
 0x1db   : > { %v2699_v24 = vld [vmem:[#allocation2 + $0x13c] sm:$0x1]  ;;  %v3574_v23 = vshrl.u32 %v3259_v27, 16  ;;  %v8132_v43 = vld [vmem:[#allocation2 + $0x14c] sm:$0xf]  ;;  %v8138_v63 = vrot.slane %v3579_v6, 7 }
 0x1dc   : > { %v3130_v20 = vpop.permute.xlu1 %3129  ;;  %v3582_v18 = vshll.u32 %v8117_v58, 16  ;;  %v3981_v62 = vld [vmem:[#allocation2 + $0x148] sm:$0xf]  ;;  %v3982_v53 = vld [vmem:[#allocation2 + $0x14c] sm:$0xf]  ;;  %v3059_v39 = vshll.u32 %v2699_v24, 16  ;;  %v3052_v1 = vsel %vm6285_vm10, %v3047_v14, %v8122_v9 }
 0x1dd   : > { %2389 = vrot.lane.b32.xlu0 %v2301_v5, %s5939_s20  ;;  %3205 = vst.msk [vmem:[#allocation3 + $0xa8] sm:$0xf] %vm3183_vm2, %v3130_v20  ;;  %v1415_v3 = vld [vmem:[#allocation2 + $0x138] sm:$0xf]  ;;  %v4324_v15 = vshrl.u32 %v3981_v62, 16  ;;  %v4327_v29 = vshll.u32 %v3981_v62, 16  ;;  %v3658_v17 = vpop.permute.xlu0 %3657 }
 0x1de   : > { %v4333_v47 = vshll.u32 %v3982_v53, 16  ;;  %v4337_v59 = vshrl.u32 %v3982_v53, 16  ;;  %1862 = vrot.lane.b32.xlu1 %v1779_v33, %s5938_s14  ;;  %v3588_v45 = vshrl.u32 %v8132_v43, 16  ;;  %v1783_v25 = vrot.slane %v1781_v56, 4  ;;  %3734 = vst.msk [vmem:[#allocation3 + $0xa0] sm:$0xf] %vm3713_vm3, %v3658_v17 }
 0x1df   : > { %v1786_v8 = vrot.slane %v1784_v13, 5  ;;  %v4326_v35 = vrot.slane %v4324_v15, 4  ;;  %v4329_v37 = vrot.slane %v4327_v29, 5  ;;  %v5489_v49 = vrot.slane %v3574_v23, 11  ;;  %v3983_v10 = vld [vmem:[#allocation2 + $0x150] sm:$0x1] }
 0x1e0   : > { %v4335_v19 = vrot.slane %v4333_v47, 5  ;;  %v4339_v54 = vrot.slane %v4337_v59, 4  ;;  %v3644_v55 = vpop.permute.xlu1 %3643  ;;  %v1790_v0 = vshll.u32 %v1415_v3, 16  ;;  %v1794_v30 = vshrl.u32 %v1415_v3, 16  ;;  %v8154_v48 = vld [vmem:[#allocation2 + $0x148] sm:$0xf] }
 0x1e1   : > { %2582 = vrot.lane.b32.xlu0 %v2490_v26, %s5940_s29  ;;  %3727 = vst.msk [vmem:[#allocation3 + $0x68] sm:$0xf] %vm3713_vm3, %v3644_v55  ;;  %v3584_v4 = vor.u32 %v3582_v18, %v8138_v63  ;;  %v4330_v44 = vor.u32 %v4329_v37, %v4326_v35  ;;  %v4343_v50 = vshll.u32 %v3983_v10, 16  ;;  %v3835_v11 = vpop.permute.xlu0 %3834  ;;  %v3057_v60 = vrot.slane %v3056_v28, 4  ;;  %v2491_v57 = vld [vmem:[#allocation2 + $0x138] sm:$0xf] }
 0x1e2   : > { %v4340_v41 = vor.u32 %v4339_v54, %v4335_v19  ;;  %2391 = vrot.lane.b32.xlu1 %v2310_v12, %s5939_s20  ;;  %v3061_v51 = vrot.slane %v3059_v39, 5  ;;  %v3591_v32 = vshll.u32 %v8132_v43, 16  ;;  %v1787_v42 = vor.u32 %v1786_v8, %v1783_v25  ;;  %v4766_v58 = vpop.f32.mrf.mxu0  ;;  %3919 = vst.msk [vmem:[#allocation3 + $0x60] sm:$0xf] %vm3906_vm4, %v3835_v11  ;;  %v8162_v9 = vld [vmem:[#allocation2 + $0x14c] sm:$0xf] }
 0x1e3   : > { %v3590_v52 = vrot.slane %v3588_v45, 7  ;;  %v4331_v46 = vrot.slane %v4330_v44, 4  ;;  %v4345_v38 = vrot.slane %v4343_v50, 5  ;;  %v5620_v61 = vpack.c.bf16 %v4766_v58, %v4766_v58  ;;  %v2700_v31 = vld [vmem:[#allocation2 + $0x148] sm:$0xf] }
 0x1e4   : > { %v4341_v16 = vrot.slane %v4340_v41, 4  ;;  %v3660_v2 = vpop.permute.xlu1 %3659  ;;  %v8158_v21 = vrot.slane %v1790_v0, 5  ;;  %v8160_v22 = vrot.slane %v1794_v30, 4  ;;  %v4768_v27 = vpop.f32.mrf.mxu0  ;;  %v3585_v6 = vsel %vm6316_vm11, %v5489_v49, %v3584_v4  ;;  %v1978_v23 = vld [vmem:[#allocation2 + $0x144] sm:$0x8] }
 0x1e5   : > { %3143 = vrot.lane.b32.xlu0 %v3052_v1, %s5941_s7  ;;  %3735 = vst.msk [vmem:[#allocation3 + $0xa8] sm:$0xf] %vm3713_vm3, %v3660_v2  ;;  %v2317_v5 = vshrl.u32 %v8154_v48, 16  ;;  %v4336_v36 = vsel %vm6285_vm10, %v4331_v46, %v4335_v19  ;;  %v5124_v13 = vmul.f32 %v4766_v58, %v4766_v58  ;;  %v3062_v33 = vsel %vm6285_vm10, %v3057_v60, %v3061_v51  ;;  %v3851_v26 = vpop.permute.xlu0 %3850  ;;  %v1416_v12 = vld [vmem:[#allocation2 + $0x13c] sm:$0x1] }
 0x1e6   : > { %v4346_v56 = vsel %vm6285_vm10, %v4341_v16, %v4345_v38  ;;  %5021 = vst.msk [vmem:[%s8174_s19] sm:$0xf] %vm451_vm0, %v5620_v61  ;;  %2584 = vrot.lane.b32.xlu1 %v2491_v57, %s5940_s29  ;;  %v3586_v14 = vrot.slane %v8138_v63, 4  ;;  %v8182_v24 = vrot.slane %v1787_v42, 4  ;;  %4431 = vst.msk [vmem:[#allocation3 + $0xe4] sm:$0xf] %vm451_vm0, %v4336_v36  ;;  %v4769_v43 = vpop.f32.mrf.mxu0  ;;  %v3593_v20 = vor.u32 %v3591_v32, %v3590_v52 }
 0x1e7   : > { %4432 = vst.msk [vmem:[#allocation3 + $0xec] sm:$0xf] %vm451_vm0, %v4346_v56  ;;  %v2326_v28 = vshrl.u32 %v8162_v9, 16  ;;  %v3064_v18 = vshrl.u32 %v2700_v31, 16  ;;  %v3067_v62 = vshll.u32 %v2700_v31, 16  ;;  %v5053_v53 = vsel %vm4683_vm7, %v4766_v58, 0.0 }
 0x1e8   : > { %3927 = vst.msk [vmem:[#allocation3 + $0xa0] sm:$0xf] %vm3906_vm4, %v3851_v26  ;;  %v5621_v63 = vpack.c.bf16 %v4769_v43, %v4769_v43  ;;  %v5054_v3 = vsel %vm4683_vm7, %v4769_v43, 0.0  ;;  %v5125_v15 = vmul.f32 %v4769_v43, %v4769_v43  ;;  %v3837_v29 = vpop.permute.xlu1 %3836  ;;  %v4771_v59 = vpop.f32.mrf.mxu0  ;;  %v3774_v17 = vld [vmem:[#allocation2 + $0x148] sm:$0xf]  ;;  %v2312_v39 = vshrl.u32 %v1978_v23, 16 }
 0x1e9   : > { %3673 = vrot.lane.b32.xlu0 %v3585_v6, %s5942_s18  ;;  %v8191_v47 = vadd.f32 %v5054_v3, %v5053_v53  ;;  %3920 = vst.msk [vmem:[#allocation3 + $0x68] sm:$0xf] %vm3906_vm4, %v3837_v29  ;;  %v8194_v45 = vrot.slane %v2317_v5, 7  ;;  %v2320_v25 = vshll.u32 %v8154_v48, 16  ;;  %v5156_v8 = vsel %vm4683_vm7, %v5124_v13, 0.0  ;;  %v1833_v37 = vpop.permute.xlu0 %1832  ;;  %v4447_v42 = vld [vmem:[#allocation3 + $0x60] sm:$0xff] }
 0x1ea   : > { %5022 = vst.msk [vmem:[%s8174_s19 + $0x4] sm:$0xf] %vm451_vm0, %v5621_v63  ;;  %v5157_v35 = vsel %vm4683_vm7, %v5125_v15, 0.0  ;;  %3145 = vrot.lane.b32.xlu1 %v3062_v33, %s5941_s7  ;;  %v1797_v19 = vor.u32 %v8160_v22, %v8158_v21  ;;  %v1800_v54 = vshll.u32 %v1416_v12, 16  ;;  %v2701_v55 = vld [vmem:[#allocation2 + $0x14c] sm:$0xf]  ;;  %v3594_v49 = vsel %vm6316_vm11, %v3586_v14, %v3593_v20 }
 0x1eb   : > { %v8204_v1 = vadd.f32 %v5157_v35, %v5156_v8  ;;  %1915 = vst.msk [vmem:[#allocation3 + $0x70] sm:$0xf] %vm1900_vm13, %v1833_v37  ;;  %v3066_v0 = vrot.slane %v3064_v18, 4  ;;  %v3069_v30 = vrot.slane %v3067_v62, 5  ;;  %v8209_v10 = vld [vmem:[#allocation2 + $0x15c] sm:$0xf]  ;;  %v1793_v44 = vsel %vm6285_vm10, %v8182_v24, %v8158_v21 }
 0x1ec   : > { %v3853_v4 = vpop.permute.xlu1 %3852  ;;  %v2328_v41 = vrot.slane %v2326_v28, 7  ;;  %v2329_v50 = vshll.u32 %v8162_v9, 16  ;;  %v5474_v11 = vrot.slane %v2312_v39, 11  ;;  %v2322_v60 = vor.u32 %v2320_v25, %v8194_v45  ;;  %v8221_v52 = vld [vmem:[#allocation2 + $0x160] sm:$0xf] }
 0x1ed   : > { %3866 = vrot.lane.b32.xlu0 %v3774_v17, %s5943_s17  ;;  %3928 = vst.msk [vmem:[#allocation3 + $0xa8] sm:$0xf] %vm3906_vm4, %v3853_v4  ;;  %v3073_v51 = vshll.u32 %v2701_v55, 16  ;;  %v3077_v32 = vshrl.u32 %v2701_v55, 16  ;;  %v1849_v48 = vpop.permute.xlu0 %1848  ;;  %v1802_v58 = vrot.slane %v1800_v54, 5  ;;  %v3601_v57 = vshrl.u32 %v8209_v10, 16 }
 0x1ee   : > { %3675 = vrot.lane.b32.xlu1 %v3594_v49, %s5942_s18  ;;  %v3775_v46 = vld [vmem:[#allocation2 + $0x14c] sm:$0xf]  ;;  %1923 = vst.msk [vmem:[#allocation3 + $0xb0] sm:$0xf] %vm1900_vm13, %v1849_v48  ;;  %v1798_v16 = vrot.slane %v1797_v19, 4  ;;  %v2324_v38 = vrot.slane %v8194_v45, 4  ;;  %v3070_v61 = vor.u32 %v3069_v30, %v3066_v0  ;;  %v2331_v31 = vor.u32 %v2329_v50, %v2328_v41 }
 0x1ef   : > { %v466_v2 = vld [vmem:[#allocation2 + $0x164] sm:$0x1]  ;;  %v5765_v9 = vld [vmem:[#allocation3 + $0x64] ss:$8 sps:$4 sm:$0xff]   ;;  %v3262_v27 = vld [vmem:[#allocation2 + $0x158] sm:$0x8]  ;;  %v2323_v36 = vsel %vm6316_vm11, %v5474_v11, %v2322_v60 }
 0x1f0   : > { %v1835_v21 = vpop.permute.xlu1 %1834  ;;  %v4448_v22 = vld [vmem:[#allocation3 + $0x68] sm:$0xff]  ;;  %v467_v6 = vsel %vm6240_vm5, 0, %v466_v2  ;;  %v8231_v56 = vrot.slane %v3073_v51, 5  ;;  %v3079_v13 = vrot.slane %v3077_v32, 4  ;;  %5538 = vmatprep.mubr.msk.bf16.mxu0 %vm4683_vm7, %v5765_v9  ;;  %v4455_v33 = vld [vmem:[#allocation3 + $0xa0] sm:$0xff]  ;;  %v8235_v14 = vrot.slane %v3601_v57, 7 }
 0x1f1   : > { %1864 = vrot.lane.b32.xlu0 %v1793_v44, %s5938_s14  ;;  %1916 = vst.msk [vmem:[#allocation3 + $0x78] sm:$0xf] %vm1900_vm13, %v1835_v21  ;;  %v5503_v5 = vcombine.low %v4447_v42, %v4448_v22  ;;  %468 = vst [vmem:[#allocation2 + $0x164] sm:$0x1] %v467_v6  ;;  %v2362_v26 = vpop.permute.xlu0 %2361  ;;  %v3604_v40 = vshll.u32 %v8209_v10, 16  ;;  %v1803_v24 = vsel %vm6285_vm10, %v1798_v16, %v1802_v58  ;;  %v8241_v23 = vrot.slane %v3070_v61, 4 }
 0x1f2   : > { %3868 = vrot.lane.b32.xlu1 %v3775_v46, %s5943_s17  ;;  %2444 = vst.msk [vmem:[#allocation3 + $0x70] sm:$0xf] %vm2429_vm14, %v2362_v26  ;;  %v2702_v43 = vld [vmem:[#allocation2 + $0x150] sm:$0x1]  ;;  %v3596_v20 = vshrl.u32 %v3262_v27, 16  ;;  %v3610_v12 = vshrl.u32 %v8221_v52, 16  ;;  %v2332_v53 = vsel %vm6316_vm11, %v2324_v38, %v2331_v31  ;;  %v3080_v59 = vor.u32 %v3079_v13, %v8231_v56 }
 0x1f3   : > { %4813 = vmatmul.mubr.bf16.gmra.mxu0 %v5503_v5  ;;  %v5767_v62 = vld [vmem:[#allocation3 + $0xa4] ss:$8 sps:$4 sm:$0xff]   ;;  %v3613_v63 = vshll.u32 %v8221_v52, 16  ;;  %v3984_v3 = vld [vmem:[#allocation2 + $0x15c] sm:$0xf]  ;;  %v3083_v8 = vshll.u32 %v2702_v43, 16  ;;  %v3606_v35 = vor.u32 %v3604_v40, %v8235_v14  ;;  %v3076_v55 = vsel %vm6285_vm10, %v8241_v23, %v8231_v56 }
 0x1f4   : > { %v1851_v28 = vpop.permute.xlu1 %1850  ;;  %v4456_v18 = vld [vmem:[#allocation3 + $0xa8] sm:$0xff]  ;;  %v2492_v29 = vld [vmem:[#allocation2 + $0x148] sm:$0xf]  ;;  %v3985_v17 = vld [vmem:[#allocation2 + $0x160] sm:$0xf]  ;;  %v4348_v39 = vshrl.u32 %v3984_v3, 16  ;;  %5542 = vmatprep.mubr.msk.bf16.mxu1 %vm4683_vm7, %v5767_v62 }
 0x1f5   : > { %2393 = vrot.lane.b32.xlu0 %v2323_v36, %s5939_s20  ;;  %1924 = vst.msk [vmem:[#allocation3 + $0xb8] sm:$0xf] %vm1900_vm13, %v1851_v28  ;;  %v5511_v15 = vcombine.low %v4455_v33, %v4456_v18  ;;  %v4351_v45 = vshll.u32 %v3984_v3, 16  ;;  %v2378_v25 = vpop.permute.xlu0 %2377  ;;  %v4357_v37 = vshll.u32 %v3985_v17, 16  ;;  %v4361_v19 = vshrl.u32 %v3985_v17, 16 }
 0x1f6   : > { %1866 = vrot.lane.b32.xlu1 %v1803_v24, %s5938_s14  ;;  %v4774_v54 = vpop.f32.mrf.mxu0  ;;  %2452 = vst.msk [vmem:[#allocation3 + $0xb0] sm:$0xf] %vm2429_vm14, %v2378_v25  ;;  %v5490_v49 = vrot.slane %v3596_v20, 11  ;;  %v4350_v0 = vrot.slane %v4348_v39, 4  ;;  %v3081_v46 = vrot.slane %v3080_v59, 4  ;;  %v3085_v16 = vrot.slane %v3083_v8, 5 }
 0x1f7   : > { %4845 = vmatmul.mubr.bf16.gmra.mxu1 %v5511_v15  ;;  %v4353_v30 = vrot.slane %v4351_v45, 5  ;;  %v5622_v4 = vpack.c.bf16 %v4774_v54, %v4774_v54  ;;  %v5056_v44 = vsel %vm4683_vm7, %v4774_v54, 0.0  ;;  %v5126_v41 = vmul.f32 %v4774_v54, %v4774_v54  ;;  %v2493_v21 = vld [vmem:[#allocation2 + $0x14c] sm:$0xf]  ;;  %s5652_s14 = sshll.u32 %s6004_s25, 11 }
 0x1f8   : > { %v2364_v10 = vpop.permute.xlu1 %2363  ;;  %v3986_v50 = vld [vmem:[#allocation2 + $0x164] sm:$0x1]  ;;  %v4359_v11 = vrot.slane %v4357_v37, 5  ;;  %v5057_v60 = vadd.f32 %v5056_v44, %v8191_v47  ;;  %v4776_v51 = vpop.f32.mrf.mxu0  ;;  %v4363_v42 = vrot.slane %v4361_v19, 4  ;;  %v3612_v38 = vrot.slane %v3610_v12, 7  ;;  %s8505_s15 = scalar_lea.hbm %s8630_s4, %s5652_s14 }
 0x1f9   : > { %2586 = vrot.lane.b32.xlu0 %v2492_v29, %s5940_s29  ;;  %2445 = vst.msk [vmem:[#allocation3 + $0x78] sm:$0xf] %vm2429_vm14, %v2364_v10  ;;  %v4354_v32 = vor.u32 %v4353_v30, %v4350_v0  ;;  %v4367_v48 = vshll.u32 %v3986_v50, 16  ;;  %v5159_v58 = vsel %vm4683_vm7, %v5126_v41, 0.0  ;;  %v2555_v57 = vpop.permute.xlu0 %2554  ;;  %v3608_v24 = vrot.slane %v8235_v14, 4 }
 0x1fa   : > { %5023 = vst.msk [vmem:[%s8174_s19 + $0x8] sm:$0xf] %vm451_vm0, %v5622_v4  ;;  %2395 = vrot.lane.b32.xlu1 %v2332_v53, %s5939_s20  ;;  %v5160_v61 = vadd.f32 %v5159_v58, %v8204_v1  ;;  %v4777_v2 = vpop.f32.mrf.mxu0  ;;  %v4364_v22 = vor.u32 %v4363_v42, %v4359_v11  ;;  %v3607_v1 = vsel %vm6316_vm11, %v5490_v49, %v3606_v35  ;;  %v3776_v14 = vld [vmem:[#allocation2 + $0x15c] sm:$0xf]  ;;  %v3777_v53 = vld [vmem:[#allocation2 + $0x160] sm:$0xf] }
 0x1fb   : > { %2637 = vst.msk [vmem:[#allocation3 + $0x70] sm:$0xf] %vm2622_vm15, %v2555_v57  ;;  %v4355_v47 = vrot.slane %v4354_v32, 4  ;;  %v4369_v9 = vrot.slane %v4367_v48, 5  ;;  %v5623_v27 = vpack.c.bf16 %v4777_v2, %v4777_v2  ;;  %v5058_v6 = vsel %vm4683_vm7, %v4777_v2, 0.0  ;;  %s5248_s20 = sshll.u32 %s8174_s19, 4  ;;  %s8508_s20 = int_to_ptr.vmem [resolvable:$true] %s5248_s20 }
 0x1fc   : > { %v2380_v31 = vpop.permute.xlu1 %2379  ;;  %v5127_v5 = vmul.f32 %v4777_v2, %v4777_v2  ;;  %v5059_v36 = vadd.f32 %v5058_v6, %v5057_v60  ;;  %v4779_v56 = vpop.f32.mrf.mxu0  ;;  %v4365_v33 = vrot.slane %v4364_v22, 4  ;;  %v3086_v43 = vsel %vm6285_vm10, %v3081_v46, %v3085_v16  ;;  %v5769_v57 = vld [vmem:[#allocation3 + $0x74] ss:$8 sps:$4 sm:$0xff]   ;;  %s5811_s11 = scalar_lea.vmem %s8508_s20, 2048  ;;  %p5818_p5 = scmp.lt.s32.totalorder %s8508_s20, %s5816_s12 }
 0x1fd   : > { %3147 = vrot.lane.b32.xlu0 %v3076_v55, %s5941_s7  ;;  %2453 = vst.msk [vmem:[#allocation3 + $0xb8] sm:$0xf] %vm2429_vm14, %v2380_v31  ;;  %v4360_v13 = vsel %vm6285_vm10, %v4355_v47, %v4359_v11  ;;  %v2571_v40 = vpop.permute.xlu0 %2570  ;;  %v3615_v20 = vor.u32 %v3613_v63, %v3612_v38  ;;  %5539 = vmatprep.mubr.msk.bf16.mxu0 %vm4683_vm7, %v5769_v57  ;;  %p5812_p11 = scmp.ne.s32.totalorder %s8508_s20, %s5811_s11  ;;  %p5819_p7 = scmp.lt.s32.totalorder %s5817_s8, %s5811_s11 }
 0x1fe   : > { %5024 = vst.msk [vmem:[%s8174_s19 + $0xc] sm:$0xf] %vm451_vm0, %v5623_v27  ;;  %v5161_v26 = vsel %vm4683_vm7, %v5127_v5, 0.0  ;;  %2588 = vrot.lane.b32.xlu1 %v2493_v21, %s5940_s29  ;;  %4433 = vst.msk [vmem:[#allocation3 + $0xf4] sm:$0xf] %vm451_vm0, %v4360_v13  ;;  %v4370_v12 = vsel %vm6285_vm10, %v4365_v33, %v4369_v9 }
 0x1ff   : > { %v5162_v23 = vadd.f32 %v5161_v26, %v5160_v61  ;;  %2645 = vst.msk [vmem:[#allocation3 + $0xb0] sm:$0xf] %vm2622_vm15, %v2571_v40  ;;  %v3616_v62 = vsel %vm6316_vm11, %v3608_v24, %v3615_v20  ;;  %v5771_v21 = vld [vmem:[#allocation3 + $0xb4] ss:$8 sps:$4 sm:$0xff]   ;;  %p5813_p13 = pnand %p5812_p11, %p8650_p12  ;;  %p5820_p8 = por %p5819_p7, %p5818_p5 }
 0x200   : > { %v2557_v28 = vpop.permute.xlu1 %2556  ;;  %4434 = vst.msk [vmem:[#allocation3 + $0xfc] sm:$0xf] %vm451_vm0, %v4370_v12  ;;  %5543 = vmatprep.mubr.msk.bf16.mxu1 %vm4683_vm7, %v5771_v21 }
 0x201   : > { %3677 = vrot.lane.b32.xlu0 %v3607_v1, %s5942_s18  ;;  %2638 = vst.msk [vmem:[#allocation3 + $0x78] sm:$0xf] %vm2622_vm15, %v2557_v28  ;;  %v3116_v18 = vpop.permute.xlu0 %3115  ;;  %p5814_p4 = pneg %p5813_p13 }
 0x202   : > { %3149 = vrot.lane.b32.xlu1 %v3086_v43, %s5941_s7  ;;  %3198 = vst.msk [vmem:[#allocation3 + $0x70] sm:$0xf] %vm3183_vm2, %v3116_v18 }
 0x203   : > { %p5821_p10 = pnand %p5820_p8, %p5814_p4 }
 0x204   : > { %v2573_v52 = vpop.permute.xlu1 %2572 }
 0x205   : > { %3870 = vrot.lane.b32.xlu0 %v3776_v14, %s5943_s17  ;;  %2646 = vst.msk [vmem:[#allocation3 + $0xb8] sm:$0xf] %vm2622_vm15, %v2573_v52  ;;  %v3132_v34 = vpop.permute.xlu0 %3131 }
 0x206   : > { %3679 = vrot.lane.b32.xlu1 %v3616_v62, %s5942_s18  ;;  %3206 = vst.msk [vmem:[#allocation3 + $0xb0] sm:$0xf] %vm3183_vm2, %v3132_v34 }
 0x208   : > { %v3118_v63 = vpop.permute.xlu1 %3117 }
 0x209   : > { %3199 = vst.msk [vmem:[#allocation3 + $0x78] sm:$0xf] %vm3183_vm2, %v3118_v63  ;;  %v3646_v7 = vpop.permute.xlu0 %3645 }
 0x20a   : > { %3872 = vrot.lane.b32.xlu1 %v3777_v53, %s5943_s17  ;;  %3728 = vst.msk [vmem:[#allocation3 + $0x70] sm:$0xf] %vm3713_vm3, %v3646_v7  ;;  %s5227_s17 = scalar_lea.sflag [#allocation6], %s6082_s13 }
 0x20c   : > { %v3134_v3 = vpop.permute.xlu1 %3133 }
 0x20d   : > { %3207 = vst.msk [vmem:[#allocation3 + $0xb8] sm:$0xf] %vm3183_vm2, %v3134_v3  ;;  %v3662_v15 = vpop.permute.xlu0 %3661  ;;  %v4782_v29 = vpop.f32.mrf.mxu0 }
 0x20e   : > { %3736 = vst.msk [vmem:[#allocation3 + $0xb0] sm:$0xf] %vm3713_vm3, %v3662_v15  ;;  %v5624_v17 = vpack.c.bf16 %v4782_v29, %v4782_v29  ;;  %v5060_v39 = vsel %vm4683_vm7, %v4782_v29, 0.0  ;;  %v5128_v45 = vmul.f32 %v4782_v29, %v4782_v29 }
 0x20f   : > { %v5061_v25 = vadd.f32 %v5060_v39, %v5059_v36  ;;  %v4784_v8 = vpop.f32.mrf.mxu0 }
 0x210   : > { %v3648_v59 = vpop.permute.xlu1 %3647  ;;  %5025 = vst.msk [vmem:[%s8174_s19 + $0x10] sm:$0xf] %vm451_vm0, %v5624_v17  ;;  %v5163_v35 = vsel %vm4683_vm7, %v5128_v45, 0.0 }
 0x211   : > { %3729 = vst.msk [vmem:[#allocation3 + $0x78] sm:$0xf] %vm3713_vm3, %v3648_v59  ;;  %v3839_v37 = vpop.permute.xlu0 %3838  ;;  %v5164_v19 = vadd.f32 %v5163_v35, %v5162_v23  ;;  %v4785_v54 = vpop.f32.mrf.mxu0  ;;  %v5773_v59 = vld [vmem:[#allocation3 + $0xc4] ss:$8 sps:$4 sm:$0xff]  }
 0x212   : > { %3921 = vst.msk [vmem:[#allocation3 + $0x70] sm:$0xf] %vm3906_vm4, %v3839_v37  ;;  %v5625_v49 = vpack.c.bf16 %v4785_v54, %v4785_v54  ;;  %v5062_v0 = vsel %vm4683_vm7, %v4785_v54, 0.0  ;;  %v5129_v30 = vmul.f32 %v4785_v54, %v4785_v54 }
 0x213   : > { %v5063_v10 = vadd.f32 %v5062_v0, %v5061_v25  ;;  %v4787_v4 = vpop.f32.mrf.mxu0 }
 0x214   : > { %v3664_v55 = vpop.permute.xlu1 %3663  ;;  %5026 = vst.msk [vmem:[%s8174_s19 + $0x14] sm:$0xf] %vm451_vm0, %v5625_v49  ;;  %v5165_v44 = vsel %vm4683_vm7, %v5129_v30, 0.0 }
 0x215   : > { %3737 = vst.msk [vmem:[#allocation3 + $0xb8] sm:$0xf] %vm3713_vm3, %v3664_v55  ;;  %v3855_v41 = vpop.permute.xlu0 %3854  ;;  %v5166_v50 = vadd.f32 %v5165_v44, %v5164_v19 }
 0x216   : > { %3929 = vst.msk [vmem:[#allocation3 + $0xb0] sm:$0xf] %vm3906_vm4, %v3855_v41 }
 0x218   : > { %v3841_v11 = vpop.permute.xlu1 %3840 }
 0x219   : > { %3922 = vst.msk [vmem:[#allocation3 + $0x78] sm:$0xf] %vm3906_vm4, %v3841_v11  ;;  %v1853_v60 = vpop.permute.xlu0 %1852  ;;  %v4449_v32 = vld [vmem:[#allocation3 + $0x70] sm:$0xff] }
 0x21a   : > { %1925 = vst.msk [vmem:[#allocation3 + $0xc0] sm:$0xf] %vm1900_vm13, %v1853_v60  ;;  %v5775_v60 = vld [vmem:[#allocation3 + $0xd4] ss:$8 sps:$4 sm:$0xff]  }
 0x21c   : > { %v3857_v51 = vpop.permute.xlu1 %3856 }
 0x21d   : > { %3930 = vst.msk [vmem:[#allocation3 + $0xb8] sm:$0xf] %vm3906_vm4, %v3857_v51  ;;  %v2382_v42 = vpop.permute.xlu0 %2381  ;;  %v4457_v16 = vld [vmem:[#allocation3 + $0xb0] sm:$0xff] }
 0x21e   : > { %2454 = vst.msk [vmem:[#allocation3 + $0xc0] sm:$0xf] %vm2429_vm14, %v2382_v42 }
 0x220   : > { %v1855_v48 = vpop.permute.xlu1 %1854  ;;  %v4450_v58 = vld [vmem:[#allocation3 + $0x78] sm:$0xff] }
 0x221   : > { %1926 = vst.msk [vmem:[#allocation3 + $0xc8] sm:$0xf] %vm1900_vm13, %v1855_v48  ;;  %v5505_v46 = vcombine.low %v4449_v32, %v4450_v58  ;;  %v2575_v38 = vpop.permute.xlu0 %2574 }
 0x222   : > { %2647 = vst.msk [vmem:[#allocation3 + $0xc0] sm:$0xf] %vm2622_vm15, %v2575_v38 }
 0x223   : > { %4821 = vmatmul.mubr.bf16.gmra.mxu0 %v5505_v46 }
 0x224   : > { %v2384_v61 = vpop.permute.xlu1 %2383  ;;  %v4458_v2 = vld [vmem:[#allocation3 + $0xb8] sm:$0xff] }
 0x225   : > { %2455 = vst.msk [vmem:[#allocation3 + $0xc8] sm:$0xf] %vm2429_vm14, %v2384_v61  ;;  %v5513_v47 = vcombine.low %v4457_v16, %v4458_v2  ;;  %v3136_v22 = vpop.permute.xlu0 %3135 }
 0x226   : > { %3208 = vst.msk [vmem:[#allocation3 + $0xc0] sm:$0xf] %vm3183_vm2, %v3136_v22 }
 0x227   : > { %4853 = vmatmul.mubr.bf16.gmra.mxu1 %v5513_v47  ;;  %v4790_v9 = vpop.f32.mrf.mxu0 }
 0x228   : > { %v2577_v31 = vpop.permute.xlu1 %2576  ;;  %v5626_v27 = vpack.c.bf16 %v4790_v9, %v4790_v9  ;;  %v5064_v6 = vsel %vm4683_vm7, %v4790_v9, 0.0  ;;  %v5130_v5 = vmul.f32 %v4790_v9, %v4790_v9  ;;  %5544 = vmatprep.mubr.msk.bf16.mxu1 %vm4683_vm7, %v5773_v59 }
 0x229   : > { %2648 = vst.msk [vmem:[#allocation3 + $0xc8] sm:$0xf] %vm2622_vm15, %v2577_v31  ;;  %v5065_v36 = vadd.f32 %v5064_v6, %v5063_v10  ;;  %v4792_v56 = vpop.f32.mrf.mxu0  ;;  %v3666_v13 = vpop.permute.xlu0 %3665 }
 0x22a   : > { %5027 = vst.msk [vmem:[%s8174_s19 + $0x18] sm:$0xf] %vm451_vm0, %v5626_v27  ;;  %v5167_v1 = vsel %vm4683_vm7, %v5130_v5, 0.0 }
 0x22b   : > { %v5168_v33 = vadd.f32 %v5167_v1, %v5166_v50  ;;  %v4793_v26 = vpop.f32.mrf.mxu0  ;;  %3738 = vst.msk [vmem:[#allocation3 + $0xc0] sm:$0xf] %vm3713_vm3, %v3666_v13 }
 0x22c   : > { %v3138_v40 = vpop.permute.xlu1 %3137  ;;  %v5627_v24 = vpack.c.bf16 %v4793_v26, %v4793_v26  ;;  %v5066_v23 = vsel %vm4683_vm7, %v4793_v26, 0.0  ;;  %v5131_v43 = vmul.f32 %v4793_v26, %v4793_v26 }
 0x22d   : > { %3209 = vst.msk [vmem:[#allocation3 + $0xc8] sm:$0xf] %vm3183_vm2, %v3138_v40  ;;  %v5067_v20 = vadd.f32 %v5066_v23, %v5065_v36  ;;  %v4795_v12 = vpop.f32.mrf.mxu0  ;;  %v3859_v14 = vpop.permute.xlu0 %3858 }
 0x22e   : > { %5028 = vst.msk [vmem:[%s8174_s19 + $0x1c] sm:$0xf] %vm451_vm0, %v5627_v24  ;;  %v5169_v28 = vsel %vm4683_vm7, %v5131_v43, 0.0 }
 0x22f   : > { %v5170_v18 = vadd.f32 %v5169_v28, %v5168_v33  ;;  %3931 = vst.msk [vmem:[#allocation3 + $0xc0] sm:$0xf] %vm3906_vm4, %v3859_v14 }
 0x230   : > { %v3668_v62 = vpop.permute.xlu1 %3667 }
 0x231   : > { %3739 = vst.msk [vmem:[#allocation3 + $0xc8] sm:$0xf] %vm3713_vm3, %v3668_v62  ;;  %v1857_v52 = vpop.permute.xlu0 %1856 }
 0x232   : > { %1927 = vst.msk [vmem:[#allocation3 + $0xd0] sm:$0xf] %vm1900_vm13, %v1857_v52 }
 0x234   : > { %v3861_v34 = vpop.permute.xlu1 %3860 }
 0x235   : > { %3932 = vst.msk [vmem:[#allocation3 + $0xc8] sm:$0xf] %vm3906_vm4, %v3861_v34  ;;  %v2386_v53 = vpop.permute.xlu0 %2385 }
 0x236   : > { %2456 = vst.msk [vmem:[#allocation3 + $0xd0] sm:$0xf] %vm2429_vm14, %v2386_v53  ;;  %v4459_v7 = vld [vmem:[#allocation3 + $0xc0] sm:$0xff] }
 0x238   : > { %v1859_v63 = vpop.permute.xlu1 %1858 }
 0x239   : > { %1928 = vst.msk [vmem:[#allocation3 + $0xd8] sm:$0xf] %vm1900_vm13, %v1859_v63 }
 0x23b   : > { %v2579_v3 = vpop.permute.xlu0 %2578 }
 0x23c   : > { %2649 = vst.msk [vmem:[#allocation3 + $0xd0] sm:$0xf] %vm2622_vm15, %v2579_v3  ;;  %v2388_v15 = vpop.permute.xlu1 %2387  ;;  %v4460_v29 = vld [vmem:[#allocation3 + $0xc8] sm:$0xff] }
 0x23d   : > { %2457 = vst.msk [vmem:[#allocation3 + $0xd8] sm:$0xf] %vm2429_vm14, %v2388_v15  ;;  %v5515_v17 = vcombine.low %v4459_v7, %v4460_v29 }
 0x23f   : > { %v3140_v39 = vpop.permute.xlu0 %3139  ;;  %4861 = vmatmul.mubr.bf16.gmra.mxu1 %v5515_v17 }
 0x240   : > { %3210 = vst.msk [vmem:[#allocation3 + $0xd0] sm:$0xf] %vm3183_vm2, %v3140_v39  ;;  %v2581_v45 = vpop.permute.xlu1 %2580  ;;  %5545 = vmatprep.mubr.msk.bf16.mxu1 %vm4683_vm7, %v5775_v60 }
 0x241   : > { %2650 = vst.msk [vmem:[#allocation3 + $0xd8] sm:$0xf] %vm2622_vm15, %v2581_v45 }
 0x243   : > { %v3670_v25 = vpop.permute.xlu0 %3669 }
 0x244   : > { %3740 = vst.msk [vmem:[#allocation3 + $0xd0] sm:$0xf] %vm3713_vm3, %v3670_v25  ;;  %v3142_v8 = vpop.permute.xlu1 %3141 }
 0x245   : > { %3211 = vst.msk [vmem:[#allocation3 + $0xd8] sm:$0xf] %vm3183_vm2, %v3142_v8  ;;  %v5779_v8 = vld [vmem:[#allocation3 + $0xf4] ss:$8 sps:$4 sm:$0xff]  }
 0x247   : > { %v3863_v35 = vpop.permute.xlu0 %3862 }
 0x248   : > { %3933 = vst.msk [vmem:[#allocation3 + $0xd0] sm:$0xf] %vm3906_vm4, %v3863_v35  ;;  %v3672_v37 = vpop.permute.xlu1 %3671 }
 0x249   : > { %3741 = vst.msk [vmem:[#allocation3 + $0xd8] sm:$0xf] %vm3713_vm3, %v3672_v37 }
 0x24b   : > { %v1861_v19 = vpop.permute.xlu0 %1860 }
 0x24c   : > { %1929 = vst.msk [vmem:[#allocation3 + $0xe0] sm:$0xf] %vm1900_vm13, %v1861_v19  ;;  %v3865_v54 = vpop.permute.xlu1 %3864 }
 0x24d   : > { %3934 = vst.msk [vmem:[#allocation3 + $0xd8] sm:$0xf] %vm3906_vm4, %v3865_v54 }
 0x24f   : > { %v2390_v55 = vpop.permute.xlu0 %2389  ;;  %v4461_v0 = vld [vmem:[#allocation3 + $0xd0] sm:$0xff] }
 0x250   : > { %2458 = vst.msk [vmem:[#allocation3 + $0xe0] sm:$0xf] %vm2429_vm14, %v2390_v55  ;;  %v1863_v49 = vpop.permute.xlu1 %1862 }
 0x251   : > { %1930 = vst.msk [vmem:[#allocation3 + $0xe8] sm:$0xf] %vm1900_vm13, %v1863_v49 }
 0x253   : > { %v2583_v30 = vpop.permute.xlu0 %2582  ;;  %v4798_v10 = vpop.f32.mrf.mxu0 }
 0x254   : > { %2651 = vst.msk [vmem:[#allocation3 + $0xe0] sm:$0xf] %vm2622_vm15, %v2583_v30  ;;  %v2392_v4 = vpop.permute.xlu1 %2391  ;;  %v5628_v44 = vpack.c.bf16 %v4798_v10, %v4798_v10  ;;  %v5068_v41 = vsel %vm4683_vm7, %v4798_v10, 0.0  ;;  %v5132_v50 = vmul.f32 %v4798_v10, %v4798_v10  ;;  %v4462_v11 = vld [vmem:[#allocation3 + $0xd8] sm:$0xff] }
 0x255   : > { %2459 = vst.msk [vmem:[#allocation3 + $0xe8] sm:$0xf] %vm2429_vm14, %v2392_v4  ;;  %v5069_v51 = vadd.f32 %v5068_v41, %v5067_v20  ;;  %v4800_v32 = vpop.f32.mrf.mxu0  ;;  %v5517_v42 = vcombine.low %v4461_v0, %v4462_v11  ;;  %v8363_v46 = vpop.f32.mrf.mxu1 }
 0x256   : > { %5029 = vst.msk [vmem:[%s8174_s19 + $0x20] sm:$0xf] %vm451_vm0, %v5628_v44  ;;  %v5171_v48 = vsel %vm4683_vm7, %v5132_v50, 0.0  ;;  %v5636_v38 = vpack.c.bf16 %v8363_v46, %v8363_v46 }
 0x257   : > { %v3144_v58 = vpop.permute.xlu0 %3143  ;;  %v5172_v57 = vadd.f32 %v5171_v48, %v5170_v18  ;;  %4869 = vmatmul.mubr.bf16.gmra.mxu1 %v5517_v42  ;;  %v4801_v16 = vpop.f32.mrf.mxu0  ;;  %v5777_v18 = vld [vmem:[#allocation3 + $0xe4] ss:$8 sps:$4 sm:$0xff]  }
 0x258   : > { %3212 = vst.msk [vmem:[#allocation3 + $0xe0] sm:$0xf] %vm3183_vm2, %v3144_v58  ;;  %v2585_v61 = vpop.permute.xlu1 %2584  ;;  %v5629_v2 = vpack.c.bf16 %v4801_v16, %v4801_v16  ;;  %v5070_v21 = vsel %vm4683_vm7, %v4801_v16, 0.0  ;;  %v5133_v47 = vmul.f32 %v4801_v16, %v4801_v16  ;;  %v4832_v9 = vpop.f32.mrf.mxu1  ;;  %5546 = vmatprep.mubr.msk.bf16.mxu1 %vm4683_vm7, %v5777_v18 }
 0x259   : > { %2652 = vst.msk [vmem:[#allocation3 + $0xe8] sm:$0xf] %vm2622_vm15, %v2585_v61  ;;  %v4803_v22 = vpop.f32.mrf.mxu0  ;;  %v5071_v31 = vadd.f32 %v5070_v21, %v5069_v51 }
 0x25a   : > { %5037 = vst.msk [vmem:[%s8174_s19 + $0x40] sm:$0xf] %vm451_vm0, %v5636_v38  ;;  %5030 = vst.msk [vmem:[%s8174_s19 + $0x24] sm:$0xf] %vm451_vm0, %v5629_v2  ;;  %v5173_v6 = vsel %vm4683_vm7, %v5133_v47, 0.0  ;;  %v8375_v5 = vpop.f32.mrf.mxu1 }
 0x25b   : > { %v3674_v27 = vpop.permute.xlu0 %3673  ;;  %v5174_v36 = vadd.f32 %v5173_v6, %v5172_v57  ;;  %v5637_v56 = vpack.c.bf16 %v8375_v5, %v8375_v5 }
 0x25c   : > { %3742 = vst.msk [vmem:[#allocation3 + $0xe0] sm:$0xf] %vm3713_vm3, %v3674_v27  ;;  %v3146_v1 = vpop.permute.xlu1 %3145  ;;  %v4835_v13 = vpop.f32.mrf.mxu1 }
 0x25d   : > { %3213 = vst.msk [vmem:[#allocation3 + $0xe8] sm:$0xf] %vm3183_vm2, %v3146_v1 }
 0x25e   : > { %5038 = vst.msk [vmem:[%s8174_s19 + $0x44] sm:$0xf] %vm451_vm0, %v5637_v56 }
 0x25f   : > { %v3867_v33 = vpop.permute.xlu0 %3866 }
 0x260   : > { %3935 = vst.msk [vmem:[#allocation3 + $0xe0] sm:$0xf] %vm3906_vm4, %v3867_v33  ;;  %v3676_v26 = vpop.permute.xlu1 %3675 }
 0x261   : > { %3743 = vst.msk [vmem:[#allocation3 + $0xe8] sm:$0xf] %vm3713_vm3, %v3676_v26 }
 0x263   : > { %v1865_v40 = vpop.permute.xlu0 %1864 }
 0x264   : > { %1931 = vst.msk [vmem:[#allocation3 + $0xf0] sm:$0xf] %vm1900_vm13, %v1865_v40  ;;  %v3869_v24 = vpop.permute.xlu1 %3868 }
 0x265   : > { %3936 = vst.msk [vmem:[#allocation3 + $0xe8] sm:$0xf] %vm3906_vm4, %v3869_v24 }
 0x267   : > { %v2394_v23 = vpop.permute.xlu0 %2393  ;;  %v4463_v20 = vld [vmem:[#allocation3 + $0xe0] sm:$0xff] }
 0x268   : > { %2460 = vst.msk [vmem:[#allocation3 + $0xf0] sm:$0xf] %vm2429_vm14, %v2394_v23  ;;  %v1867_v43 = vpop.permute.xlu1 %1866 }
 0x269   : > { %1932 = vst.msk [vmem:[#allocation3 + $0xf8] sm:$0xf] %vm1900_vm13, %v1867_v43 }
 0x26b   : > { %v2587_v12 = vpop.permute.xlu0 %2586 }
 0x26c   : > { %2653 = vst.msk [vmem:[#allocation3 + $0xf0] sm:$0xf] %vm2622_vm15, %v2587_v12  ;;  %v2396_v28 = vpop.permute.xlu1 %2395  ;;  %v4464_v14 = vld [vmem:[#allocation3 + $0xe8] sm:$0xff] }
 0x26d   : > { %2461 = vst.msk [vmem:[#allocation3 + $0xf8] sm:$0xf] %vm2429_vm14, %v2396_v28  ;;  %v5519_v62 = vcombine.low %v4463_v20, %v4464_v14 }
 0x26f   : > { %v3148_v52 = vpop.permute.xlu0 %3147  ;;  %4877 = vmatmul.mubr.bf16.gmra.mxu1 %v5519_v62 }
 0x270   : > { %3214 = vst.msk [vmem:[#allocation3 + $0xf0] sm:$0xf] %vm3183_vm2, %v3148_v52  ;;  %v2589_v34 = vpop.permute.xlu1 %2588  ;;  %5547 = vmatprep.mubr.msk.bf16.mxu1 %vm4683_vm7, %v5779_v8  ;;  %v5140_v52 = vmul.f32 %v8363_v46, %v8363_v46 }
 0x271   : > { %2654 = vst.msk [vmem:[#allocation3 + $0xf8] sm:$0xf] %vm2622_vm15, %v2589_v34 }
 0x273   : > { %v3678_v53 = vpop.permute.xlu0 %3677 }
 0x274   : > { %3744 = vst.msk [vmem:[#allocation3 + $0xf0] sm:$0xf] %vm3713_vm3, %v3678_v53  ;;  %v3150_v63 = vpop.permute.xlu1 %3149 }
 0x275   : > { %3215 = vst.msk [vmem:[#allocation3 + $0xf8] sm:$0xf] %vm3183_vm2, %v3150_v63 }
 0x277   : > { %v3871_v7 = vpop.permute.xlu0 %3870 }
 0x278   : > { %3937 = vst.msk [vmem:[#allocation3 + $0xf0] sm:$0xf] %vm3906_vm4, %v3871_v7  ;;  %v3680_v3 = vpop.permute.xlu1 %3679 }
 0x279   : > { %3745 = vst.msk [vmem:[#allocation3 + $0xf8] sm:$0xf] %vm3713_vm3, %v3680_v3 }
 0x27c   : > { %v3873_v15 = vpop.permute.xlu1 %3872 }
 0x27d   : > { %3938 = vst.msk [vmem:[#allocation3 + $0xf8] sm:$0xf] %vm3906_vm4, %v3873_v15 }
 0x27f   : > { %v4465_v29 = vld [vmem:[#allocation3 + $0xf0] sm:$0xff] }
 0x284   : > { %v4466_v25 = vld [vmem:[#allocation3 + $0xf8] sm:$0xff] }
 0x285   : > { %v4806_v59 = vpop.f32.mrf.mxu0  ;;  %v5521_v19 = vcombine.low %v4465_v29, %v4466_v25  ;;  %v5141_v25 = vmul.f32 %v8375_v5, %v8375_v5 }
 0x286   : > { %v5630_v17 = vpack.c.bf16 %v4806_v59, %v4806_v59  ;;  %v5072_v39 = vsel %vm4683_vm7, %v4806_v59, 0.0  ;;  %v5134_v45 = vmul.f32 %v4806_v59, %v4806_v59 }
 0x287   : > { %v5073_v35 = vadd.f32 %v5072_v39, %v5071_v31  ;;  %v4808_v37 = vpop.f32.mrf.mxu0  ;;  %4885 = vmatmul.mubr.bf16.gmra.mxu1 %v5521_v19 }
 0x288   : > { %5031 = vst.msk [vmem:[%s8174_s19 + $0x28] sm:$0xf] %vm451_vm0, %v5630_v17  ;;  %v5175_v54 = vsel %vm4683_vm7, %v5134_v45, 0.0  ;;  %v5084_v45 = vsel %vm4683_vm7, %v8363_v46, 0.0 }
 0x289   : > { %v5176_v55 = vadd.f32 %v5175_v54, %v5174_v36  ;;  %v4809_v49 = vpop.f32.mrf.mxu0  ;;  %v8404_v0 = vpop.f32.mrf.mxu1  ;;  %v5187_v54 = vsel %vm4683_vm7, %v5140_v52, 0.0 }
 0x28a   : > { %v5631_v30 = vpack.c.bf16 %v4809_v49, %v4809_v49  ;;  %v5074_v10 = vsel %vm4683_vm7, %v4809_v49, 0.0  ;;  %v5135_v4 = vmul.f32 %v4809_v49, %v4809_v49  ;;  %v5638_v44 = vpack.c.bf16 %v8404_v0, %v8404_v0 }
 0x28b   : > { %v5075_v41 = vadd.f32 %v5074_v10, %v5073_v35  ;;  %v4811_v50 = vpop.f32.mrf.mxu0  ;;  %v4840_v11 = vpop.f32.mrf.mxu1  ;;  %v5142_v46 = vmul.f32 %v8404_v0, %v8404_v0 }
 0x28c   : > { %5032 = vst.msk [vmem:[%s8174_s19 + $0x2c] sm:$0xf] %vm451_vm0, %v5631_v30  ;;  %v5177_v60 = vsel %vm4683_vm7, %v5135_v4, 0.0  ;;  %5039 = vst.msk [vmem:[%s8174_s19 + $0x48] sm:$0xf] %vm451_vm0, %v5638_v44  ;;  %v5189_v44 = vsel %vm4683_vm7, %v5141_v25, 0.0 }
 0x28d   : > { %v5178_v51 = vadd.f32 %v5177_v60, %v5176_v55  ;;  %v8414_v32 = vpop.f32.mrf.mxu1  ;;  %v5086_v55 = vsel %vm4683_vm7, %v8375_v5, 0.0  ;;  %v5191_v5 = vsel %vm4683_vm7, %v5142_v46, 0.0 }
 0x28e   : > { %v5639_v42 = vpack.c.bf16 %v8414_v32, %v8414_v32  ;;  %v5143_v50 = vmul.f32 %v8414_v32, %v8414_v32 }
 0x28f   : > { %v4843_v48 = vpop.f32.mrf.mxu1 }
 0x290   : > { %5040 = vst.msk [vmem:[%s8174_s19 + $0x4c] sm:$0xf] %vm451_vm0, %v5639_v42 }
 0x2b3   : > { %v4814_v58 = vpop.f32.mrf.mxu0 }
 0x2b4   : > { %v5632_v57 = vpack.c.bf16 %v4814_v58, %v4814_v58  ;;  %v5076_v16 = vsel %vm4683_vm7, %v4814_v58, 0.0  ;;  %v5136_v38 = vmul.f32 %v4814_v58, %v4814_v58 }
 0x2b5   : > { %v5077_v61 = vadd.f32 %v5076_v16, %v5075_v41  ;;  %v4816_v2 = vpop.f32.mrf.mxu0  ;;  %v5088_v41 = vsel %vm4683_vm7, %v8404_v0, 0.0 }
 0x2b6   : > { %5033 = vst.msk [vmem:[%s8174_s19 + $0x30] sm:$0xf] %vm451_vm0, %v5632_v57  ;;  %v5179_v21 = vsel %vm4683_vm7, %v5136_v38, 0.0  ;;  %v5193_v57 = vsel %vm4683_vm7, %v5143_v50, 0.0 }
 0x2b7   : > { %v5180_v47 = vadd.f32 %v5179_v21, %v5178_v51  ;;  %v4817_v22 = vpop.f32.mrf.mxu0  ;;  %v4846_v9 = vpop.f32.mrf.mxu1  ;;  %v5090_v51 = vsel %vm4683_vm7, %v8414_v32, 0.0 }
 0x2b8   : > { %v5633_v31 = vpack.c.bf16 %v4817_v22, %v4817_v22  ;;  %v5078_v27 = vsel %vm4683_vm7, %v4817_v22, 0.0  ;;  %v5137_v6 = vmul.f32 %v4817_v22, %v4817_v22  ;;  %v5640_v36 = vpack.c.bf16 %v4846_v9, %v4846_v9 }
 0x2b9   : > { %v5079_v56 = vadd.f32 %v5078_v27, %v5077_v61  ;;  %v4819_v1 = vpop.f32.mrf.mxu0  ;;  %v4848_v13 = vpop.f32.mrf.mxu1  ;;  %v5144_v42 = vmul.f32 %v4846_v9, %v4846_v9  ;;  %v5092_v16 = vsel %vm4683_vm7, %v4846_v9, 0.0 }
 0x2ba   : > { %5034 = vst.msk [vmem:[%s8174_s19 + $0x34] sm:$0xf] %vm451_vm0, %v5633_v31  ;;  %v5181_v33 = vsel %vm4683_vm7, %v5137_v6, 0.0  ;;  %5041 = vst.msk [vmem:[%s8174_s19 + $0x50] sm:$0xf] %vm451_vm0, %v5640_v36 }
 0x2bb   : > { %v5182_v26 = vadd.f32 %v5181_v33, %v5180_v47  ;;  %v4849_v40 = vpop.f32.mrf.mxu1  ;;  %v5195_v2 = vsel %vm4683_vm7, %v5144_v42, 0.0 }
 0x2bc   : > { %v5641_v24 = vpack.c.bf16 %v4849_v40, %v4849_v40  ;;  %v5145_v0 = vmul.f32 %v4849_v40, %v4849_v40  ;;  %v5094_v21 = vsel %vm4683_vm7, %v4849_v40, 0.0 }
 0x2bd   : > { %v4851_v23 = vpop.f32.mrf.mxu1 }
 0x2be   : > { %5042 = vst.msk [vmem:[%s8174_s19 + $0x54] sm:$0xf] %vm451_vm0, %v5641_v24  ;;  %v5197_v32 = vsel %vm4683_vm7, %v5145_v0, 0.0 }
 0x2e3   : > { %v4822_v43 = vpop.f32.mrf.mxu0 }
 0x2e4   : > { %v5634_v20 = vpack.c.bf16 %v4822_v43, %v4822_v43  ;;  %v5080_v12 = vsel %vm4683_vm7, %v4822_v43, 0.0  ;;  %v5138_v28 = vmul.f32 %v4822_v43, %v4822_v43 }
 0x2e5   : > { %v5081_v14 = vadd.f32 %v5080_v12, %v5079_v56  ;;  %v4824_v18 = vpop.f32.mrf.mxu0 }
 0x2e6   : > { %5035 = vst.msk [vmem:[%s8174_s19 + $0x38] sm:$0xf] %vm451_vm0, %v5634_v20  ;;  %v5183_v62 = vsel %vm4683_vm7, %v5138_v28, 0.0 }
 0x2e7   : > { %v5184_v34 = vadd.f32 %v5183_v62, %v5182_v26  ;;  %v4825_v53 = vpop.f32.mrf.mxu0  ;;  %v4854_v63 = vpop.f32.mrf.mxu1 }
 0x2e8   : > { %v5635_v7 = vpack.c.bf16 %v4825_v53, %v4825_v53  ;;  %v5082_v3 = vsel %vm4683_vm7, %v4825_v53, 0.0  ;;  %v5139_v15 = vmul.f32 %v4825_v53, %v4825_v53  ;;  %v5642_v29 = vpack.c.bf16 %v4854_v63, %v4854_v63 }
 0x2e9   : > { %v5083_v59 = vadd.f32 %v5082_v3, %v5081_v14  ;;  %v4827_v17 = vpop.f32.mrf.mxu0  ;;  %v4856_v39 = vpop.f32.mrf.mxu1  ;;  %v5146_v47 = vmul.f32 %v4854_v63, %v4854_v63  ;;  %v5096_v27 = vsel %vm4683_vm7, %v4854_v63, 0.0 }
 0x2ea   : > { %5036 = vst.msk [vmem:[%s8174_s19 + $0x3c] sm:$0xf] %vm451_vm0, %v5635_v7  ;;  %v5185_v8 = vsel %vm4683_vm7, %v5139_v15, 0.0  ;;  %5043 = vst.msk [vmem:[%s8174_s19 + $0x58] sm:$0xf] %vm451_vm0, %v5642_v29 }
 0x2eb   : > { %v5085_v35 = vadd.f32 %v5084_v45, %v5083_v59  ;;  %v5186_v37 = vadd.f32 %v5185_v8, %v5184_v34  ;;  %v4857_v19 = vpop.f32.mrf.mxu1  ;;  %v5199_v9 = vsel %vm4683_vm7, %v5146_v47, 0.0 }
 0x2ec   : > { %v5643_v49 = vpack.c.bf16 %v4857_v19, %v4857_v19  ;;  %v5147_v6 = vmul.f32 %v4857_v19, %v4857_v19  ;;  %v5098_v1 = vsel %vm4683_vm7, %v4857_v19, 0.0 }
 0x2ed   : > { %v5087_v30 = vadd.f32 %v5086_v55, %v5085_v35  ;;  %v5188_v10 = vadd.f32 %v5187_v54, %v5186_v37  ;;  %v4859_v4 = vpop.f32.mrf.mxu1 }
 0x2ee   : > { %5044 = vst.msk [vmem:[%s8174_s19 + $0x5c] sm:$0xf] %vm451_vm0, %v5643_v49  ;;  %v5201_v26 = vsel %vm4683_vm7, %v5147_v6, 0.0 }
 0x2ef   : > { %v5089_v11 = vadd.f32 %v5088_v41, %v5087_v30  ;;  %v5190_v60 = vadd.f32 %v5189_v44, %v5188_v10 }
 0x2f1   : > { %v5192_v48 = vadd.f32 %v5191_v5, %v5190_v60  ;;  %v5091_v58 = vadd.f32 %v5090_v51, %v5089_v11 }
 0x2f3   : > { %v5093_v38 = vadd.f32 %v5092_v16, %v5091_v58  ;;  %v5194_v61 = vadd.f32 %v5193_v57, %v5192_v48 }
 0x2f5   : > { %v5095_v22 = vadd.f32 %v5094_v21, %v5093_v38  ;;  %v5196_v31 = vadd.f32 %v5195_v2, %v5194_v61 }
 0x2f7   : > { %v5097_v36 = vadd.f32 %v5096_v27, %v5095_v22  ;;  %v5198_v56 = vadd.f32 %v5197_v32, %v5196_v31 }
 0x2f9   : > { %v5200_v13 = vadd.f32 %v5199_v9, %v5198_v56  ;;  %v5099_v33 = vadd.f32 %v5098_v1, %v5097_v36 }
 0x2fb   : > { %v5202_v40 = vadd.f32 %v5201_v26, %v5200_v13 }
 0x2ff   : > { %v4862_v24 = vpop.f32.mrf.mxu1 }
 0x300   : > { %v5644_v23 = vpack.c.bf16 %v4862_v24, %v4862_v24  ;;  %v5148_v17 = vmul.f32 %v4862_v24, %v4862_v24  ;;  %v5100_v39 = vsel %vm4683_vm7, %v4862_v24, 0.0 }
 0x301   : > { %v4864_v43 = vpop.f32.mrf.mxu1  ;;  %v5101_v37 = vadd.f32 %v5100_v39, %v5099_v33 }
 0x302   : > { %5045 = vst.msk [vmem:[%s8174_s19 + $0x60] sm:$0xf] %vm451_vm0, %v5644_v23  ;;  %v5203_v25 = vsel %vm4683_vm7, %v5148_v17, 0.0 }
 0x303   : > { %v4865_v20 = vpop.f32.mrf.mxu1  ;;  %v5204_v46 = vadd.f32 %v5203_v25, %v5202_v40 }
 0x304   : > { %v5645_v12 = vpack.c.bf16 %v4865_v20, %v4865_v20  ;;  %v5149_v45 = vmul.f32 %v4865_v20, %v4865_v20  ;;  %v5102_v8 = vsel %vm4683_vm7, %v4865_v20, 0.0 }
 0x305   : > { %v4867_v28 = vpop.f32.mrf.mxu1  ;;  %v5103_v49 = vadd.f32 %v5102_v8, %v5101_v37 }
 0x306   : > { %5046 = vst.msk [vmem:[%s8174_s19 + $0x64] sm:$0xf] %vm451_vm0, %v5645_v12  ;;  %v5205_v19 = vsel %vm4683_vm7, %v5149_v45, 0.0 }
 0x307   : > { %v5206_v44 = vadd.f32 %v5205_v19, %v5204_v46 }
 0x317   : > { %v4870_v14 = vpop.f32.mrf.mxu1 }
 0x318   : > { %v5646_v18 = vpack.c.bf16 %v4870_v14, %v4870_v14  ;;  %v5150_v35 = vmul.f32 %v4870_v14, %v4870_v14  ;;  %v5104_v54 = vsel %vm4683_vm7, %v4870_v14, 0.0 }
 0x319   : > { %v4872_v62 = vpop.f32.mrf.mxu1  ;;  %v5105_v41 = vadd.f32 %v5104_v54, %v5103_v49 }
 0x31a   : > { %5047 = vst.msk [vmem:[%s8174_s19 + $0x68] sm:$0xf] %vm451_vm0, %v5646_v18  ;;  %v5207_v30 = vsel %vm4683_vm7, %v5150_v35, 0.0 }
 0x31b   : > { %v4873_v52 = vpop.f32.mrf.mxu1  ;;  %v5208_v5 = vadd.f32 %v5207_v30, %v5206_v44 }
 0x31c   : > { %v5647_v34 = vpack.c.bf16 %v4873_v52, %v4873_v52  ;;  %v5151_v55 = vmul.f32 %v4873_v52, %v4873_v52  ;;  %v5106_v10 = vsel %vm4683_vm7, %v4873_v52, 0.0 }
 0x31d   : > { %v4875_v53 = vpop.f32.mrf.mxu1  ;;  %v5107_v51 = vadd.f32 %v5106_v10, %v5105_v41 }
 0x31e   : > { %5048 = vst.msk [vmem:[%s8174_s19 + $0x6c] sm:$0xf] %vm451_vm0, %v5647_v34  ;;  %v5209_v50 = vsel %vm4683_vm7, %v5151_v55, 0.0 }
 0x31f   : > { %v5210_v58 = vadd.f32 %v5209_v50, %v5208_v5 }
 0x32f   : > { %v4878_v63 = vpop.f32.mrf.mxu1 }
 0x330   : > { %v5648_v7 = vpack.c.bf16 %v4878_v63, %v4878_v63  ;;  %v5152_v4 = vmul.f32 %v4878_v63, %v4878_v63  ;;  %v5108_v11 = vsel %vm4683_vm7, %v4878_v63, 0.0 }
 0x331   : > { %v4880_v3 = vpop.f32.mrf.mxu1  ;;  %v5109_v57 = vadd.f32 %v5108_v11, %v5107_v51 }
 0x332   : > { %5049 = vst.msk [vmem:[%s8174_s19 + $0x70] sm:$0xf] %vm451_vm0, %v5648_v7  ;;  %v5211_v42 = vsel %vm4683_vm7, %v5152_v4, 0.0 }
 0x333   : > { %v4881_v15 = vpop.f32.mrf.mxu1  ;;  %v5212_v21 = vadd.f32 %v5211_v42, %v5210_v58 }
 0x334   : > { %v5649_v29 = vpack.c.bf16 %v4881_v15, %v4881_v15  ;;  %v5153_v60 = vmul.f32 %v4881_v15, %v4881_v15  ;;  %v5110_v48 = vsel %vm4683_vm7, %v4881_v15, 0.0 }
 0x335   : > { %v4883_v59 = vpop.f32.mrf.mxu1  ;;  %v5111_v47 = vadd.f32 %v5110_v48, %v5109_v57 }
 0x336   : > { %5050 = vst.msk [vmem:[%s8174_s19 + $0x74] sm:$0xf] %vm451_vm0, %v5649_v29  ;;  %v5213_v0 = vsel %vm4683_vm7, %v5153_v60, 0.0 }
 0x337   : > { %v5214_v32 = vadd.f32 %v5213_v0, %v5212_v21 }
 0x347   : > { %v4886_v16 = vpop.f32.mrf.mxu1 }
 0x348   : > { %v5650_v38 = vpack.c.bf16 %v4886_v16, %v4886_v16  ;;  %v5112_v61 = vsel %vm4683_vm7, %v4886_v16, 0.0  ;;  %v5154_v2 = vmul.f32 %v4886_v16, %v4886_v16 }
 0x349   : > { %v4888_v22 = vpop.f32.mrf.mxu1  ;;  %v5113_v27 = vadd.f32 %v5112_v61, %v5111_v47 }
 0x34a   : > { %5051 = vst.msk [vmem:[%s8174_s19 + $0x78] sm:$0xf] %vm451_vm0, %v5650_v38  ;;  %v5215_v31 = vsel %vm4683_vm7, %v5154_v2, 0.0 }
 0x34b   : > { %v4889_v6 = vpop.f32.mrf.mxu1  ;;  %v5216_v1 = vadd.f32 %v5215_v31, %v5214_v32 }
 0x34c   : > { %v5651_v36 = vpack.c.bf16 %v4889_v6, %v4889_v6  ;;  %v5114_v56 = vsel %vm4683_vm7, %v4889_v6, 0.0  ;;  %v5155_v9 = vmul.f32 %v4889_v6, %v4889_v6 }
 0x34d   : > { %v5115_v13 = vadd.f32 %v5114_v56, %v5113_v27  ;;  %v4891_v33 = vpop.f32.mrf.mxu1 }
 0x34e   : > { %5052 = vst.msk [vmem:[%s8174_s19 + $0x7c] sm:$0xf] %vm451_vm0, %v5651_v36  ;;  %v5217_v26 = vsel %vm4683_vm7, %v5155_v9, 0.0 }
 0x34f   : > { %v5116_v40 = vrot.slane %v5115_v13, 4  ;;  %v5218_v24 = vadd.f32 %v5217_v26, %v5216_v1 }
 0x350   : > { %5824 = shalt.err (!%p5821_p10)
}
 0x351   : > { %s5825_s16 = scalar_lea.hbm %s8505_s15, 2048  ;;  %s5829_s7 = scalar_lea.hbm %s8630_s4, 4096 }
 0x352   : > { %p5826_p0 = scmp.ne.s32.totalorder %s8505_s15, %s5825_s16  ;;  %p5830_p1 = scmp.lt.s32.totalorder %s8505_s15, %s8630_s4 }
 0x353   : > { %p5831_p3 = scmp.lt.s32.totalorder %s5829_s7, %s5825_s16 }
 0x354   : > { %p5827_p2 = pnand %p5826_p0, %p8650_p12 }
 0x355   : > { %p5832_p6 = por %p5831_p3, %p5830_p1 }
 0x356   : > { %p5828_p9 = pneg %p5827_p2 }
 0x358   : > { %p5833_p11 = pnand %p5832_p6, %p5828_p9 }
 0x35a   : > { %5836 = shalt.err (!%p5833_p11)
}
 0x35b   : > { %s5945_s11 = smov 4   ;;  %v5117_v23 = vadd.f32 %v5116_v40, %v5115_v13  ;;  %v5219_v43 = vrot.slane %v5218_v24, 4  ;;  %s5231_s12 = sand.u32 1, %s6004_s25  }
 0x35c   : > { %5673 = dma.vmem_to_hbm [thread:$0]  (%p8650_p12), %s8508_s20, 2048, %s8505_s15, %s5227_s17, %s5940_s29, %s5940_s29, %s5945_s11  }
 0x35d   : > { %v5118_v20 = vrot.slane %v5117_v23, 2  ;;  %v5220_v12 = vadd.f32 %v5219_v43, %v5218_v24  ;;  %s5583_s8 = sshll.u32 %s6004_s25, 4  ;;  %s279_s16 = scalar_lea.vmem [#allocation8], %s6082_s13 }
 0x35e   : > { %s5264_s19 = sshll.u32 %s279_s16, 4  ;;  %s285_s14 = scalar_lea.vmem [#allocation10], %s6082_s13  ;;  %s8549_s19 = int_to_ptr.vmem [resolvable:$true] %s5264_s19 }
 0x35f   : > { %v5119_v28 = vadd.f32 %v5118_v20, %v5117_v23  ;;  %v5221_v14 = vrot.slane %v5220_v12, 2  ;;  %s5277_s7 = sshll.u32 %s285_s14, 4  ;;  %s8547_s20 = scalar_lea.hbm %s8631_s5, %s5583_s8  ;;  %s8557_s7 = int_to_ptr.vmem [resolvable:$true] %s5277_s7 }
 0x360   : > { %s8555_s17 = scalar_lea.hbm %s8632_s6, %s5583_s8  ;;  %s8559_s28 = scalar_lea.sflag [#allocation9], %s5231_s12 }
 0x361   : > { %v5120_v18 = vrot.slane %v5119_v28, 1  ;;  %v5222_v62 = vadd.f32 %v5221_v14, %v5220_v12  ;;  %s5837_s11 = scalar_lea.vmem %s8549_s19, 16  ;;  %s5946_s18 = smov [#allocation8]  }
 0x362   : > { %p5838_p13 = scmp.ne.s32.totalorder %s8549_s19, %s5837_s11  ;;  %s5841_s29 = sshll.u32 %s5946_s18, 4  ;;  %s5842_s29 = int_to_ptr.vmem [resolvable:$false] %s5841_s29 }
 0x363   : > { %v5121_v52 = vadd.f32 %v5120_v18, %v5119_v28  ;;  %v5223_v34 = vrot.slane %v5222_v62, 1  ;;  %s5843_s26 = scalar_lea.vmem %s5842_s29, 32  ;;  %p5844_p7 = scmp.lt.s32.totalorder %s8549_s19, %s5842_s29 }
 0x364   : > { %p5839_p4 = pnand %p5838_p13, %p8650_p12  ;;  %p5845_p8 = scmp.lt.s32.totalorder %s5843_s26, %s5837_s11 }
 0x365   : > { %v5224_v53 = vadd.f32 %v5223_v34, %v5222_v62  ;;  %5123 = vst.msk [vmem:[%s279_s16] sm:$0x1] %vm454_vm1, %v5121_v52 }
 0x366   : > { %p5840_p5 = pneg %p5839_p4  ;;  %p5846_p10 = por %p5845_p8, %p5844_p7 }
 0x368   : > { %p5847_p0 = pnand %p5846_p10, %p5840_p5 }
 0x36a   : > { %5850 = shalt.err (!%p5847_p0)
}
 0x36b   : > { %s5851_s12 = scalar_lea.hbm %s8547_s20, 16  ;;  %s5855_s25 = scalar_lea.hbm %s8631_s5, 32 }
 0x36c   : > { %p5852_p2 = scmp.ne.s32.totalorder %s8547_s20, %s5851_s12  ;;  %p5856_p3 = scmp.lt.s32.totalorder %s8547_s20, %s8631_s5 }
 0x36d   : > { %p5857_p6 = scmp.lt.s32.totalorder %s5855_s25, %s5851_s12 }
 0x36e   : > { %p5853_p9 = pnand %p5852_p2, %p8650_p12 }
 0x36f   : > { %p5858_p11 = por %p5857_p6, %p5856_p3 }
 0x370   : > { %p5854_p1 = pneg %p5853_p9 }
 0x372   : > { %p5859_p13 = pnand %p5858_p11, %p5854_p1 }
 0x374   : > { %5862 = shalt.err (!%p5859_p13)
}
 0x375   : > { %5674 = dma.vmem_to_hbm [thread:$0]  (%p8650_p12), %s8549_s19, 16, %s8547_s20, %s8559_s28   ;;  %5225 = vst.msk [vmem:[%s285_s14] sm:$0x1] %vm454_vm1, %v5224_v53 }
 0x376   : > { %s5863_s26 = scalar_lea.vmem %s8557_s7, 16  ;;  %s5947_s11 = smov [#allocation10]  }
 0x377   : > { %p5864_p4 = scmp.ne.s32.totalorder %s8557_s7, %s5863_s26  ;;  %s5867_s29 = sshll.u32 %s5947_s11, 4  ;;  %s5868_s29 = int_to_ptr.vmem [resolvable:$false] %s5867_s29 }
 0x378   : > { %s5869_s12 = scalar_lea.vmem %s5868_s29, 32  ;;  %p5870_p8 = scmp.lt.s32.totalorder %s8557_s7, %s5868_s29 }
 0x379   : > { %p5865_p5 = pnand %p5864_p4, %p8650_p12  ;;  %p5871_p10 = scmp.lt.s32.totalorder %s5869_s12, %s5863_s26 }
 0x37b   : > { %p5866_p7 = pneg %p5865_p5  ;;  %p5872_p0 = por %p5871_p10, %p5870_p8 }
 0x37d   : > { %p5873_p2 = pnand %p5872_p0, %p5866_p7 }
 0x37f   : > { %5876 = shalt.err (!%p5873_p2)
}
 0x380   : > { %s5877_s13 = scalar_lea.hbm %s8555_s17, 16  ;;  %s5881_s20 = scalar_lea.hbm %s8632_s6, 32 }
 0x381   : > { %p5878_p9 = scmp.ne.s32.totalorder %s8555_s17, %s5877_s13  ;;  %p5882_p6 = scmp.lt.s32.totalorder %s8555_s17, %s8632_s6 }
 0x382   : > { %p5883_p11 = scmp.lt.s32.totalorder %s5881_s20, %s5877_s13 }
 0x383   : > { %p5879_p1 = pnand %p5878_p9, %p8650_p12 }
 0x384   : > { %p5884_p13 = por %p5883_p11, %p5882_p6 }
 0x385   : > { %p5880_p3 = pneg %p5879_p1 }
 0x387   : > { %p5885_p4 = pnand %p5884_p13, %p5880_p3 }
 0x389   : > { %5888 = shalt.err (!%p5885_p4)
}
 0x38a   : > { %5675 = dma.vmem_to_hbm [thread:$0]  (%p8650_p12), %s8557_s7, 16, %s8555_s17, %s8559_s28  }
 0x38b PF: > { %s5289_s25 = sand.u32 1, %s5919_s21   ;;  %p8651_p5 = scmp.ne.s32.totalorder %s8639_s10, 0 }
 0x38c   : > { %p8652_p7 = scmp.ge.s32.totalorder %s5931_s24, 2  ;;  %s5290_s15 = scalar_lea.sflag [#allocation6], %s5289_s25 }
 0x38e   : > { %p5684_p8 = pnand %p8652_p7, %p8651_p5 }
 0x390   : > { %p5685_p10 = pneg %p5684_p8 }
 0x392   : > { %5910 = dma.done.wait (%p5685_p10), %s5290_s15, 2048  }
 0x393   : > { %5912 = vsyncadd (%p5685_p10), %s5290_s15, 4294965248  ;;  %s8653_s18 = sadd.s32 4294967294, %s5931_s24  }
 0x394   : > { %s5298_s26 = sand.u32 1, %s8653_s18  }
 0x395   : > { %s5299_s9 = scalar_lea.sflag [#allocation9], %s5298_s26 }
 0x396   : > { %5914 = dma.done.wait (%p5685_p10), %s5299_s9, 32  }
 0x397   : > { %5916 = vsyncadd (%p5685_p10), %s5299_s9, 4294967264  ;;  %p23_p12 = scmp.ge.s32.totalorder %s6008_s27, 4   ;;  %s8654_s21 = smov %s5923_s22 }
 0x398   : > { %s8655_s22 = smov %s5927_s23  ;;  %s8656_s23 = smov %s6020_s30 }
 0x399   : > { %s8657_s24 = smov %s6008_s27  ;;  %25 = sbr.rel (!%p23_p12) target bundleno = 7 (0x7), region = 116 }
 0x39e   :  { %5311 = vsyncpa [#allocation5], 1 }
 0x39f   :  { %5313 = vsyncpa [#allocation5 + $0x1], 1 }
 0x3a0   :  { %5314 = vsyncpa [#allocation6], 1 }
 0x3a1   :  { %5316 = vsyncpa [#allocation6 + $0x1], 1 }
 0x3a2   :  { %5317 = vsyncpa [#allocation9], 1 }
 0x3a3   :  { %5319 = vsyncpa [#allocation9 + $0x1], 1 }

</bundles_post_ra>
